<compile_context>
chip_gen: v7x
topology: tpu7x:2x2x1
jax: 0.10.0
libtpu: 0.0.40
codegen_flags: <defaults>
</compile_context>

<pallas_src>
import math

import jax
import jax.numpy as jnp
from jax.experimental import pallas as pl
from jax.experimental.pallas import tpu as pltpu

# Small problem sizes consistent with the module.
B, S, D_MODEL, N_HEAD = 2, 8, 32, 4
D_HID = 2048                       # PositionwiseFeedForward default d_hid
D_K = D_MODEL // N_HEAD
BH = B * N_HEAD
LN_EPS = 1e-6
SCALE = 1.0 / math.sqrt(D_K)


# ----------------------------- shared math helpers ---------------------------
def _layer_norm(y, gamma, beta):
    mu = jnp.mean(y, axis=-1, keepdims=True)
    var = jnp.mean((y - mu) ** 2, axis=-1, keepdims=True)
    return (y - mu) * jax.lax.rsqrt(var + LN_EPS) * gamma + beta


# ------------------------------ in-kernel helpers -----------------------------
def _expand_heads(x2):
    """(B*S, D) -> (B*H, S, D); row b*H + h holds batch b (pure leading-dim ops)."""
    x4 = jnp.broadcast_to(x2.reshape(B, 1, S, D_MODEL), (B, N_HEAD, S, D_MODEL))
    return x4.reshape(BH, S, D_MODEL)


def _tile_w(w):
    """(H, din, dout) -> (B*H, din, dout) by replication along the batch axis."""
    wb = jnp.broadcast_to(w[None], (B,) + w.shape)
    return wb.reshape((BH,) + w.shape[1:])


def _attend(q, k, v):
    """q,k,v: (B*H, S, D_K) f32 -> (B*H, S, D_K) f32 (softmax(QK^T/sqrt(dk)) V)."""
    s = jnp.einsum("nqd,nkd->nqk", q, k,
                   preferred_element_type=jnp.float32) * SCALE
    m = jnp.max(s, axis=-1, keepdims=True)
    p = jnp.exp(s - m)
    l = jnp.sum(p, axis=-1, keepdims=True)
    o = jnp.einsum("nqk,nkd->nqd", p, v, preferred_element_type=jnp.float32)
    return o * pl.reciprocal(l, approx=True)


def _combine_heads(o, wo_bh):
    """o: (B*H, S, D_K) f32, wo_bh: (B*H, D_K, D) bf16 -> (B*S, D) f32.

    Equivalent to concat-over-heads followed by the output projection, but done
    as per-head partial projections summed over the head axis (no lane concat).
    """
    proj = jnp.einsum("nsd,nde->nse", o.astype(jnp.bfloat16), wo_bh,
                      preferred_element_type=jnp.float32)      # (B*H, S, D)
    proj = proj.reshape(B, N_HEAD, S, D_MODEL)
    acc = proj[:, 0]
    for h in range(1, N_HEAD):
        acc = acc + proj[:, h]
    return acc.reshape(B * S, D_MODEL)


# --------------------------------- Pallas kernel -----------------------------
def decoder_layer_kernel(dec_ref, enc_ref,
                         s_wqkv_ref, s_wo_ref, s_g_ref, s_b_ref,      # self-attn
                         e_wq_ref, e_wkv_ref, e_wo_ref, e_g_ref, e_b_ref,  # enc-attn
                         f_w1_ref, f_b1_ref, f_w2_ref, f_b2_ref, f_g_ref, f_b_ref,  # FFN
                         out_ref):
    x2 = dec_ref[...]                 # (B*S, D) f32
    enc2 = enc_ref[...]               # (B*S, D) f32

    x_bh = _expand_heads(x2).astype(jnp.bfloat16)       # (B*H, S, D) bf16
    enc_bh = _expand_heads(enc2).astype(jnp.bfloat16)   # (B*H, S, D) bf16

    # Hoisted: enc-side K/V projection (independent of the self-attention result).
    kv_enc = jnp.einsum("nsd,nde->nse", enc_bh, _tile_w(e_wkv_ref[...]),
                        preferred_element_type=jnp.float32)   # (B*H, S, 2*D_K)
    k_enc = kv_enc[..., :D_K]
    v_enc = kv_enc[..., D_K:]

    # 1) masked self-attention block (mask=None), fused QKV projection.
    qkv = jnp.einsum("nsd,nde->nse", x_bh, _tile_w(s_wqkv_ref[...]),
                     preferred_element_type=jnp.float32)      # (B*H, S, 3*D_K)
    o = _attend(qkv[..., :D_K], qkv[..., D_K:2 * D_K], qkv[..., 2 * D_K:])
    y2 = _layer_norm(_combine_heads(o, _tile_w(s_wo_ref[...])) + x2,
                     s_g_ref[...], s_b_ref[...])              # (B*S, D)

    # 2) encoder-decoder attention block.
    y_bh = _expand_heads(y2).astype(jnp.bfloat16)
    q_e = jnp.einsum("nsd,nde->nse", y_bh, _tile_w(e_wq_ref[...]),
                     preferred_element_type=jnp.float32)      # (B*H, S, D_K)
    o2 = _attend(q_e, k_enc, v_enc)
    y2 = _layer_norm(_combine_heads(o2, _tile_w(e_wo_ref[...])) + y2,
                     e_g_ref[...], e_b_ref[...])              # (B*S, D)

    # 3) position-wise feed-forward with residual + layernorm.
    h = jnp.dot(y2.astype(jnp.bfloat16), f_w1_ref[...],
                preferred_element_type=jnp.float32) + f_b1_ref[...]
    h = jnp.maximum(h, 0.0)
    z = jnp.dot(h.astype(jnp.bfloat16), f_w2_ref[...],
                preferred_element_type=jnp.float32) + f_b2_ref[...]
    out_ref[...] = _layer_norm(z + y2, f_g_ref[...], f_b_ref[...])


# ------------------------------ weight preparation ----------------------------
def _split_heads_w(w):
    """(D, H*D_K) -> (H, D, D_K): per-head slice of a projection weight."""
    return jnp.transpose(w.reshape(D_MODEL, N_HEAD, D_K), (1, 0, 2))


def prepare_weights(p):
    """Restructure + cast weights for the kernel (runs in plain XLA, not Mosaic)."""
    bf = jnp.bfloat16
    s_wqkv = jnp.concatenate([_split_heads_w(p["s_wq"]),
                              _split_heads_w(p["s_wk"]),
                              _split_heads_w(p["s_wv"])], axis=-1).astype(bf)  # (H,D,3Dk)
    s_wo = p["s_wo"].reshape(N_HEAD, D_K, D_MODEL).astype(bf)                  # (H,Dk,D)
    e_wq = _split_heads_w(p["e_wq"]).astype(bf)                                # (H,D,Dk)
    e_wkv = jnp.concatenate([_split_heads_w(p["e_wk"]),
                             _split_heads_w(p["e_wv"])], axis=-1).astype(bf)   # (H,D,2Dk)
    e_wo = p["e_wo"].reshape(N_HEAD, D_K, D_MODEL).astype(bf)                  # (H,Dk,D)
    return [s_wqkv, s_wo, p["s_g"], p["s_b"],
            e_wq, e_wkv, e_wo, p["e_g"], p["e_b"],
            p["f_w1"].astype(bf), p["f_b1"], p["f_w2"].astype(bf), p["f_b2"],
            p["f_g"], p["f_b"]]


# ----------------------------------- wrapper ----------------------------------
def _full_spec(a):
    nd = a.ndim
    return pl.BlockSpec(a.shape, lambda i, _nd=nd: (0,) * _nd)


def decoder_layer_pallas(dec_input, enc_output, params):
    dec2 = dec_input.reshape(B * S, D_MODEL)
    enc2 = enc_output.reshape(B * S, D_MODEL)
    weights = prepare_weights(params)
    args = [dec2, enc2] + weights

    flops = int(
        2 * B * S * D_MODEL * 3 * D_MODEL        # fused self-attn QKV
        + 2 * B * S * D_MODEL * D_MODEL          # self-attn output projection
        + 2 * B * S * D_MODEL * 2 * D_MODEL      # enc K/V projection
        + 2 * B * S * D_MODEL * D_MODEL          # enc Q projection
        + 2 * B * S * D_MODEL * D_MODEL          # enc output projection
        + 2 * (4 * B * N_HEAD * S * S * D_K)     # two attention cores (QK^T, PV)
        + 4 * B * S * D_MODEL * D_HID)           # FFN (two matmuls)
    transcendentals = int(2 * B * N_HEAD * S * S   # exp (two softmaxes)
                          + 2 * B * N_HEAD * S     # approx reciprocals
                          + 3 * B * S)             # layernorm rsqrt
    bytes_accessed = int(sum(a.size * a.dtype.itemsize for a in args)
                         + B * S * D_MODEL * 4)

    out2 = pl.pallas_call(
        decoder_layer_kernel,
        out_shape=jax.ShapeDtypeStruct((B * S, D_MODEL), jnp.float32),
        grid_spec=pltpu.PrefetchScalarGridSpec(
            num_scalar_prefetch=0,
            grid=(1,),
            in_specs=[_full_spec(a) for a in args],
            out_specs=pl.BlockSpec((B * S, D_MODEL), lambda i: (0, 0)),
        ),
        compiler_params=pltpu.CompilerParams(
            dimension_semantics=("arbitrary",)),
        cost_estimate=pl.CostEstimate(flops=flops,
                                      transcendentals=transcendentals,
                                      bytes_accessed=bytes_accessed),
    )(*args)
    return out2.reshape(B, S, D_MODEL)


# ------------------------------ pure-JAX reference ---------------------------
def decoder_layer_ref(dec_input, enc_output, p):
    bf = jnp.bfloat16

    def proj(x, w):
        return jnp.einsum("bsd,de->bse", x.astype(bf), w.astype(bf),
                          preferred_element_type=jnp.float32)

    def split(t):
        return t.reshape(B, S, N_HEAD, D_K).transpose(0, 2, 1, 3)

    def mha(xq, xkv, wq, wk, wv, wo, g, be):
        residual = xq
        q, k, v = split(proj(xq, wq)), split(proj(xkv, wk)), split(proj(xkv, wv))
        s = jnp.einsum("bhqd,bhkd->bhqk", q, k,
                       preferred_element_type=jnp.float32) * SCALE
        s = s - jnp.max(s, axis=-1, keepdims=True)
        a = jnp.exp(s)
        a = a / jnp.sum(a, axis=-1, keepdims=True)
        o = jnp.einsum("bhqk,bhkd->bhqd", a, v, preferred_element_type=jnp.float32)
        o = o.transpose(0, 2, 1, 3).reshape(B, S, D_MODEL)
        o = jnp.einsum("bsd,de->bse", o.astype(bf), wo.astype(bf),
                       preferred_element_type=jnp.float32)
        return _layer_norm(o + residual, g, be)

    y = mha(dec_input, dec_input, p["s_wq"], p["s_wk"], p["s_wv"], p["s_wo"],
            p["s_g"], p["s_b"])
    y = mha(y, enc_output, p["e_wq"], p["e_wk"], p["e_wv"], p["e_wo"],
            p["e_g"], p["e_b"])
    h = jnp.maximum(
        jnp.einsum("bsd,dh->bsh", y.astype(bf), p["f_w1"].astype(bf),
                   preferred_element_type=jnp.float32) + p["f_b1"], 0.0)
    z = jnp.einsum("bsh,hd->bsd", h.astype(bf), p["f_w2"].astype(bf),
                   preferred_element_type=jnp.float32) + p["f_b2"]
    return _layer_norm(z + y, p["f_g"], p["f_b"])


# ------------------------------ parameter init --------------------------------
def make_params(key):
    ks = jax.random.split(key, 24)
    i = iter(range(24))

    def rnd(shape, scale=0.05):
        return scale * jax.random.normal(ks[next(i)], shape, dtype=jnp.float32)

    p = {}
    for pref in ("s", "e"):
        p[f"{pref}_wq"] = rnd((D_MODEL, D_MODEL))
        p[f"{pref}_wk"] = rnd((D_MODEL, D_MODEL))
        p[f"{pref}_wv"] = rnd((D_MODEL, D_MODEL))
        p[f"{pref}_wo"] = rnd((D_MODEL, D_MODEL))
        p[f"{pref}_g"] = 1.0 + rnd((1, D_MODEL), 0.1)   # layernorm gamma
        p[f"{pref}_b"] = rnd((1, D_MODEL), 0.1)         # layernorm beta
    p["f_w1"] = rnd((D_MODEL, D_HID))                   # w_1 weight (transposed)
    p["f_b1"] = rnd((1, D_HID), 0.1)
    p["f_w2"] = rnd((D_HID, D_MODEL))                   # w_2 weight (transposed)
    p["f_b2"] = rnd((1, D_MODEL), 0.1)
    p["f_g"] = 1.0 + rnd((1, D_MODEL), 0.1)
    p["f_b"] = rnd((1, D_MODEL), 0.1)
    return p


if __name__ == "__main__":
    key = jax.random.PRNGKey(0)
    k_dec, k_enc, k_par = jax.random.split(key, 3)
    dec_input = jax.random.normal(k_dec, (B, S, D_MODEL), dtype=jnp.float32)
    enc_output = jax.random.normal(k_enc, (B, S, D_MODEL), dtype=jnp.float32)
    params = make_params(k_par)

    out = jax.block_until_ready(decoder_layer_pallas(dec_input, enc_output, params))
    ref = jax.block_until_ready(decoder_layer_ref(dec_input, enc_output, params))

    assert out.shape == (B, S, D_MODEL)
    # bf16 weights + approx-reciprocal softmax => slightly looser tolerance.
    assert jnp.allclose(out, ref, atol=2e-2, rtol=2e-2), "mismatch vs reference"
    print("KERNEL_OK")
</pallas_src>

<mosaic_0001>
module attributes {stable_mosaic.version = 11 : i64} {
  func.func @decoder_layer_kernel(%arg0: i32, %arg1: memref<16x32xf32, #tpu.memory_space<vmem>>, %arg2: memref<16x32xf32, #tpu.memory_space<vmem>>, %arg3: memref<4x32x24xbf16, #tpu.memory_space<vmem>>, %arg4: memref<4x8x32xbf16, #tpu.memory_space<vmem>>, %arg5: memref<1x32xf32, #tpu.memory_space<vmem>>, %arg6: memref<1x32xf32, #tpu.memory_space<vmem>>, %arg7: memref<4x32x8xbf16, #tpu.memory_space<vmem>>, %arg8: memref<4x32x16xbf16, #tpu.memory_space<vmem>>, %arg9: memref<4x8x32xbf16, #tpu.memory_space<vmem>>, %arg10: memref<1x32xf32, #tpu.memory_space<vmem>>, %arg11: memref<1x32xf32, #tpu.memory_space<vmem>>, %arg12: memref<32x2048xbf16, #tpu.memory_space<vmem>>, %arg13: memref<1x2048xf32, #tpu.memory_space<vmem>>, %arg14: memref<2048x32xbf16, #tpu.memory_space<vmem>>, %arg15: memref<1x32xf32, #tpu.memory_space<vmem>>, %arg16: memref<1x32xf32, #tpu.memory_space<vmem>>, %arg17: memref<1x32xf32, #tpu.memory_space<vmem>>, %arg18: memref<16x32xf32, #tpu.memory_space<vmem>>) attributes {dimension_semantics = [#tpu.dimension_semantics<arbitrary>], iteration_bounds = array<i64: 1>, scalar_prefetch = 0 : i64, scratch_operands = 0 : i64, tpu.core_type = #tpu.core_type<tc>, window_params = [{pipeline_mode = #tpu.pipeline_mode<synchronous>, transform_indices = @transform_0, window_bounds = array<i64: 16, 32>}, {pipeline_mode = #tpu.pipeline_mode<synchronous>, transform_indices = @transform_1, window_bounds = array<i64: 16, 32>}, {pipeline_mode = #tpu.pipeline_mode<synchronous>, transform_indices = @transform_2, window_bounds = array<i64: 4, 32, 24>}, {pipeline_mode = #tpu.pipeline_mode<synchronous>, transform_indices = @transform_3, window_bounds = array<i64: 4, 8, 32>}, {pipeline_mode = #tpu.pipeline_mode<synchronous>, transform_indices = @transform_4, window_bounds = array<i64: 1, 32>}, {pipeline_mode = #tpu.pipeline_mode<synchronous>, transform_indices = @transform_5, window_bounds = array<i64: 1, 32>}, {pipeline_mode = #tpu.pipeline_mode<synchronous>, transform_indices = @transform_6, window_bounds = array<i64: 4, 32, 8>}, {pipeline_mode = #tpu.pipeline_mode<synchronous>, transform_indices = @transform_7, window_bounds = array<i64: 4, 32, 16>}, {pipeline_mode = #tpu.pipeline_mode<synchronous>, transform_indices = @transform_8, window_bounds = array<i64: 4, 8, 32>}, {pipeline_mode = #tpu.pipeline_mode<synchronous>, transform_indices = @transform_9, window_bounds = array<i64: 1, 32>}, {pipeline_mode = #tpu.pipeline_mode<synchronous>, transform_indices = @transform_10, window_bounds = array<i64: 1, 32>}, {pipeline_mode = #tpu.pipeline_mode<synchronous>, transform_indices = @transform_11, window_bounds = array<i64: 32, 2048>}, {pipeline_mode = #tpu.pipeline_mode<synchronous>, transform_indices = @transform_12, window_bounds = array<i64: 1, 2048>}, {pipeline_mode = #tpu.pipeline_mode<synchronous>, transform_indices = @transform_13, window_bounds = array<i64: 2048, 32>}, {pipeline_mode = #tpu.pipeline_mode<synchronous>, transform_indices = @transform_14, window_bounds = array<i64: 1, 32>}, {pipeline_mode = #tpu.pipeline_mode<synchronous>, transform_indices = @transform_15, window_bounds = array<i64: 1, 32>}, {pipeline_mode = #tpu.pipeline_mode<synchronous>, transform_indices = @transform_16, window_bounds = array<i64: 1, 32>}, {pipeline_mode = #tpu.pipeline_mode<synchronous>, transform_indices = @transform_17, window_bounds = array<i64: 16, 32>}]} {
    %c0 = arith.constant 0 : index
    %c0_0 = arith.constant 0 : index
    %0 = vector.load %arg1[%c0, %c0_0] : memref<16x32xf32, #tpu.memory_space<vmem>>, vector<16x32xf32>
    %c0_1 = arith.constant 0 : index
    %c0_2 = arith.constant 0 : index
    %1 = vector.load %arg2[%c0_1, %c0_2] : memref<16x32xf32, #tpu.memory_space<vmem>>, vector<16x32xf32>
    %2 = vector.shape_cast %0 : vector<16x32xf32> to vector<2x1x8x32xf32>
    %3 = vector.shape_cast %2 : vector<2x1x8x32xf32> to vector<2x1x8x32xf32>
    %4 = vector.broadcast %3 : vector<2x1x8x32xf32> to vector<2x4x8x32xf32>
    %5 = vector.shape_cast %4 : vector<2x4x8x32xf32> to vector<8x8x32xf32>
    %6 = arith.truncf %5 : vector<8x8x32xf32> to vector<8x8x32xbf16>
    %7 = vector.shape_cast %1 : vector<16x32xf32> to vector<2x1x8x32xf32>
    %8 = vector.shape_cast %7 : vector<2x1x8x32xf32> to vector<2x1x8x32xf32>
    %9 = vector.broadcast %8 : vector<2x1x8x32xf32> to vector<2x4x8x32xf32>
    %10 = vector.shape_cast %9 : vector<2x4x8x32xf32> to vector<8x8x32xf32>
    %11 = arith.truncf %10 : vector<8x8x32xf32> to vector<8x8x32xbf16>
    %c0_3 = arith.constant 0 : index
    %c0_4 = arith.constant 0 : index
    %c0_5 = arith.constant 0 : index
    %12 = vector.load %arg8[%c0_3, %c0_4, %c0_5] : memref<4x32x16xbf16, #tpu.memory_space<vmem>>, vector<4x32x16xbf16>
    %13 = vector.shape_cast %12 : vector<4x32x16xbf16> to vector<1x4x32x16xbf16>
    %14 = vector.shape_cast %13 : vector<1x4x32x16xbf16> to vector<1x4x32x16xbf16>
    %15 = vector.broadcast %14 : vector<1x4x32x16xbf16> to vector<2x4x32x16xbf16>
    %16 = vector.shape_cast %15 : vector<2x4x32x16xbf16> to vector<8x32x16xbf16>
    "tpu.trace_start"() <{level = 10 : i32, message = "nsd,nde->nse"}> : () -> ()
    %cst = arith.constant dense<0.000000e+00> : vector<8x8x16xf32>
    %17 = tpu.matmul %11, %16, %cst {dimension_numbers = #tpu.dot_dimension_numbers<[2], [1], [1], [2], [0, 0, 0, 1, 1, 2], [0], [0]>} : vector<8x8x32xbf16>, vector<8x32x16xbf16>, vector<8x8x16xf32> -> vector<8x8x16xf32>
    "tpu.trace_stop"() : () -> ()
    %18 = vector.extract_strided_slice %17 {offsets = [0, 0, 0], sizes = [8, 8, 8], strides = [1, 1, 1]} : vector<8x8x16xf32> to vector<8x8x8xf32>
    %19 = vector.extract_strided_slice %17 {offsets = [0, 0, 8], sizes = [8, 8, 8], strides = [1, 1, 1]} : vector<8x8x16xf32> to vector<8x8x8xf32>
    %c0_6 = arith.constant 0 : index
    %c0_7 = arith.constant 0 : index
    %c0_8 = arith.constant 0 : index
    %20 = vector.load %arg3[%c0_6, %c0_7, %c0_8] : memref<4x32x24xbf16, #tpu.memory_space<vmem>>, vector<4x32x24xbf16>
    %21 = vector.shape_cast %20 : vector<4x32x24xbf16> to vector<1x4x32x24xbf16>
    %22 = vector.shape_cast %21 : vector<1x4x32x24xbf16> to vector<1x4x32x24xbf16>
    %23 = vector.broadcast %22 : vector<1x4x32x24xbf16> to vector<2x4x32x24xbf16>
    %24 = vector.shape_cast %23 : vector<2x4x32x24xbf16> to vector<8x32x24xbf16>
    "tpu.trace_start"() <{level = 10 : i32, message = "nsd,nde->nse"}> : () -> ()
    %cst_9 = arith.constant dense<0.000000e+00> : vector<8x8x24xf32>
    %25 = tpu.matmul %6, %24, %cst_9 {dimension_numbers = #tpu.dot_dimension_numbers<[2], [1], [1], [2], [0, 0, 0, 1, 1, 2], [0], [0]>} : vector<8x8x32xbf16>, vector<8x32x24xbf16>, vector<8x8x24xf32> -> vector<8x8x24xf32>
    "tpu.trace_stop"() : () -> ()
    %26 = vector.extract_strided_slice %25 {offsets = [0, 0, 0], sizes = [8, 8, 8], strides = [1, 1, 1]} : vector<8x8x24xf32> to vector<8x8x8xf32>
    %27 = vector.extract_strided_slice %25 {offsets = [0, 0, 8], sizes = [8, 8, 8], strides = [1, 1, 1]} : vector<8x8x24xf32> to vector<8x8x8xf32>
    %28 = vector.extract_strided_slice %25 {offsets = [0, 0, 16], sizes = [8, 8, 8], strides = [1, 1, 1]} : vector<8x8x24xf32> to vector<8x8x8xf32>
    "tpu.trace_start"() <{level = 10 : i32, message = "nqd,nkd->nqk"}> : () -> ()
    %cst_10 = arith.constant dense<0.000000e+00> : vector<8x8x8xf32>
    %29 = tpu.matmul %26, %27, %cst_10 {dimension_numbers = #tpu.dot_dimension_numbers<[2], [2], [1], [1], [0, 0, 0, 1, 1, 1], [0], [0]>} : vector<8x8x8xf32>, vector<8x8x8xf32>, vector<8x8x8xf32> -> vector<8x8x8xf32>
    "tpu.trace_stop"() : () -> ()
    %cst_11 = arith.constant 0.353553385 : f32
    %30 = vector.broadcast %cst_11 : f32 to vector<8x8x8xf32>
    %31 = arith.mulf %29, %30 : vector<8x8x8xf32>
    %cst_12 = arith.constant dense<0xFF800000> : vector<8x8xf32>
    %32 = vector.multi_reduction <maximumf>, %31, %cst_12 [2] : vector<8x8x8xf32> to vector<8x8xf32>
    %33 = vector.shape_cast %32 : vector<8x8xf32> to vector<8x8x1xf32>
    %34 = vector.broadcast %33 : vector<8x8x1xf32> to vector<8x8x8xf32>
    %35 = arith.subf %31, %34 : vector<8x8x8xf32>
    %36 = math.exp %35 : vector<8x8x8xf32>
    %cst_13 = arith.constant dense<0.000000e+00> : vector<8x8xf32>
    %37 = vector.multi_reduction <add>, %36, %cst_13 [2] : vector<8x8x8xf32> to vector<8x8xf32>
    %38 = vector.shape_cast %37 : vector<8x8xf32> to vector<8x8x1xf32>
    "tpu.trace_start"() <{level = 10 : i32, message = "nqk,nkd->nqd"}> : () -> ()
    %cst_14 = arith.constant dense<0.000000e+00> : vector<8x8x8xf32>
    %39 = tpu.matmul %36, %28, %cst_14 {dimension_numbers = #tpu.dot_dimension_numbers<[2], [1], [1], [2], [0, 0, 0, 1, 1, 2], [0], [0]>} : vector<8x8x8xf32>, vector<8x8x8xf32>, vector<8x8x8xf32> -> vector<8x8x8xf32>
    "tpu.trace_stop"() : () -> ()
    %40 = tpu.reciprocal %38 {approx = true} : vector<8x8x1xf32> -> vector<8x8x1xf32>
    %41 = vector.broadcast %40 : vector<8x8x1xf32> to vector<8x8x8xf32>
    %42 = arith.mulf %39, %41 : vector<8x8x8xf32>
    %c0_15 = arith.constant 0 : index
    %c0_16 = arith.constant 0 : index
    %c0_17 = arith.constant 0 : index
    %43 = vector.load %arg4[%c0_15, %c0_16, %c0_17] : memref<4x8x32xbf16, #tpu.memory_space<vmem>>, vector<4x8x32xbf16>
    %44 = vector.shape_cast %43 : vector<4x8x32xbf16> to vector<1x4x8x32xbf16>
    %45 = vector.shape_cast %44 : vector<1x4x8x32xbf16> to vector<1x4x8x32xbf16>
    %46 = vector.broadcast %45 : vector<1x4x8x32xbf16> to vector<2x4x8x32xbf16>
    %47 = vector.shape_cast %46 : vector<2x4x8x32xbf16> to vector<8x8x32xbf16>
    %48 = arith.truncf %42 : vector<8x8x8xf32> to vector<8x8x8xbf16>
    "tpu.trace_start"() <{level = 10 : i32, message = "nsd,nde->nse"}> : () -> ()
    %cst_18 = arith.constant dense<0.000000e+00> : vector<8x8x32xf32>
    %49 = tpu.matmul %48, %47, %cst_18 {dimension_numbers = #tpu.dot_dimension_numbers<[2], [1], [1], [2], [0, 0, 0, 1, 1, 2], [0], [0]>} : vector<8x8x8xbf16>, vector<8x8x32xbf16>, vector<8x8x32xf32> -> vector<8x8x32xf32>
    "tpu.trace_stop"() : () -> ()
    %50 = vector.shape_cast %49 : vector<8x8x32xf32> to vector<2x4x8x32xf32>
    %51 = vector.extract_strided_slice %50 {offsets = [0, 0, 0, 0], sizes = [2, 1, 8, 32], strides = [1, 1, 1, 1]} : vector<2x4x8x32xf32> to vector<2x1x8x32xf32>
    %52 = vector.shape_cast %51 : vector<2x1x8x32xf32> to vector<2x8x32xf32>
    %53 = vector.extract_strided_slice %50 {offsets = [0, 1, 0, 0], sizes = [2, 1, 8, 32], strides = [1, 1, 1, 1]} : vector<2x4x8x32xf32> to vector<2x1x8x32xf32>
    %54 = vector.shape_cast %53 : vector<2x1x8x32xf32> to vector<2x8x32xf32>
    %55 = arith.addf %52, %54 : vector<2x8x32xf32>
    %56 = vector.extract_strided_slice %50 {offsets = [0, 2, 0, 0], sizes = [2, 1, 8, 32], strides = [1, 1, 1, 1]} : vector<2x4x8x32xf32> to vector<2x1x8x32xf32>
    %57 = vector.shape_cast %56 : vector<2x1x8x32xf32> to vector<2x8x32xf32>
    %58 = arith.addf %55, %57 : vector<2x8x32xf32>
    %59 = vector.extract_strided_slice %50 {offsets = [0, 3, 0, 0], sizes = [2, 1, 8, 32], strides = [1, 1, 1, 1]} : vector<2x4x8x32xf32> to vector<2x1x8x32xf32>
    %60 = vector.shape_cast %59 : vector<2x1x8x32xf32> to vector<2x8x32xf32>
    %61 = arith.addf %58, %60 : vector<2x8x32xf32>
    %62 = vector.shape_cast %61 : vector<2x8x32xf32> to vector<16x32xf32>
    %63 = arith.addf %62, %0 : vector<16x32xf32>
    %c0_19 = arith.constant 0 : index
    %c0_20 = arith.constant 0 : index
    %64 = vector.load %arg5[%c0_19, %c0_20] : memref<1x32xf32, #tpu.memory_space<vmem>>, vector<1x32xf32>
    %c0_21 = arith.constant 0 : index
    %c0_22 = arith.constant 0 : index
    %65 = vector.load %arg6[%c0_21, %c0_22] : memref<1x32xf32, #tpu.memory_space<vmem>>, vector<1x32xf32>
    %cst_23 = arith.constant dense<0.000000e+00> : vector<16xf32>
    %66 = vector.multi_reduction <add>, %63, %cst_23 [1] : vector<16x32xf32> to vector<16xf32>
    %67 = vector.shape_cast %66 : vector<16xf32> to vector<16x1xf32>
    %cst_24 = arith.constant 3.200000e+01 : f32
    %68 = vector.broadcast %cst_24 : f32 to vector<16x1xf32>
    %69 = arith.divf %67, %68 : vector<16x1xf32>
    %70 = vector.broadcast %69 : vector<16x1xf32> to vector<16x32xf32>
    %71 = arith.subf %63, %70 : vector<16x32xf32>
    %72 = arith.mulf %71, %71 : vector<16x32xf32>
    %cst_25 = arith.constant dense<0.000000e+00> : vector<16xf32>
    %73 = vector.multi_reduction <add>, %72, %cst_25 [1] : vector<16x32xf32> to vector<16xf32>
    %74 = vector.shape_cast %73 : vector<16xf32> to vector<16x1xf32>
    %cst_26 = arith.constant 3.200000e+01 : f32
    %75 = vector.broadcast %cst_26 : f32 to vector<16x1xf32>
    %76 = arith.divf %74, %75 : vector<16x1xf32>
    %77 = vector.broadcast %69 : vector<16x1xf32> to vector<16x32xf32>
    %78 = arith.subf %63, %77 : vector<16x32xf32>
    %cst_27 = arith.constant 9.99999997E-7 : f32
    %79 = vector.broadcast %cst_27 : f32 to vector<16x1xf32>
    %80 = arith.addf %76, %79 : vector<16x1xf32>
    %81 = math.rsqrt %80 : vector<16x1xf32>
    %82 = vector.broadcast %81 : vector<16x1xf32> to vector<16x32xf32>
    %83 = arith.mulf %78, %82 : vector<16x32xf32>
    %84 = vector.broadcast %64 : vector<1x32xf32> to vector<16x32xf32>
    %85 = arith.mulf %83, %84 : vector<16x32xf32>
    %86 = vector.broadcast %65 : vector<1x32xf32> to vector<16x32xf32>
    %87 = arith.addf %85, %86 : vector<16x32xf32>
    %88 = vector.shape_cast %87 : vector<16x32xf32> to vector<2x1x8x32xf32>
    %89 = vector.shape_cast %88 : vector<2x1x8x32xf32> to vector<2x1x8x32xf32>
    %90 = vector.broadcast %89 : vector<2x1x8x32xf32> to vector<2x4x8x32xf32>
    %91 = vector.shape_cast %90 : vector<2x4x8x32xf32> to vector<8x8x32xf32>
    %92 = arith.truncf %91 : vector<8x8x32xf32> to vector<8x8x32xbf16>
    %c0_28 = arith.constant 0 : index
    %c0_29 = arith.constant 0 : index
    %c0_30 = arith.constant 0 : index
    %93 = vector.load %arg7[%c0_28, %c0_29, %c0_30] : memref<4x32x8xbf16, #tpu.memory_space<vmem>>, vector<4x32x8xbf16>
    %94 = vector.shape_cast %93 : vector<4x32x8xbf16> to vector<1x4x32x8xbf16>
    %95 = vector.shape_cast %94 : vector<1x4x32x8xbf16> to vector<1x4x32x8xbf16>
    %96 = vector.broadcast %95 : vector<1x4x32x8xbf16> to vector<2x4x32x8xbf16>
    %97 = vector.shape_cast %96 : vector<2x4x32x8xbf16> to vector<8x32x8xbf16>
    "tpu.trace_start"() <{level = 10 : i32, message = "nsd,nde->nse"}> : () -> ()
    %cst_31 = arith.constant dense<0.000000e+00> : vector<8x8x8xf32>
    %98 = tpu.matmul %92, %97, %cst_31 {dimension_numbers = #tpu.dot_dimension_numbers<[2], [1], [1], [2], [0, 0, 0, 1, 1, 2], [0], [0]>} : vector<8x8x32xbf16>, vector<8x32x8xbf16>, vector<8x8x8xf32> -> vector<8x8x8xf32>
    "tpu.trace_stop"() : () -> ()
    "tpu.trace_start"() <{level = 10 : i32, message = "nqd,nkd->nqk"}> : () -> ()
    %cst_32 = arith.constant dense<0.000000e+00> : vector<8x8x8xf32>
    %99 = tpu.matmul %98, %18, %cst_32 {dimension_numbers = #tpu.dot_dimension_numbers<[2], [2], [1], [1], [0, 0, 0, 1, 1, 1], [0], [0]>} : vector<8x8x8xf32>, vector<8x8x8xf32>, vector<8x8x8xf32> -> vector<8x8x8xf32>
    "tpu.trace_stop"() : () -> ()
    %cst_33 = arith.constant 0.353553385 : f32
    %100 = vector.broadcast %cst_33 : f32 to vector<8x8x8xf32>
    %101 = arith.mulf %99, %100 : vector<8x8x8xf32>
    %cst_34 = arith.constant dense<0xFF800000> : vector<8x8xf32>
    %102 = vector.multi_reduction <maximumf>, %101, %cst_34 [2] : vector<8x8x8xf32> to vector<8x8xf32>
    %103 = vector.shape_cast %102 : vector<8x8xf32> to vector<8x8x1xf32>
    %104 = vector.broadcast %103 : vector<8x8x1xf32> to vector<8x8x8xf32>
    %105 = arith.subf %101, %104 : vector<8x8x8xf32>
    %106 = math.exp %105 : vector<8x8x8xf32>
    %cst_35 = arith.constant dense<0.000000e+00> : vector<8x8xf32>
    %107 = vector.multi_reduction <add>, %106, %cst_35 [2] : vector<8x8x8xf32> to vector<8x8xf32>
    %108 = vector.shape_cast %107 : vector<8x8xf32> to vector<8x8x1xf32>
    "tpu.trace_start"() <{level = 10 : i32, message = "nqk,nkd->nqd"}> : () -> ()
    %cst_36 = arith.constant dense<0.000000e+00> : vector<8x8x8xf32>
    %109 = tpu.matmul %106, %19, %cst_36 {dimension_numbers = #tpu.dot_dimension_numbers<[2], [1], [1], [2], [0, 0, 0, 1, 1, 2], [0], [0]>} : vector<8x8x8xf32>, vector<8x8x8xf32>, vector<8x8x8xf32> -> vector<8x8x8xf32>
    "tpu.trace_stop"() : () -> ()
    %110 = tpu.reciprocal %108 {approx = true} : vector<8x8x1xf32> -> vector<8x8x1xf32>
    %111 = vector.broadcast %110 : vector<8x8x1xf32> to vector<8x8x8xf32>
    %112 = arith.mulf %109, %111 : vector<8x8x8xf32>
    %c0_37 = arith.constant 0 : index
    %c0_38 = arith.constant 0 : index
    %c0_39 = arith.constant 0 : index
    %113 = vector.load %arg9[%c0_37, %c0_38, %c0_39] : memref<4x8x32xbf16, #tpu.memory_space<vmem>>, vector<4x8x32xbf16>
    %114 = vector.shape_cast %113 : vector<4x8x32xbf16> to vector<1x4x8x32xbf16>
    %115 = vector.shape_cast %114 : vector<1x4x8x32xbf16> to vector<1x4x8x32xbf16>
    %116 = vector.broadcast %115 : vector<1x4x8x32xbf16> to vector<2x4x8x32xbf16>
    %117 = vector.shape_cast %116 : vector<2x4x8x32xbf16> to vector<8x8x32xbf16>
    %118 = arith.truncf %112 : vector<8x8x8xf32> to vector<8x8x8xbf16>
    "tpu.trace_start"() <{level = 10 : i32, message = "nsd,nde->nse"}> : () -> ()
    %cst_40 = arith.constant dense<0.000000e+00> : vector<8x8x32xf32>
    %119 = tpu.matmul %118, %117, %cst_40 {dimension_numbers = #tpu.dot_dimension_numbers<[2], [1], [1], [2], [0, 0, 0, 1, 1, 2], [0], [0]>} : vector<8x8x8xbf16>, vector<8x8x32xbf16>, vector<8x8x32xf32> -> vector<8x8x32xf32>
    "tpu.trace_stop"() : () -> ()
    %120 = vector.shape_cast %119 : vector<8x8x32xf32> to vector<2x4x8x32xf32>
    %121 = vector.extract_strided_slice %120 {offsets = [0, 0, 0, 0], sizes = [2, 1, 8, 32], strides = [1, 1, 1, 1]} : vector<2x4x8x32xf32> to vector<2x1x8x32xf32>
    %122 = vector.shape_cast %121 : vector<2x1x8x32xf32> to vector<2x8x32xf32>
    %123 = vector.extract_strided_slice %120 {offsets = [0, 1, 0, 0], sizes = [2, 1, 8, 32], strides = [1, 1, 1, 1]} : vector<2x4x8x32xf32> to vector<2x1x8x32xf32>
    %124 = vector.shape_cast %123 : vector<2x1x8x32xf32> to vector<2x8x32xf32>
    %125 = arith.addf %122, %124 : vector<2x8x32xf32>
    %126 = vector.extract_strided_slice %120 {offsets = [0, 2, 0, 0], sizes = [2, 1, 8, 32], strides = [1, 1, 1, 1]} : vector<2x4x8x32xf32> to vector<2x1x8x32xf32>
    %127 = vector.shape_cast %126 : vector<2x1x8x32xf32> to vector<2x8x32xf32>
    %128 = arith.addf %125, %127 : vector<2x8x32xf32>
    %129 = vector.extract_strided_slice %120 {offsets = [0, 3, 0, 0], sizes = [2, 1, 8, 32], strides = [1, 1, 1, 1]} : vector<2x4x8x32xf32> to vector<2x1x8x32xf32>
    %130 = vector.shape_cast %129 : vector<2x1x8x32xf32> to vector<2x8x32xf32>
    %131 = arith.addf %128, %130 : vector<2x8x32xf32>
    %132 = vector.shape_cast %131 : vector<2x8x32xf32> to vector<16x32xf32>
    %133 = arith.addf %132, %87 : vector<16x32xf32>
    %c0_41 = arith.constant 0 : index
    %c0_42 = arith.constant 0 : index
    %134 = vector.load %arg10[%c0_41, %c0_42] : memref<1x32xf32, #tpu.memory_space<vmem>>, vector<1x32xf32>
    %c0_43 = arith.constant 0 : index
    %c0_44 = arith.constant 0 : index
    %135 = vector.load %arg11[%c0_43, %c0_44] : memref<1x32xf32, #tpu.memory_space<vmem>>, vector<1x32xf32>
    %cst_45 = arith.constant dense<0.000000e+00> : vector<16xf32>
    %136 = vector.multi_reduction <add>, %133, %cst_45 [1] : vector<16x32xf32> to vector<16xf32>
    %137 = vector.shape_cast %136 : vector<16xf32> to vector<16x1xf32>
    %cst_46 = arith.constant 3.200000e+01 : f32
    %138 = vector.broadcast %cst_46 : f32 to vector<16x1xf32>
    %139 = arith.divf %137, %138 : vector<16x1xf32>
    %140 = vector.broadcast %139 : vector<16x1xf32> to vector<16x32xf32>
    %141 = arith.subf %133, %140 : vector<16x32xf32>
    %142 = arith.mulf %141, %141 : vector<16x32xf32>
    %cst_47 = arith.constant dense<0.000000e+00> : vector<16xf32>
    %143 = vector.multi_reduction <add>, %142, %cst_47 [1] : vector<16x32xf32> to vector<16xf32>
    %144 = vector.shape_cast %143 : vector<16xf32> to vector<16x1xf32>
    %cst_48 = arith.constant 3.200000e+01 : f32
    %145 = vector.broadcast %cst_48 : f32 to vector<16x1xf32>
    %146 = arith.divf %144, %145 : vector<16x1xf32>
    %147 = vector.broadcast %139 : vector<16x1xf32> to vector<16x32xf32>
    %148 = arith.subf %133, %147 : vector<16x32xf32>
    %cst_49 = arith.constant 9.99999997E-7 : f32
    %149 = vector.broadcast %cst_49 : f32 to vector<16x1xf32>
    %150 = arith.addf %146, %149 : vector<16x1xf32>
    %151 = math.rsqrt %150 : vector<16x1xf32>
    %152 = vector.broadcast %151 : vector<16x1xf32> to vector<16x32xf32>
    %153 = arith.mulf %148, %152 : vector<16x32xf32>
    %154 = vector.broadcast %134 : vector<1x32xf32> to vector<16x32xf32>
    %155 = arith.mulf %153, %154 : vector<16x32xf32>
    %156 = vector.broadcast %135 : vector<1x32xf32> to vector<16x32xf32>
    %157 = arith.addf %155, %156 : vector<16x32xf32>
    %158 = arith.truncf %157 : vector<16x32xf32> to vector<16x32xbf16>
    %c0_50 = arith.constant 0 : index
    %c0_51 = arith.constant 0 : index
    %159 = vector.load %arg12[%c0_50, %c0_51] : memref<32x2048xbf16, #tpu.memory_space<vmem>>, vector<32x2048xbf16>
    %cst_52 = arith.constant dense<0.000000e+00> : vector<16x2048xf32>
    %160 = tpu.matmul %158, %159, %cst_52 {dimension_numbers = #tpu.dot_dimension_numbers<[1], [0], [0], [1], [0, 0, 1, 1], [], []>} : vector<16x32xbf16>, vector<32x2048xbf16>, vector<16x2048xf32> -> vector<16x2048xf32>
    %c0_53 = arith.constant 0 : index
    %c0_54 = arith.constant 0 : index
    %161 = vector.load %arg13[%c0_53, %c0_54] : memref<1x2048xf32, #tpu.memory_space<vmem>>, vector<1x2048xf32>
    %162 = vector.broadcast %161 : vector<1x2048xf32> to vector<16x2048xf32>
    %163 = arith.addf %160, %162 : vector<16x2048xf32>
    %cst_55 = arith.constant 0.000000e+00 : f32
    %164 = vector.broadcast %cst_55 : f32 to vector<16x2048xf32>
    %165 = arith.maximumf %163, %164 : vector<16x2048xf32>
    %166 = arith.truncf %165 : vector<16x2048xf32> to vector<16x2048xbf16>
    %c0_56 = arith.constant 0 : index
    %c0_57 = arith.constant 0 : index
    %167 = vector.load %arg14[%c0_56, %c0_57] : memref<2048x32xbf16, #tpu.memory_space<vmem>>, vector<2048x32xbf16>
    %cst_58 = arith.constant dense<0.000000e+00> : vector<16x32xf32>
    %168 = tpu.matmul %166, %167, %cst_58 {dimension_numbers = #tpu.dot_dimension_numbers<[1], [0], [0], [1], [0, 0, 1, 1], [], []>} : vector<16x2048xbf16>, vector<2048x32xbf16>, vector<16x32xf32> -> vector<16x32xf32>
    %c0_59 = arith.constant 0 : index
    %c0_60 = arith.constant 0 : index
    %169 = vector.load %arg15[%c0_59, %c0_60] : memref<1x32xf32, #tpu.memory_space<vmem>>, vector<1x32xf32>
    %170 = vector.broadcast %169 : vector<1x32xf32> to vector<16x32xf32>
    %171 = arith.addf %168, %170 : vector<16x32xf32>
    %172 = arith.addf %171, %157 : vector<16x32xf32>
    %c0_61 = arith.constant 0 : index
    %c0_62 = arith.constant 0 : index
    %173 = vector.load %arg16[%c0_61, %c0_62] : memref<1x32xf32, #tpu.memory_space<vmem>>, vector<1x32xf32>
    %c0_63 = arith.constant 0 : index
    %c0_64 = arith.constant 0 : index
    %174 = vector.load %arg17[%c0_63, %c0_64] : memref<1x32xf32, #tpu.memory_space<vmem>>, vector<1x32xf32>
    %cst_65 = arith.constant dense<0.000000e+00> : vector<16xf32>
    %175 = vector.multi_reduction <add>, %172, %cst_65 [1] : vector<16x32xf32> to vector<16xf32>
    %176 = vector.shape_cast %175 : vector<16xf32> to vector<16x1xf32>
    %cst_66 = arith.constant 3.200000e+01 : f32
    %177 = vector.broadcast %cst_66 : f32 to vector<16x1xf32>
    %178 = arith.divf %176, %177 : vector<16x1xf32>
    %179 = vector.broadcast %178 : vector<16x1xf32> to vector<16x32xf32>
    %180 = arith.subf %172, %179 : vector<16x32xf32>
    %181 = arith.mulf %180, %180 : vector<16x32xf32>
    %cst_67 = arith.constant dense<0.000000e+00> : vector<16xf32>
    %182 = vector.multi_reduction <add>, %181, %cst_67 [1] : vector<16x32xf32> to vector<16xf32>
    %183 = vector.shape_cast %182 : vector<16xf32> to vector<16x1xf32>
    %cst_68 = arith.constant 3.200000e+01 : f32
    %184 = vector.broadcast %cst_68 : f32 to vector<16x1xf32>
    %185 = arith.divf %183, %184 : vector<16x1xf32>
    %186 = vector.broadcast %178 : vector<16x1xf32> to vector<16x32xf32>
    %187 = arith.subf %172, %186 : vector<16x32xf32>
    %cst_69 = arith.constant 9.99999997E-7 : f32
    %188 = vector.broadcast %cst_69 : f32 to vector<16x1xf32>
    %189 = arith.addf %185, %188 : vector<16x1xf32>
    %190 = math.rsqrt %189 : vector<16x1xf32>
    %191 = vector.broadcast %190 : vector<16x1xf32> to vector<16x32xf32>
    %192 = arith.mulf %187, %191 : vector<16x32xf32>
    %193 = vector.broadcast %173 : vector<1x32xf32> to vector<16x32xf32>
    %194 = arith.mulf %192, %193 : vector<16x32xf32>
    %195 = vector.broadcast %174 : vector<1x32xf32> to vector<16x32xf32>
    %196 = arith.addf %194, %195 : vector<16x32xf32>
    %c0_70 = arith.constant 0 : index
    %c0_71 = arith.constant 0 : index
    %197 = vector.load %arg18[%c0_70, %c0_71] : memref<16x32xf32, #tpu.memory_space<vmem>>, vector<16x32xf32>
    tpu.vector_store %arg18[%c0_70, %c0_71], %196 {strides = array<i32>} : memref<16x32xf32, #tpu.memory_space<vmem>>, vector<16x32xf32>,
    return
  }
  func.func @transform_0(%arg0: i32) -> (i32, i32) {
    %c0_i32 = arith.constant 0 : i32
    %c0_i32_0 = arith.constant 0 : i32
    %c0_i32_1 = arith.constant 0 : i32
    return %c0_i32, %c0_i32_0 : i32, i32
  }
  func.func @transform_1(%arg0: i32) -> (i32, i32) {
    %c0_i32 = arith.constant 0 : i32
    %c0_i32_0 = arith.constant 0 : i32
    %c0_i32_1 = arith.constant 0 : i32
    return %c0_i32, %c0_i32_0 : i32, i32
  }
  func.func @transform_2(%arg0: i32) -> (i32, i32, i32) {
    %c0_i32 = arith.constant 0 : i32
    %c0_i32_0 = arith.constant 0 : i32
    %c0_i32_1 = arith.constant 0 : i32
    %c0_i32_2 = arith.constant 0 : i32
    return %c0_i32, %c0_i32_0, %c0_i32_1 : i32, i32, i32
  }
  func.func @transform_3(%arg0: i32) -> (i32, i32, i32) {
    %c0_i32 = arith.constant 0 : i32
    %c0_i32_0 = arith.constant 0 : i32
    %c0_i32_1 = arith.constant 0 : i32
    %c0_i32_2 = arith.constant 0 : i32
    return %c0_i32, %c0_i32_0, %c0_i32_1 : i32, i32, i32
  }
  func.func @transform_4(%arg0: i32) -> (i32, i32) {
    %c0_i32 = arith.constant 0 : i32
    %c0_i32_0 = arith.constant 0 : i32
    %c0_i32_1 = arith.constant 0 : i32
    return %c0_i32, %c0_i32_0 : i32, i32
  }
  func.func @transform_5(%arg0: i32) -> (i32, i32) {
    %c0_i32 = arith.constant 0 : i32
    %c0_i32_0 = arith.constant 0 : i32
    %c0_i32_1 = arith.constant 0 : i32
    return %c0_i32, %c0_i32_0 : i32, i32
  }
  func.func @transform_6(%arg0: i32) -> (i32, i32, i32) {
    %c0_i32 = arith.constant 0 : i32
    %c0_i32_0 = arith.constant 0 : i32
    %c0_i32_1 = arith.constant 0 : i32
    %c0_i32_2 = arith.constant 0 : i32
    return %c0_i32, %c0_i32_0, %c0_i32_1 : i32, i32, i32
  }
  func.func @transform_7(%arg0: i32) -> (i32, i32, i32) {
    %c0_i32 = arith.constant 0 : i32
    %c0_i32_0 = arith.constant 0 : i32
    %c0_i32_1 = arith.constant 0 : i32
    %c0_i32_2 = arith.constant 0 : i32
    return %c0_i32, %c0_i32_0, %c0_i32_1 : i32, i32, i32
  }
  func.func @transform_8(%arg0: i32) -> (i32, i32, i32) {
    %c0_i32 = arith.constant 0 : i32
    %c0_i32_0 = arith.constant 0 : i32
    %c0_i32_1 = arith.constant 0 : i32
    %c0_i32_2 = arith.constant 0 : i32
    return %c0_i32, %c0_i32_0, %c0_i32_1 : i32, i32, i32
  }
  func.func @transform_9(%arg0: i32) -> (i32, i32) {
    %c0_i32 = arith.constant 0 : i32
    %c0_i32_0 = arith.constant 0 : i32
    %c0_i32_1 = arith.constant 0 : i32
    return %c0_i32, %c0_i32_0 : i32, i32
  }
  func.func @transform_10(%arg0: i32) -> (i32, i32) {
    %c0_i32 = arith.constant 0 : i32
    %c0_i32_0 = arith.constant 0 : i32
    %c0_i32_1 = arith.constant 0 : i32
    return %c0_i32, %c0_i32_0 : i32, i32
  }
  func.func @transform_11(%arg0: i32) -> (i32, i32) {
    %c0_i32 = arith.constant 0 : i32
    %c0_i32_0 = arith.constant 0 : i32
    %c0_i32_1 = arith.constant 0 : i32
    return %c0_i32, %c0_i32_0 : i32, i32
  }
  func.func @transform_12(%arg0: i32) -> (i32, i32) {
    %c0_i32 = arith.constant 0 : i32
    %c0_i32_0 = arith.constant 0 : i32
    %c0_i32_1 = arith.constant 0 : i32
    return %c0_i32, %c0_i32_0 : i32, i32
  }
  func.func @transform_13(%arg0: i32) -> (i32, i32) {
    %c0_i32 = arith.constant 0 : i32
    %c0_i32_0 = arith.constant 0 : i32
    %c0_i32_1 = arith.constant 0 : i32
    return %c0_i32, %c0_i32_0 : i32, i32
  }
  func.func @transform_14(%arg0: i32) -> (i32, i32) {
    %c0_i32 = arith.constant 0 : i32
    %c0_i32_0 = arith.constant 0 : i32
    %c0_i32_1 = arith.constant 0 : i32
    return %c0_i32, %c0_i32_0 : i32, i32
  }
  func.func @transform_15(%arg0: i32) -> (i32, i32) {
    %c0_i32 = arith.constant 0 : i32
    %c0_i32_0 = arith.constant 0 : i32
    %c0_i32_1 = arith.constant 0 : i32
    return %c0_i32, %c0_i32_0 : i32, i32
  }
  func.func @transform_16(%arg0: i32) -> (i32, i32) {
    %c0_i32 = arith.constant 0 : i32
    %c0_i32_0 = arith.constant 0 : i32
    %c0_i32_1 = arith.constant 0 : i32
    return %c0_i32, %c0_i32_0 : i32, i32
  }
  func.func @transform_17(%arg0: i32) -> (i32, i32) {
    %c0_i32 = arith.constant 0 : i32
    %c0_i32_0 = arith.constant 0 : i32
    %c0_i32_1 = arith.constant 0 : i32
    return %c0_i32, %c0_i32_0 : i32, i32
  }
}

</mosaic_0001>

<bundles_post_ra>
// kernel: tpu_custom_call.1
= control target key start
LH: loop header
LB: loop body
LE: loop exit
PB: predicated region body
PF: predicated region fallthrough
CT: control target
= control target key end

     0   :  { %s9489_s0 = inlined_call_operand.vmem [shape: f32[16,32], index: 0, kind: input, shape index: {}]   ;;  %s9490_s1 = inlined_call_operand.vmem [shape: f32[16,32], index: 1, kind: input, shape index: {}]   ;;  %s9491_s2 = inlined_call_operand.vmem [shape: bf16[4,32,24], index: 2, kind: input, shape index: {}]   ;;  %s9492_s3 = inlined_call_operand.vmem [shape: bf16[4,8,32], index: 3, kind: input, shape index: {}]   ;;  %s9493_s4 = inlined_call_operand.vmem [shape: f32[1,32], index: 4, kind: input, shape index: {}]   ;;  %s9494_s5 = inlined_call_operand.vmem [shape: f32[1,32], index: 5, kind: input, shape index: {}]   ;;  %s9495_s6 = inlined_call_operand.vmem [shape: bf16[4,32,8], index: 6, kind: input, shape index: {}]   ;;  %s9496_s7 = inlined_call_operand.vmem [shape: bf16[4,32,16], index: 7, kind: input, shape index: {}]   ;;  %s9497_s8 = inlined_call_operand.vmem [shape: bf16[4,8,32], index: 8, kind: input, shape index: {}]   ;;  %s9498_s9 = inlined_call_operand.vmem [shape: f32[1,32], index: 9, kind: input, shape index: {}]   ;;  %s9499_s10 = inlined_call_operand.vmem [shape: f32[1,32], index: 10, kind: input, shape index: {}]   ;;  %s9500_s11 = inlined_call_operand.vmem [shape: bf16[32,2048], index: 11, kind: input, shape index: {}]   ;;  %s9501_s12 = inlined_call_operand.vmem [shape: f32[1,2048], index: 12, kind: input, shape index: {}]   ;;  %s9502_s13 = inlined_call_operand.vmem [shape: bf16[2048,32], index: 13, kind: input, shape index: {}]   ;;  %s9503_s14 = inlined_call_operand.vmem [shape: f32[1,32], index: 14, kind: input, shape index: {}]   ;;  %s9504_s15 = inlined_call_operand.vmem [shape: f32[1,32], index: 15, kind: input, shape index: {}]   ;;  %s9505_s16 = inlined_call_operand.vmem [shape: f32[1,32], index: 16, kind: input, shape index: {}]   ;;  %s9506_s17 = inlined_call_operand.hbm [shape: f32[16,32], index: 17, kind: output, shape index: {}]  }
   0x1   :  { %9509 = sst [smem:[#allocation5_spill]] %s9489_s0 }
   0x2   :  { %9510 = sst [smem:[#allocation6_spill]] %s9490_s1 }
   0x3   :  { %v7896_v0 = vld [vmem:[%s9496_s7] sm:$0xff]   ;;  %v8150_v1 = vmov 0.0   ;;  %v7897_v2 = vld [vmem:[%s9496_s7 + $0x10] sm:$0xff]   ;;  %v7898_v3 = vld [vmem:[%s9496_s7 + $0x8] sm:$0xff]   ;;  %vm8151_vm0 = vmmov 0   ;;  %s9511_s1 = sld [smem:[#allocation6_spill]] }
   0x4   :  { %7440 = vmatprep.subr.bf16.mxu0 %v8150_v1  ;;  %7448 = vmatprep.subr.bf16.mxu1 %v8150_v1  ;;  %v7899_v4 = vld [vmem:[%s9496_s7 + $0x18] sm:$0xff]   ;;  %vm94_vm1 = vcmask 261120   ;;  %v7900_v7 = vld [vmem:[%s9496_s7 + $0x20] sm:$0xff]   ;;  %v7901_v8 = vld [vmem:[%s9496_s7 + $0x30] sm:$0xff]   ;;  %s9512_s22 = sld [smem:[#allocation5_spill]] }
   0x5   :  { %7441 = vmatpush3.bf16.msra.mxu0 %v7896_v0  ;;  %7444 = vmatprep.mubr.msk.bf16.mxu0 %vm8151_vm0, %v8150_v1  ;;  %v7902_v9 = vld [vmem:[%s9496_s7 + $0x28] sm:$0xff]   ;;  %v7903_v10 = vld [vmem:[%s9496_s7 + $0x38] sm:$0xff]   ;;  %v7904_v13 = vld [vmem:[%s9491_s2] sm:$0xff]  }
   0x6   :  { %7449 = vmatpush3.bf16.msra.mxu1 %v7897_v2  ;;  %7442 = vmatprep.subr.bf16.mxu0 %v8150_v1  ;;  %v7905_v14 = vld [vmem:[%s9491_s2 + $0x10] sm:$0xff]   ;;  %v7906_v15 = vld [vmem:[%s9491_s2 + $0x8] sm:$0xff]   ;;  %v7907_v17 = vld [vmem:[%s9491_s2 + $0x18] sm:$0xff]  }
   0x7   :  { %7450 = vmatprep.subr.bf16.mxu1 %v8150_v1  ;;  %7452 = vmatprep.mubr.msk.bf16.mxu1 %vm8151_vm0, %v8150_v1  ;;  %v7908_v18 = vld [vmem:[%s9491_s2 + $0x20] sm:$0xff]   ;;  %v7909_v20 = vld [vmem:[%s9491_s2 + $0x30] sm:$0xff]   ;;  %v7910_v21 = vld [vmem:[%s9491_s2 + $0x28] sm:$0xff]  }
   0x8   :  { %v7911_v22 = vld [vmem:[%s9491_s2 + $0x38] sm:$0xff]  }
   0x9   :  { %v60_v5 = vld [vmem:[%s9511_s1] sm:$0xff]  ;;  %7443 = vmatpush3.bf16.msra.mxu0 %v7898_v3  ;;  %v61_v11 = vld [vmem:[%s9511_s1 + $0x8] sm:$0xff] }
   0xa   :  { %v64_v6 = vpack.c.bf16 %v60_v5, %v60_v5  ;;  %7451 = vmatpush3.bf16.msra.mxu1 %v7899_v4  ;;  %7456 = vmatprep.subr.bf16.mxu0 %v8150_v1  ;;  %v65_v12 = vpack.c.bf16 %v61_v11, %v61_v11  ;;  %v58_v16 = vld [vmem:[%s9512_s22] sm:$0xff]  ;;  %v59_v23 = vld [vmem:[%s9512_s22 + $0x8] sm:$0xff] }
   0xb   :  { %7464 = vmatprep.subr.bf16.mxu1 %v8150_v1  ;;  %v62_v19 = vpack.c.bf16 %v58_v16, %v58_v16  ;;  %v63_v24 = vpack.c.bf16 %v59_v23, %v59_v23 }
   0xc   :  { %7445 = vmatmul.mubr.msk.bf16.vlgmr.msra.gmra.mrb[0].mxu0 %vm94_vm1, %v64_v6 }
   0xd   :  { %7453 = vmatmul.mubr.msk.bf16.vlgmr.msra.gmra.mrb[0].mxu1 %vm94_vm1, %v64_v6  ;;  %7457 = vmatpush3.bf16.msra.mxu0 %v7900_v7 }
   0xe   :  { %7465 = vmatpush3.bf16.msra.mxu1 %v7901_v8  ;;  %7458 = vmatprep.subr.bf16.mxu0 %v8150_v1 }
   0xf   :  { %7466 = vmatprep.subr.bf16.mxu1 %v8150_v1  ;;  %7460 = vmatprep.mubr.msk.bf16.mxu0 %vm8151_vm0, %v8150_v1 }
  0x10   :  { %7468 = vmatprep.mubr.msk.bf16.mxu1 %vm8151_vm0, %v8150_v1 }
  0x11   :  { %7459 = vmatpush3.bf16.msra.mxu0 %v7902_v9 }
  0x12   :  { %7467 = vmatpush3.bf16.msra.mxu1 %v7903_v10  ;;  %7472 = vmatprep.subr.bf16.mxu0 %v8150_v1 }
  0x13   :  { %7480 = vmatprep.subr.bf16.mxu1 %v8150_v1 }
  0x14   :  { %7461 = vmatmul.mubr.msk.bf16.vlgmr.msra.gmra.mrb[4].mxu0 %vm94_vm1, %v64_v6 }
  0x15   :  { %7469 = vmatmul.mubr.msk.bf16.vlgmr.msra.gmra.mrb[4].mxu1 %vm94_vm1, %v64_v6  ;;  %7473 = vmatpush3.bf16.msra.mxu0 %v7896_v0 }
  0x16   :  { %7481 = vmatpush3.bf16.msra.mxu1 %v7897_v2  ;;  %7474 = vmatprep.subr.bf16.mxu0 %v8150_v1 }
  0x17   :  { %7482 = vmatprep.subr.bf16.mxu1 %v8150_v1  ;;  %7476 = vmatprep.mubr.msk.bf16.mxu0 %vm8151_vm0, %v8150_v1 }
  0x18   :  { %7484 = vmatprep.mubr.msk.bf16.mxu1 %vm8151_vm0, %v8150_v1 }
  0x19   :  { %7475 = vmatpush3.bf16.msra.mxu0 %v7898_v3 }
  0x1a   :  { %7483 = vmatpush3.bf16.msra.mxu1 %v7899_v4  ;;  %7488 = vmatprep.subr.bf16.mxu0 %v8150_v1 }
  0x1b   :  { %7496 = vmatprep.subr.bf16.mxu1 %v8150_v1 }
  0x1c   :  { %7477 = vmatmul.mubr.msk.bf16.vlgmr.msra.gmra.mrb[8].mxu0 %vm94_vm1, %v65_v12 }
  0x1d   :  { %7485 = vmatmul.mubr.msk.bf16.vlgmr.msra.gmra.mrb[8].mxu1 %vm94_vm1, %v65_v12  ;;  %7489 = vmatpush3.bf16.msra.mxu0 %v7900_v7 }
  0x1e   :  { %7497 = vmatpush3.bf16.msra.mxu1 %v7901_v8  ;;  %7490 = vmatprep.subr.bf16.mxu0 %v8150_v1 }
  0x1f   :  { %7498 = vmatprep.subr.bf16.mxu1 %v8150_v1  ;;  %7492 = vmatprep.mubr.msk.bf16.mxu0 %vm8151_vm0, %v8150_v1 }
  0x20   :  { %7500 = vmatprep.mubr.msk.bf16.mxu1 %vm8151_vm0, %v8150_v1 }
  0x21   :  { %7491 = vmatpush3.bf16.msra.mxu0 %v7902_v9 }
  0x22   :  { %7499 = vmatpush3.bf16.msra.mxu1 %v7903_v10  ;;  %7504 = vmatprep.subr.bf16.mxu0 %v8150_v1 }
  0x23   :  { %7512 = vmatprep.subr.bf16.mxu1 %v8150_v1 }
  0x24   :  { %7493 = vmatmul.mubr.msk.bf16.vlgmr.msra.gmra.mrb[12].mxu0 %vm94_vm1, %v65_v12 }
  0x25   :  { %7501 = vmatmul.mubr.msk.bf16.vlgmr.msra.gmra.mrb[12].mxu1 %vm94_vm1, %v65_v12  ;;  %7505 = vmatpush3.bf16.msra.mxu0 %v7904_v13 }
  0x26   :  { %7513 = vmatpush3.bf16.msra.mxu1 %v7905_v14  ;;  %7506 = vmatprep.subr.bf16.mxu0 %v8150_v1 }
  0x27   :  { %7514 = vmatprep.subr.bf16.mxu1 %v8150_v1  ;;  %7508 = vmatprep.mubr.msk.bf16.mxu0 %vm8151_vm0, %v8150_v1 }
  0x28   :  { %7516 = vmatprep.mubr.msk.bf16.mxu1 %vm8151_vm0, %v8150_v1 }
  0x29   :  { %7507 = vmatpush3.bf16.msra.mxu0 %v7906_v15 }
  0x2a   :  { %7515 = vmatpush3.bf16.msra.mxu1 %v7907_v17  ;;  %7520 = vmatprep.subr.bf16.mxu0 %v8150_v1 }
  0x2b   :  { %7528 = vmatprep.subr.bf16.mxu1 %v8150_v1 }
  0x2c   :  { %7509 = vmatmul.mubr.msk.bf16.vlgmr.msra.gmra.mrb[16].mxu0 %vm94_vm1, %v62_v19 }
  0x2d   :  { %7517 = vmatmul.mubr.msk.bf16.vlgmr.msra.gmra.mrb[16].mxu1 %vm94_vm1, %v62_v19  ;;  %7521 = vmatpush3.bf16.msra.mxu0 %v7908_v18 }
  0x2e   :  { %7529 = vmatpush3.bf16.msra.mxu1 %v7909_v20  ;;  %7522 = vmatprep.subr.bf16.mxu0 %v8150_v1 }
  0x2f   :  { %7530 = vmatprep.subr.bf16.mxu1 %v8150_v1  ;;  %7524 = vmatprep.mubr.msk.bf16.mxu0 %vm8151_vm0, %v8150_v1 }
  0x30   :  { %7532 = vmatprep.mubr.msk.bf16.mxu1 %vm8151_vm0, %v8150_v1 }
  0x31   :  { %7523 = vmatpush3.bf16.msra.mxu0 %v7910_v21 }
  0x32   :  { %7531 = vmatpush3.bf16.msra.mxu1 %v7911_v22  ;;  %7536 = vmatprep.subr.bf16.mxu0 %v8150_v1 }
  0x33   :  { %7544 = vmatprep.subr.bf16.mxu1 %v8150_v1 }
  0x34   :  { %7525 = vmatmul.mubr.msk.bf16.vlgmr.msra.gmra.mrb[20].mxu0 %vm94_vm1, %v62_v19 }
  0x35   :  { %7533 = vmatmul.mubr.msk.bf16.vlgmr.msra.gmra.mrb[20].mxu1 %vm94_vm1, %v62_v19  ;;  %7537 = vmatpush3.bf16.msra.mxu0 %v7904_v13 }
  0x36   :  { %7545 = vmatpush3.bf16.msra.mxu1 %v7905_v14  ;;  %7538 = vmatprep.subr.bf16.mxu0 %v8150_v1 }
  0x37   :  { %7546 = vmatprep.subr.bf16.mxu1 %v8150_v1  ;;  %7540 = vmatprep.mubr.msk.bf16.mxu0 %vm8151_vm0, %v8150_v1 }
  0x38   :  { %7548 = vmatprep.mubr.msk.bf16.mxu1 %vm8151_vm0, %v8150_v1 }
  0x39   :  { %7539 = vmatpush3.bf16.msra.mxu0 %v7906_v15 }
  0x3a   :  { %7547 = vmatpush3.bf16.msra.mxu1 %v7907_v17  ;;  %7552 = vmatprep.subr.bf16.mxu0 %v8150_v1 }
  0x3b   :  { %7560 = vmatprep.subr.bf16.mxu1 %v8150_v1 }
  0x3c   :  { %7541 = vmatmul.mubr.msk.bf16.vlgmr.msra.gmra.mrb[24].mxu0 %vm94_vm1, %v63_v24 }
  0x3d   :  { %7549 = vmatmul.mubr.msk.bf16.vlgmr.msra.gmra.mrb[24].mxu1 %vm94_vm1, %v63_v24  ;;  %7553 = vmatpush3.bf16.msra.mxu0 %v7908_v18 }
  0x3e   :  { %7561 = vmatpush3.bf16.msra.mxu1 %v7909_v20  ;;  %7554 = vmatprep.subr.bf16.mxu0 %v8150_v1 }
  0x3f   :  { %7562 = vmatprep.subr.bf16.mxu1 %v8150_v1  ;;  %7556 = vmatprep.mubr.msk.bf16.mxu0 %vm8151_vm0, %v8150_v1 }
  0x40   :  { %7564 = vmatprep.mubr.msk.bf16.mxu1 %vm8151_vm0, %v8150_v1 }
  0x41   :  { %7555 = vmatpush3.bf16.msra.mxu0 %v7910_v21 }
  0x42   :  { %7563 = vmatpush3.bf16.msra.mxu1 %v7911_v22  ;;  %7568 = vmatprep.subr.mxu0 %v8150_v1 }
  0x43   :  { %7573 = vmatprep.subr.mxu1 %v8150_v1 }
  0x44   :  { %7557 = vmatmul.mubr.msk.bf16.vlgmr.msra.gmra.mrb[28].mxu0 %vm94_vm1, %v63_v24 }
  0x45   :  { %7565 = vmatmul.mubr.msk.bf16.vlgmr.msra.gmra.mrb[28].mxu1 %vm94_vm1, %v63_v24  ;;  %7570 = vmatprep.mubr.msk.f32.mxu0 %vm8151_vm0, %v8150_v1 }
  0x46   :  { %7575 = vmatprep.mubr.msk.f32.mxu1 %vm8151_vm0, %v8150_v1 }
  0x47   :  { %22 = vsyncpa [#allocation3], 0  ;;  %s8152_s19 = smov 120   ;;  %s8153_s1 = smov 112   ;;  %vm850_vm2 = vcmask 64512   ;;  %vm2183_vm3 = vcmask 1043456  }
  0x48   :  { %s8155_s25 = smov [#allocation2]  }
  0x49   :  { %s6798_s26 = sshll.u32 %s8155_s25, 4  ;;  %s6799_s26 = int_to_ptr.vmem [resolvable:$true] %s6798_s26 }
  0x4a   :  { %s8126_s27 = scalar_lea.vmem %s6799_s26, 256  ;;  %p8131_p1 = scmp.lt.s32.totalorder %s6799_s26, %s6799_s26 }
  0x4b   :  { %p8127_p0 = scmp.ne.s32.totalorder %s6799_s26, %s8126_s27  ;;  %p8132_p2 = scmp.lt.s32.totalorder %s8126_s27, %s8126_s27 }
  0x4d   :  { %p8133_p3 = por %p8132_p2, %p8131_p1 }
  0x4f   :  { %p8134_p4 = pnand %p8133_p3, %p8127_p0 }
  0xdf   :  { %v8394_v25 = vpop.f32.mrb[0].mxu0 }
  0xe0   :  { %v7446_v26 = vpop.f32.mrb[1].mxu0  ;;  %v8396_v27 = vpop.f32.mrb[0].mxu1 }
  0xe1   :  { %v135_v28 = vpop.f32.mrb[2].mxu0  ;;  %v7454_v29 = vpop.f32.mrb[1].mxu1 }
  0xe2   :  { %v7447_v30 = vpop.f32.mrb[3].mxu0  ;;  %v187_v31 = vpop.f32.mrb[2].mxu1 }
  0xe3   :  { %v7455_v32 = vpop.f32.mrb[3].mxu1 }
  0xe7   :  { %v8398_v33 = vpop.f32.mrb[4].mxu0 }
  0xe8   :  { %v7462_v34 = vpop.f32.mrb[5].mxu0  ;;  %v8400_v35 = vpop.f32.mrb[4].mxu1 }
  0xe9   :  { %v239_v36 = vpop.f32.mrb[6].mxu0  ;;  %v7470_v37 = vpop.f32.mrb[5].mxu1 }
  0xea   :  { %v7463_v38 = vpop.f32.mrb[7].mxu0  ;;  %v291_v39 = vpop.f32.mrb[6].mxu1 }
  0xeb   :  { %v7471_v40 = vpop.f32.mrb[7].mxu1 }
  0xef   :  { %v8402_v41 = vpop.f32.mrb[8].mxu0 }
  0xf0   :  { %v7478_v42 = vpop.f32.mrb[9].mxu0  ;;  %v8404_v43 = vpop.f32.mrb[8].mxu1 }
  0xf1   :  { %v334_v44 = vpop.f32.mrb[10].mxu0  ;;  %v7486_v45 = vpop.f32.mrb[9].mxu1 }
  0xf2   :  { %v7479_v46 = vpop.f32.mrb[11].mxu0  ;;  %v374_v47 = vpop.f32.mrb[10].mxu1 }
  0xf3   :  { %v7487_v48 = vpop.f32.mrb[11].mxu1 }
  0xf7   :  { %v8406_v49 = vpop.f32.mrb[12].mxu0 }
  0xf8   :  { %v7494_v50 = vpop.f32.mrb[13].mxu0  ;;  %v8408_v51 = vpop.f32.mrb[12].mxu1 }
  0xf9   :  { %v414_v52 = vpop.f32.mrb[14].mxu0  ;;  %v7502_v53 = vpop.f32.mrb[13].mxu1 }
  0xfa   :  { %v7495_v54 = vpop.f32.mrb[15].mxu0  ;;  %v454_v55 = vpop.f32.mrb[14].mxu1 }
  0xfb   :  { %v7503_v56 = vpop.f32.mrb[15].mxu1 }
  0xff   :  { %v522_v57 = vpop.f32.mrb[16].mxu0 }
 0x100   :  { %v574_v58 = vpop.f32.mrb[16].mxu1  ;;  %848 = vrot.lane.b32.xlu0 %v522_v57, %s8152_s19  ;;  %v7510_v59 = vpop.f32.mrb[17].mxu0 }
 0x101   :  { %v525_v60 = vpop.f32.mrb[18].mxu0  ;;  %v7518_v61 = vpop.f32.mrb[17].mxu1 }
 0x102   :  { %v7511_v62 = vpop.f32.mrb[19].mxu0  ;;  %v577_v63 = vpop.f32.mrb[18].mxu1 }
 0x103   :  { %v7519_v0 = vpop.f32.mrb[19].mxu1 }
 0x104   :  { %926 = vrot.lane.b32.xlu0 %v574_v58, %s8152_s19 }
 0x107   :  { %v626_v2 = vpop.f32.mrb[20].mxu0 }
 0x108   :  { %1003 = vrot.lane.b32.xlu1 %v626_v2, %s8152_s19  ;;  %v7526_v3 = vpop.f32.mrb[21].mxu0  ;;  %v678_v4 = vpop.f32.mrb[20].mxu1 }
 0x109   :  { %v629_v5 = vpop.f32.mrb[22].mxu0  ;;  %v7534_v6 = vpop.f32.mrb[21].mxu1 }
 0x10a   :  { %v7527_v7 = vpop.f32.mrb[23].mxu0  ;;  %v681_v8 = vpop.f32.mrb[22].mxu1 }
 0x10b   :  { %v7535_v9 = vpop.f32.mrb[23].mxu1 }
 0x10c   :  { %1080 = vrot.lane.b32.xlu1 %v678_v4, %s8152_s19 }
 0x10f   :  { %v8414_v10 = vpop.f32.mrb[24].mxu0 }
 0x110   :  { %v8416_v11 = vpop.f32.mrb[24].mxu1  ;;  %1157 = vrot.lane.b32.xlu0 %v8414_v10, %s8152_s19  ;;  %v7542_v12 = vpop.f32.mrb[25].mxu0 }
 0x111   :  { %1234 = vrot.lane.b32.xlu1 %v8416_v11, %s8152_s19  ;;  %v7550_v13 = vpop.f32.mrb[25].mxu1  ;;  %v724_v14 = vpop.f32.mrb[26].mxu0 }
 0x112   :  { %v764_v15 = vpop.f32.mrb[26].mxu1  ;;  %v7543_v16 = vpop.f32.mrb[27].mxu0 }
 0x113   :  { %v7551_v17 = vpop.f32.mrb[27].mxu1 }
 0x117   :  { %v8422_v18 = vpop.f32.mrb[28].mxu0 }
 0x118   :  { %v8424_v19 = vpop.f32.mrb[28].mxu1  ;;  %1311 = vrot.lane.b32.xlu0 %v8422_v18, %s8152_s19  ;;  %v7558_v20 = vpop.f32.mrb[29].mxu0 }
 0x119   :  { %1388 = vrot.lane.b32.xlu1 %v8424_v19, %s8152_s19  ;;  %v804_v21 = vpop.f32.mrb[30].mxu0  ;;  %v7566_v22 = vpop.f32.mrb[29].mxu1 }
 0x11a   :  { %v7559_v23 = vpop.f32.mrb[31].mxu0  ;;  %v844_v24 = vpop.f32.mrb[30].mxu1 }
 0x11b   :  { %v7567_v26 = vpop.f32.mrb[31].mxu1 }
 0x11c   :  { %1620 = vrot.lane.b32.xlu0 %v574_v58, %s8153_s1 }
 0x11d   :  { %1544 = vrot.lane.b32.xlu1 %v522_v57, %s8153_s1 }
 0x121   :  { %1696 = vrot.lane.b32.xlu1 %v626_v2, %s8153_s1 }
 0x125   :  { %1772 = vrot.lane.b32.xlu1 %v678_v4, %s8153_s1 }
 0x172   :  { %v849_v28 = vpop.permute.xlu0 %848 }
 0x173   :  { %7569 = vmatpush3.xpose.msk.msra.mxu0 %vm850_vm2, %v849_v28 }
 0x174   :  { %7578 = vmatprep.subr.mxu0 %v8150_v1 }
 0x176   :  { %7571 = vmatmul.mubr.msk.f32.vlgmr.msra.gmra.mrb[32].mxu0 %vm850_vm2, %v522_v57  ;;  %v927_v29 = vpop.permute.xlu0 %926 }
 0x177   :  { %7574 = vmatpush3.xpose.msk.msra.mxu1 %vm850_vm2, %v927_v29  ;;  %7580 = vmatprep.mubr.msk.f32.mxu0 %vm8151_vm0, %v8150_v1 }
 0x178   :  { %7583 = vmatprep.subr.mxu1 %v8150_v1 }
 0x17a   :  { %7576 = vmatmul.mubr.msk.f32.vlgmr.msra.gmra.mrb[32].mxu1 %vm850_vm2, %v574_v58  ;;  %v1004_v30 = vpop.permute.xlu1 %1003 }
 0x17b   :  { %7579 = vmatpush3.xpose.msk.msra.mxu0 %vm850_vm2, %v1004_v30  ;;  %7585 = vmatprep.mubr.msk.f32.mxu1 %vm8151_vm0, %v8150_v1 }
 0x17c   :  { %7588 = vmatprep.subr.mxu0 %v8150_v1 }
 0x17e   :  { %7581 = vmatmul.mubr.msk.f32.vlgmr.msra.gmra.mrb[34].mxu0 %vm850_vm2, %v626_v2  ;;  %v1081_v31 = vpop.permute.xlu1 %1080 }
 0x17f   :  { %7584 = vmatpush3.xpose.msk.msra.mxu1 %vm850_vm2, %v1081_v31  ;;  %7590 = vmatprep.mubr.msk.f32.mxu0 %vm8151_vm0, %v8150_v1 }
 0x180   :  { %7593 = vmatprep.subr.mxu1 %v8150_v1 }
 0x182   :  { %7586 = vmatmul.mubr.msk.f32.vlgmr.msra.gmra.mrb[34].mxu1 %vm850_vm2, %v678_v4  ;;  %v1158_v32 = vpop.permute.xlu0 %1157 }
 0x183   :  { %v1235_v34 = vpop.permute.xlu1 %1234  ;;  %7589 = vmatpush3.xpose.msk.msra.mxu0 %vm850_vm2, %v1158_v32  ;;  %7595 = vmatprep.mubr.msk.f32.mxu1 %vm8151_vm0, %v8150_v1 }
 0x184   :  { %7594 = vmatpush3.xpose.msk.msra.mxu1 %vm850_vm2, %v1235_v34  ;;  %7598 = vmatprep.subr.mxu0 %v8150_v1 }
 0x185   :  { %7603 = vmatprep.subr.mxu1 %v8150_v1 }
 0x186   :  { %7591 = vmatmul.mubr.msk.f32.vlgmr.msra.gmra.mrb[36].mxu0 %vm850_vm2, %v8414_v10 }
 0x187   :  { %7596 = vmatmul.mubr.msk.f32.vlgmr.msra.gmra.mrb[36].mxu1 %vm850_vm2, %v8416_v11  ;;  %7600 = vmatprep.mubr.msk.f32.mxu0 %vm8151_vm0, %v8150_v1 }
 0x188   :  { %7605 = vmatprep.mubr.msk.f32.mxu1 %vm8151_vm0, %v8150_v1 }
 0x18a   :  { %v1312_v36 = vpop.permute.xlu0 %1311 }
 0x18b   :  { %v1389_v37 = vpop.permute.xlu1 %1388  ;;  %7599 = vmatpush3.xpose.msk.msra.mxu0 %vm850_vm2, %v1312_v36 }
 0x18c   :  { %7604 = vmatpush3.xpose.msk.msra.mxu1 %vm850_vm2, %v1389_v37  ;;  %7608 = vmatprep.subr.mxu0 %v8150_v1 }
 0x18d   :  { %7613 = vmatprep.subr.mxu1 %v8150_v1 }
 0x18e   :  { %7601 = vmatmul.mubr.msk.f32.vlgmr.msra.gmra.mrb[38].mxu0 %vm850_vm2, %v8422_v18  ;;  %v1621_v38 = vpop.permute.xlu0 %1620 }
 0x18f   :  { %7606 = vmatmul.mubr.msk.f32.vlgmr.msra.gmra.mrb[38].mxu1 %vm850_vm2, %v8424_v19  ;;  %v1545_v39 = vpop.permute.xlu1 %1544  ;;  %7610 = vmatprep.mubr.msk.f32.mxu0 %vm8151_vm0, %v8150_v1 }
 0x190   :  { %7609 = vmatpush3.msra.mxu0 %v1545_v39  ;;  %7614 = vmatpush3.msra.mxu1 %v1621_v38 }
 0x191   :  { %7618 = vmatprep.subr.mxu0 %v8150_v1  ;;  %7615 = vmatprep.mubr.msk.f32.mxu1 %vm8151_vm0, %v8150_v1 }
 0x192   :  { %7623 = vmatprep.subr.mxu1 %v8150_v1 }
 0x193   :  { %v1697_v13 = vpop.permute.xlu1 %1696 }
 0x197   :  { %v1773_v14 = vpop.permute.xlu1 %1772 }
 0x249   :  { %v921_v40 = vpop.f32.mrb[32].mxu0 }
 0x24a   :  { %v1464_v42 = vmul.f32 0.35355338, %v921_v40  ;;  %v7572_v44 = vpop.f32.mrb[33].mxu0 }
 0x24c   :  { %v1472_v45 = vsel %vm850_vm2, %v1464_v42, -inf }
 0x24d   :  { %v998_v46 = vpop.f32.mrb[32].mxu1  ;;  %1473 = vmax.xlane.f32.xlu0 %v1472_v45 }
 0x24e   :  { %v1465_v47 = vmul.f32 0.35355338, %v998_v46  ;;  %v7577_v48 = vpop.f32.mrb[33].mxu1 }
 0x250   :  { %v1475_v50 = vsel %vm850_vm2, %v1465_v47, -inf }
 0x251   :  { %1476 = vmax.xlane.f32.xlu1 %v1475_v50  ;;  %v1075_v52 = vpop.f32.mrb[34].mxu0 }
 0x252   :  { %v1466_v53 = vmul.f32 0.35355338, %v1075_v52  ;;  %v7582_v54 = vpop.f32.mrb[35].mxu0 }
 0x254   :  { %v1478_v55 = vsel %vm850_vm2, %v1466_v53, -inf }
 0x255   :  { %v1152_v56 = vpop.f32.mrb[34].mxu1  ;;  %1479 = vmax.xlane.f32.xlu0 %v1478_v55 }
 0x256   :  { %v1467_v57 = vmul.f32 0.35355338, %v1152_v56  ;;  %v7587_v58 = vpop.f32.mrb[35].mxu1 }
 0x258   :  { %v1481_v59 = vsel %vm850_vm2, %v1467_v57, -inf }
 0x259   :  { %1482 = vmax.xlane.f32.xlu0 %v1481_v59  ;;  %v1229_v60 = vpop.f32.mrb[36].mxu0 }
 0x25a   :  { %v1306_v61 = vpop.f32.mrb[36].mxu1  ;;  %v7592_v62 = vpop.f32.mrb[37].mxu0  ;;  %v8488_v5 = vmul.f32 0.35355338, %v1229_v60 }
 0x25b   :  { %v7597_v63 = vpop.f32.mrb[37].mxu1  ;;  %v8494_v8 = vmul.f32 0.35355338, %v1306_v61 }
 0x25c   :  { %v1484_v7 = vsel %vm850_vm2, %v8488_v5, -inf }
 0x25d   :  { %v1487_v12 = vsel %vm850_vm2, %v8494_v8, -inf }
 0x261   :  { %v1383_v0 = vpop.f32.mrb[38].mxu0 }
 0x262   :  { %v1460_v2 = vpop.f32.mrb[38].mxu1  ;;  %1924 = vrot.lane.b32.xlu1 %v8416_v11, %s8153_s1  ;;  %v7602_v3 = vpop.f32.mrb[39].mxu0  ;;  %v8490_v6 = vmul.f32 0.35355338, %v1383_v0 }
 0x263   :  { %v7607_v4 = vpop.f32.mrb[39].mxu1  ;;  %v8498_v11 = vmul.f32 0.35355338, %v1460_v2 }
 0x264   :  { %v1490_v9 = vsel %vm850_vm2, %v8490_v6, -inf  ;;  %v2168_v4 = vld [vmem:[%s9492_s3] sm:$0xf] }
 0x26f   :  { %1848 = vrot.lane.b32.xlu0 %v8414_v10, %s8153_s1  ;;  %v1493_v10 = vsel %vm850_vm2, %v8498_v11, -inf }
 0x286   :  { %1485 = vmax.xlane.f32.xlu1 %v1484_v7 }
 0x28a   :  { %1491 = vmax.xlane.f32.xlu1 %v1490_v9 }
 0x28e   :  { %1488 = vmax.xlane.f32.xlu0 %v1487_v12 }
 0x292   :  { %1494 = vmax.xlane.f32.xlu0 %v1493_v10 }
 0x29b   :  { %2076 = vrot.lane.b32.xlu1 %v8424_v19, %s8153_s1 }
 0x2a8   :  { %2000 = vrot.lane.b32.xlu0 %v8422_v18, %s8153_s1 }
 0x2da   :  { %v1474_v15 = vpop.xlane.xlu0 %1473 }
 0x2db   :  { %v1496_v16 = vsub.f32 %v1464_v42, %v1474_v15 }
 0x2dd   :  { %v1504_v17 = vmul.f32 1.442695, %v1496_v16 }
 0x2de   :  { %v1477_v20 = vpop.xlane.xlu1 %1476 }
 0x2df   :  { %8048 = vpow2.f32 %v1504_v17  ;;  %v1497_v21 = vsub.f32 %v1465_v47, %v1477_v20 }
 0x2e1   :  { %v1506_v22 = vmul.f32 1.442695, %v1497_v21 }
 0x2e2   :  { %v1480_v23 = vpop.xlane.xlu0 %1479  ;;  %v1925_v39 = vpop.permute.xlu1 %1924 }
 0x2e3   :  { %8050 = vpow2.f32 %v1506_v22  ;;  %v1498_v24 = vsub.f32 %v1466_v53, %v1480_v23  ;;  %v2171_v23 = vld [vmem:[%s9492_s3 + $0xc] sm:$0xf] }
 0x2e5   :  { %v1508_v26 = vmul.f32 1.442695, %v1498_v24 }
 0x2e6   :  { %v1483_v28 = vpop.xlane.xlu0 %1482 }
 0x2e7   :  { %8052 = vpow2.f32 %v1508_v26  ;;  %v1499_v29 = vsub.f32 %v1467_v57, %v1483_v28 }
 0x2e9   :  { %v8049_v19 = vpop.eup %8048  ;;  %v1510_v30 = vmul.f32 1.442695, %v1499_v29  ;;  %v2323_v29 = vsel %vm2183_vm3, %v2171_v23, 0 }
 0x2ea   :  { %7611 = vmatmul.mubr.msk.f32.vlgmr.msra.gmra.mrb[40].mxu0 %vm850_vm2, %v8049_v19  ;;  %v1520_v18 = vsel %vm850_vm2, %v8049_v19, 0.0  ;;  %v1849_v36 = vpop.permute.xlu0 %1848 }
 0x2eb   :  { %8054 = vpow2.f32 %v1510_v30  ;;  %7619 = vmatpush3.msra.mxu0 %v1697_v13  ;;  %1521 = vadd.xlane.f32.xlu0 %v1520_v18 }
 0x2ec   :  { %7620 = vmatprep.mubr.msk.f32.mxu0 %vm8151_vm0, %v8150_v1  ;;  %7628 = vmatprep.subr.mxu0 %v8150_v1 }
 0x2ed   :  { %v8051_v31 = vpop.eup %8050 }
 0x2ee   :  { %7616 = vmatmul.mubr.msk.f32.vlgmr.msra.gmra.mrb[40].mxu1 %vm850_vm2, %v8051_v31  ;;  %v1523_v32 = vsel %vm850_vm2, %v8051_v31, 0.0 }
 0x2ef   :  { %7624 = vmatpush3.msra.mxu1 %v1773_v14  ;;  %1524 = vadd.xlane.f32.xlu1 %v1523_v32  ;;  %v2170_v14 = vld [vmem:[%s9492_s3 + $0x8] sm:$0xf] }
 0x2f0   :  { %7625 = vmatprep.mubr.msk.f32.mxu1 %vm8151_vm0, %v8150_v1  ;;  %7633 = vmatprep.subr.mxu1 %v8150_v1  ;;  %v2277_v20 = vsel %vm2183_vm3, %v2170_v14, 0 }
 0x2f1   :  { %v8053_v34 = vpop.eup %8052 }
 0x2f2   :  { %7621 = vmatmul.mubr.msk.f32.vlgmr.msra.gmra.mrb[42].mxu0 %vm850_vm2, %v8053_v34  ;;  %v1526_v37 = vsel %vm850_vm2, %v8053_v34, 0.0 }
 0x2f3   :  { %7629 = vmatpush3.msra.mxu0 %v1849_v36  ;;  %1527 = vadd.xlane.f32.xlu0 %v1526_v37 }
 0x2f4   :  { %7630 = vmatprep.mubr.msk.f32.mxu0 %vm8151_vm0, %v8150_v1  ;;  %7638 = vmatprep.subr.mxu0 %v8150_v1 }
 0x2f5   :  { %v8055_v38 = vpop.eup %8054 }
 0x2f6   :  { %7626 = vmatmul.mubr.msk.f32.vlgmr.msra.gmra.mrb[42].mxu1 %vm850_vm2, %v8055_v38  ;;  %v1529_v40 = vsel %vm850_vm2, %v8055_v38, 0.0 }
 0x2f7   :  { %7634 = vmatpush3.msra.mxu1 %v1925_v39  ;;  %1530 = vadd.xlane.f32.xlu0 %v1529_v40 }
 0x2f8   :  { %7635 = vmatprep.mubr.msk.f32.mxu1 %vm8151_vm0, %v8150_v1  ;;  %7643 = vmatprep.subr.mxu1 %v8150_v1 }
 0x313   :  { %v1486_v42 = vpop.xlane.xlu1 %1485 }
 0x314   :  { %v1500_v44 = vsub.f32 %v8488_v5, %v1486_v42  ;;  %v2185_v5 = vsel %vm2183_vm3, %v2168_v4, 0 }
 0x316   :  { %v1512_v45 = vmul.f32 1.442695, %v1500_v44 }
 0x317   :  { %v1492_v46 = vpop.xlane.xlu1 %1491 }
 0x318   :  { %8056 = vpow2.f32 %v1512_v45  ;;  %v1502_v47 = vsub.f32 %v8490_v6, %v1492_v46  ;;  %v2169_v6 = vld [vmem:[%s9492_s3 + $0x4] sm:$0xf] }
 0x319   :  { %v2231_v7 = vsel %vm2183_vm3, %v2169_v6, 0 }
 0x31a   :  { %v1516_v48 = vmul.f32 1.442695, %v1502_v47 }
 0x31b   :  { %v1489_v50 = vpop.xlane.xlu0 %1488  ;;  %v2077_v63 = vpop.permute.xlu1 %2076 }
 0x31c   :  { %8058 = vpow2.f32 %v1516_v48  ;;  %v1501_v52 = vsub.f32 %v8494_v8, %v1489_v50 }
 0x31e   :  { %v1514_v53 = vmul.f32 1.442695, %v1501_v52 }
 0x31f   :  { %v1495_v54 = vpop.xlane.xlu0 %1494 }
 0x320   :  { %8060 = vpow2.f32 %v1514_v53  ;;  %v1503_v55 = vsub.f32 %v8498_v11, %v1495_v54 }
 0x322   :  { %v8057_v56 = vpop.eup %8056  ;;  %v1518_v57 = vmul.f32 1.442695, %v1503_v55 }
 0x323   :  { %v2001_v58 = vpop.permute.xlu0 %2000  ;;  %7631 = vmatmul.mubr.msk.f32.vlgmr.msra.gmra.mrb[44].mxu0 %vm850_vm2, %v8057_v56  ;;  %v1532_v59 = vsel %vm850_vm2, %v8057_v56, 0.0 }
 0x324   :  { %8062 = vpow2.f32 %v1518_v57  ;;  %7639 = vmatpush3.msra.mxu0 %v2001_v58  ;;  %1533 = vadd.xlane.f32.xlu1 %v1532_v59 }
 0x325   :  { %7640 = vmatprep.mubr.msk.f32.mxu0 %vm8151_vm0, %v8150_v1  ;;  %7648 = vmatprep.subr.bf16.mxu0 %v8150_v1 }
 0x326   :  { %v8059_v60 = vpop.eup %8058 }
 0x327   :  { %7641 = vmatmul.mubr.msk.f32.vlgmr.msra.gmra.mrb[46].mxu0 %vm850_vm2, %v8059_v60  ;;  %v1538_v61 = vsel %vm850_vm2, %v8059_v60, 0.0 }
 0x328   :  { %1539 = vadd.xlane.f32.xlu1 %v1538_v61  ;;  %7650 = vmatprep.mubr.msk.bf16.mxu0 %vm8151_vm0, %v8150_v1 }
 0x329   :  { %7649 = vmatpush3.bf16.msra.mxu0 %v2185_v5 }
 0x32a   :  { %v8061_v62 = vpop.eup %8060  ;;  %7660 = vmatprep.subr.bf16.mxu0 %v8150_v1 }
 0x32b   :  { %7636 = vmatmul.mubr.msk.f32.vlgmr.msra.gmra.mrb[44].mxu1 %vm850_vm2, %v8061_v62  ;;  %v1535_v0 = vsel %vm850_vm2, %v8061_v62, 0.0 }
 0x32c   :  { %7644 = vmatpush3.msra.mxu1 %v2077_v63  ;;  %1536 = vadd.xlane.f32.xlu0 %v1535_v0 }
 0x32d   :  { %7645 = vmatprep.mubr.msk.f32.mxu1 %vm8151_vm0, %v8150_v1  ;;  %7654 = vmatprep.subr.bf16.mxu1 %v8150_v1 }
 0x32e   :  { %v8063_v2 = vpop.eup %8062 }
 0x32f   :  { %7646 = vmatmul.mubr.msk.f32.vlgmr.msra.gmra.mrb[46].mxu1 %vm850_vm2, %v8063_v2  ;;  %v1541_v3 = vsel %vm850_vm2, %v8063_v2, 0.0 }
 0x330   :  { %1542 = vadd.xlane.f32.xlu0 %v1541_v3  ;;  %7656 = vmatprep.mubr.msk.bf16.mxu1 %vm8151_vm0, %v8150_v1 }
 0x331   :  { %7655 = vmatpush3.bf16.msra.mxu1 %v2231_v7 }
 0x332   :  { %7666 = vmatprep.subr.bf16.mxu1 %v8150_v1 }
 0x378   :  { %v1522_v8 = vpop.xlane.xlu0 %1521 }
 0x379   :  { %8064 = vrcp.f32 %v1522_v8 }
 0x37c   :  { %v1525_v9 = vpop.xlane.xlu1 %1524 }
 0x37d   :  { %8066 = vrcp.f32 %v1525_v9 }
 0x380   :  { %v1528_v11 = vpop.xlane.xlu0 %1527 }
 0x381   :  { %8068 = vrcp.f32 %v1528_v11 }
 0x383   :  { %v8065_v10 = vpop.eup %8064 }
 0x384   :  { %v1531_v12 = vpop.xlane.xlu0 %1530 }
 0x385   :  { %8070 = vrcp.f32 %v1531_v12 }
 0x387   :  { %v8067_v21 = vpop.eup %8066 }
 0x38b   :  { %v8069_v19 = vpop.eup %8068 }
 0x38f   :  { %v8071_v34 = vpop.eup %8070 }
 0x3b1   :  { %v1534_v40 = vpop.xlane.xlu1 %1533 }
 0x3b2   :  { %8072 = vrcp.f32 %v1534_v40 }
 0x3b5   :  { %v1540_v42 = vpop.xlane.xlu1 %1539 }
 0x3b6   :  { %8074 = vrcp.f32 %v1540_v42 }
 0x3b9   :  { %v1537_v44 = vpop.xlane.xlu0 %1536 }
 0x3ba   :  { %8076 = vrcp.f32 %v1537_v44 }
 0x3bc   :  { %v8073_v45 = vpop.eup %8072 }
 0x3bd   :  { %v1616_v13 = vpop.f32.mrb[40].mxu0  ;;  %v1543_v47 = vpop.xlane.xlu0 %1542 }
 0x3be   :  { %v2160_v15 = vmul.f32 %v8065_v10, %v1616_v13  ;;  %v7612_v16 = vpop.f32.mrb[41].mxu0  ;;  %8078 = vrcp.f32 %v1543_v47 }
 0x3c0   :  { %v2172_v17 = vpack.c.bf16 %v2160_v15, %v2160_v15  ;;  %v8075_v55 = vpop.eup %8074 }
 0x3c1   :  { %v1692_v22 = vpop.f32.mrb[40].mxu1 }
 0x3c2   :  { %v2161_v24 = vmul.f32 %v8067_v21, %v1692_v22  ;;  %v7617_v26 = vpop.f32.mrb[41].mxu1  ;;  %7651 = vmatmul.mubr.msk.bf16.vlgmr.msra.gmra.mrb[48].mxu0 %vm850_vm2, %v2172_v17 }
 0x3c3   :  { %7661 = vmatpush3.bf16.msra.mxu0 %v2277_v20  ;;  %7662 = vmatprep.mubr.msk.bf16.mxu0 %vm8151_vm0, %v8150_v1 }
 0x3c4   :  { %v2173_v28 = vpack.c.bf16 %v2161_v24, %v2161_v24  ;;  %7672 = vmatprep.subr.bf16.mxu0 %v8150_v1  ;;  %v8077_v57 = vpop.eup %8076 }
 0x3c5   :  { %v1768_v30 = vpop.f32.mrb[42].mxu0 }
 0x3c6   :  { %v2162_v18 = vmul.f32 %v8069_v19, %v1768_v30  ;;  %v7622_v31 = vpop.f32.mrb[43].mxu0  ;;  %7657 = vmatmul.mubr.msk.bf16.vlgmr.msra.gmra.mrb[48].mxu1 %vm850_vm2, %v2173_v28  ;;  %v8124_v28 = vld [vmem:[%s9512_s22] sm:$0xff] }
 0x3c7   :  { %7667 = vmatpush3.bf16.msra.mxu1 %v2323_v29  ;;  %7668 = vmatprep.mubr.msk.bf16.mxu1 %vm8151_vm0, %v8150_v1 }
 0x3c8   :  { %v2174_v32 = vpack.c.bf16 %v2162_v18, %v2162_v18  ;;  %7678 = vmatprep.subr.bf16.mxu1 %v8150_v1  ;;  %v8079_v2 = vpop.eup %8078 }
 0x3c9   :  { %v1844_v36 = vpop.f32.mrb[42].mxu1 }
 0x3ca   :  { %v2163_v37 = vmul.f32 %v8071_v34, %v1844_v36  ;;  %v7627_v38 = vpop.f32.mrb[43].mxu1  ;;  %7663 = vmatmul.mubr.msk.bf16.vlgmr.msra.gmra.mrb[52].mxu0 %vm850_vm2, %v2174_v32 }
 0x3cb   :  { %7673 = vmatpush3.bf16.msra.mxu0 %v2185_v5  ;;  %7674 = vmatprep.mubr.msk.bf16.mxu0 %vm8151_vm0, %v8150_v1 }
 0x3cc   :  { %v2175_v39 = vpack.c.bf16 %v2163_v37, %v2163_v37  ;;  %7684 = vmatprep.subr.bf16.mxu0 %v8150_v1 }
 0x3ce   :  { %7669 = vmatmul.mubr.msk.bf16.vlgmr.msra.gmra.mrb[52].mxu1 %vm850_vm2, %v2175_v39 }
 0x3cf   :  { %7679 = vmatpush3.bf16.msra.mxu1 %v2231_v7  ;;  %7680 = vmatprep.mubr.msk.bf16.mxu1 %vm8151_vm0, %v8150_v1 }
 0x3d0   :  { %7690 = vmatprep.subr.bf16.mxu1 %v8150_v1 }
 0x3f6   :  { %v1920_v46 = vpop.f32.mrb[44].mxu0 }
 0x3f7   :  { %v2164_v48 = vmul.f32 %v8073_v45, %v1920_v46  ;;  %v7632_v50 = vpop.f32.mrb[45].mxu0 }
 0x3f9   :  { %v2176_v52 = vpack.c.bf16 %v2164_v48, %v2164_v48 }
 0x3fa   :  { %v2072_v53 = vpop.f32.mrb[46].mxu0 }
 0x3fb   :  { %v7642_v54 = vpop.f32.mrb[47].mxu0  ;;  %7675 = vmatmul.mubr.msk.bf16.vlgmr.msra.gmra.mrb[56].mxu0 %vm850_vm2, %v2176_v52  ;;  %v2166_v56 = vmul.f32 %v8075_v55, %v2072_v53 }
 0x3fc   :  { %7685 = vmatpush3.bf16.msra.mxu0 %v2277_v20  ;;  %7686 = vmatprep.mubr.msk.bf16.mxu0 %vm8151_vm0, %v8150_v1  ;;  %v8125_v54 = vld [vmem:[%s9512_s22 + $0x8] sm:$0xff] }
 0x3fd   :  { %7696 = vmatprep.subr.bf16.mxu0 %v8150_v1  ;;  %v2178_v61 = vpack.c.bf16 %v2166_v56, %v2166_v56 }
 0x3fe   :  { %v1996_v58 = vpop.f32.mrb[44].mxu1 }
 0x3ff   :  { %v2165_v59 = vmul.f32 %v8077_v57, %v1996_v58  ;;  %v7637_v60 = vpop.f32.mrb[45].mxu1 }
 0x401   :  { %v2177_v62 = vpack.c.bf16 %v2165_v59, %v2165_v59 }
 0x402   :  { %v2148_v63 = vpop.f32.mrb[46].mxu1 }
 0x403   :  { %v7647_v0 = vpop.f32.mrb[47].mxu1  ;;  %7681 = vmatmul.mubr.msk.bf16.vlgmr.msra.gmra.mrb[56].mxu1 %vm850_vm2, %v2177_v62  ;;  %7687 = vmatmul.mubr.msk.bf16.vlgmr.msra.gmra.mrb[60].mxu0 %vm850_vm2, %v2178_v61  ;;  %v2167_v3 = vmul.f32 %v8079_v2, %v2148_v63  ;;  %v7912_v62 = vld [vmem:[%s9495_s6] sm:$0xff]   ;;  %v7913_v63 = vld [vmem:[%s9495_s6 + $0x10] sm:$0xff]   ;;  %v7915_v2 = vld [vmem:[%s9495_s6 + $0x18] sm:$0xff]  }
 0x404   :  { %7691 = vmatpush3.bf16.msra.mxu1 %v2323_v29  ;;  %7692 = vmatprep.mubr.msk.bf16.mxu1 %vm8151_vm0, %v8150_v1  ;;  %v7914_v0 = vld [vmem:[%s9495_s6 + $0x8] sm:$0xff]  }
 0x405   :  { %7704 = vmatprep.subr.bf16.mxu1 %v8150_v1  ;;  %7700 = vmatprep.mubr.msk.bf16.mxu0 %vm8151_vm0, %v8150_v1  ;;  %v2179_v4 = vpack.c.bf16 %v2167_v3, %v2167_v3 }
 0x406   :  { %7697 = vmatpush3.bf16.msra.mxu0 %v7912_v62 }
 0x407   :  { %7698 = vmatprep.subr.bf16.mxu0 %v8150_v1 }
 0x40a   :  { %7699 = vmatpush3.bf16.msra.mxu0 %v7914_v0 }
 0x40b   :  { %7693 = vmatmul.mubr.msk.bf16.vlgmr.msra.gmra.mrb[60].mxu1 %vm850_vm2, %v2179_v4  ;;  %7712 = vmatprep.subr.bf16.mxu0 %v8150_v1 }
 0x40c   :  { %7708 = vmatprep.mubr.msk.bf16.mxu1 %vm8151_vm0, %v8150_v1  ;;  %7705 = vmatpush3.bf16.msra.mxu1 %v7913_v63 }
 0x40d   :  { %7706 = vmatprep.subr.bf16.mxu1 %v8150_v1 }
 0x410   :  { %7707 = vmatpush3.bf16.msra.mxu1 %v7915_v2 }
 0x411   :  { %7720 = vmatprep.subr.bf16.mxu1 %v8150_v1 }
 0x495   :  { %v2221_v5 = vpop.f32.mrb[48].mxu0 }
 0x496   :  { %v7652_v6 = vpop.f32.mrb[49].mxu0 }
 0x497   :  { %v2224_v7 = vpop.f32.mrb[50].mxu0 }
 0x498   :  { %v7653_v8 = vpop.f32.mrb[51].mxu0 }
 0x499   :  { %v2267_v9 = vpop.f32.mrb[48].mxu1 }
 0x49a   :  { %v2537_v11 = vadd.f32 %v2267_v9, %v2221_v5  ;;  %v7658_v12 = vpop.f32.mrb[49].mxu1 }
 0x49b   :  { %v2270_v10 = vpop.f32.mrb[50].mxu1 }
 0x49c   :  { %v7659_v13 = vpop.f32.mrb[51].mxu1  ;;  %v6873_v10 = vld [vmem:[%s9493_s4] ss:$0 sm:$0xff] }
 0x49d   :  { %v2313_v14 = vpop.f32.mrb[52].mxu0 }
 0x49e   :  { %v2539_v15 = vadd.f32 %v2537_v11, %v2313_v14  ;;  %v7664_v16 = vpop.f32.mrb[53].mxu0  ;;  %v6874_v14 = vld [vmem:[%s9494_s5] ss:$0 sm:$0xff] }
 0x49f   :  { %v2316_v17 = vpop.f32.mrb[54].mxu0 }
 0x4a0   :  { %v7665_v20 = vpop.f32.mrb[55].mxu0  ;;  %v7916_v17 = vld [vmem:[%s9495_s6 + $0x20] sm:$0xff]  }
 0x4a1   :  { %v2359_v21 = vpop.f32.mrb[52].mxu1  ;;  %v7917_v20 = vld [vmem:[%s9495_s6 + $0x30] sm:$0xff]  }
 0x4a2   :  { %v2541_v22 = vadd.f32 %v2539_v15, %v2359_v21  ;;  %v7670_v23 = vpop.f32.mrb[53].mxu1 }
 0x4a3   :  { %v2362_v24 = vpop.f32.mrb[54].mxu1  ;;  %v7919_v23 = vld [vmem:[%s9495_s6 + $0x38] sm:$0xff]  }
 0x4a4   :  { %v7671_v26 = vpop.f32.mrb[55].mxu1  ;;  %v2543_v29 = vadd.f32 %v8124_v28, %v2541_v22  ;;  %v7918_v22 = vld [vmem:[%s9495_s6 + $0x28] sm:$0xff]  }
 0x4a6   :  { %v2547_v19 = vsel %vm94_vm1, %v2543_v29, 0.0 }
 0x4a7   :  { %2548 = vadd.xlane.f32.xlu1 %v2547_v19 }
 0x4ce   :  { %v2402_v30 = vpop.f32.mrb[56].mxu0 }
 0x4cf   :  { %v7676_v18 = vpop.f32.mrb[57].mxu0 }
 0x4d0   :  { %v2405_v31 = vpop.f32.mrb[58].mxu0 }
 0x4d1   :  { %v7677_v32 = vpop.f32.mrb[59].mxu0 }
 0x4d6   :  { %v2445_v34 = vpop.f32.mrb[56].mxu1  ;;  %v2488_v36 = vpop.f32.mrb[60].mxu0 }
 0x4d7   :  { %v2538_v37 = vadd.f32 %v2445_v34, %v2402_v30  ;;  %v7682_v38 = vpop.f32.mrb[57].mxu1  ;;  %v7688_v39 = vpop.f32.mrb[61].mxu0 }
 0x4d8   :  { %v2448_v40 = vpop.f32.mrb[58].mxu1  ;;  %v2491_v42 = vpop.f32.mrb[62].mxu0 }
 0x4d9   :  { %v2540_v44 = vadd.f32 %v2538_v37, %v2488_v36  ;;  %v7683_v45 = vpop.f32.mrb[59].mxu1  ;;  %v7689_v46 = vpop.f32.mrb[63].mxu0 }
 0x4de   :  { %v2531_v47 = vpop.f32.mrb[60].mxu1 }
 0x4df   :  { %v2542_v48 = vadd.f32 %v2540_v44, %v2531_v47  ;;  %v7694_v50 = vpop.f32.mrb[61].mxu1 }
 0x4e0   :  { %v2534_v52 = vpop.f32.mrb[62].mxu1 }
 0x4e1   :  { %v7695_v53 = vpop.f32.mrb[63].mxu1  ;;  %v2544_v55 = vadd.f32 %v8125_v54, %v2542_v48 }
 0x4e3   :  { %v2550_v56 = vsel %vm94_vm1, %v2544_v55, 0.0 }
 0x4e4   :  { %2551 = vadd.xlane.f32.xlu0 %v2550_v56 }
 0x534   :  { %v2549_v57 = vpop.xlane.xlu1 %2548 }
 0x535   :  { %v2554_v58 = vmul.f32 0.03125, %v2549_v57 }
 0x537   :  { %v2556_v59 = vsub.f32 %v2543_v29, %v2554_v58 }
 0x539   :  { %v2558_v60 = vmul.f32 %v2556_v59, %v2556_v59 }
 0x53b   :  { %v2560_v61 = vsel %vm94_vm1, %v2558_v60, 0.0 }
 0x53c   :  { %2561 = vadd.xlane.f32.xlu1 %v2560_v61 }
 0x54d   :  { %3670 = vrot.lane.b32.xlu1 %v8394_v25, %s8152_s19 }
 0x551   :  { %3822 = vrot.lane.b32.xlu1 %v8398_v33, %s8152_s19 }
 0x555   :  { %3898 = vrot.lane.b32.xlu1 %v8400_v35, %s8152_s19 }
 0x571   :  { %v2552_v3 = vpop.xlane.xlu0 %2551 }
 0x572   :  { %v2555_v4 = vmul.f32 0.03125, %v2552_v3 }
 0x574   :  { %v2557_v5 = vsub.f32 %v2544_v55, %v2555_v4 }
 0x576   :  { %v2559_v6 = vmul.f32 %v2557_v5, %v2557_v5 }
 0x578   :  { %v2563_v7 = vsel %vm94_vm1, %v2559_v6, 0.0 }
 0x579   :  { %2564 = vadd.xlane.f32.xlu0 %v2563_v7 }
 0x58f   :  { %3746 = vrot.lane.b32.xlu0 %v8396_v27, %s8152_s19 }
 0x5c9   :  { %v2562_v8 = vpop.xlane.xlu1 %2561 }
 0x5ca   :  { %v2566_v9 = vmul.f32 0.03125, %v2562_v8 }
 0x5cc   :  { %v2568_v11 = vadd.f32 1e-06, %v2566_v9 }
 0x5cd   :  { %v3671_v58 = vpop.permute.xlu1 %3670 }
 0x5ce   :  { %8080 = vrsqrt.f32 %v2568_v11 }
 0x5d8   :  { %v8081_v12 = vpop.eup %8080 }
 0x5d9   :  { %v2572_v13 = vmul.f32 %v8081_v12, %v2556_v59 }
 0x5db   :  { %v2580_v15 = vmul.f32 %v6873_v10, %v2572_v13 }
 0x5dd   :  { %v8638_v16 = vadd.f32 %v6874_v14, %v2580_v15 }
 0x5df   :  { %v2590_v21 = vpack.c.bf16 %v8638_v16, %v8638_v16 }
 0x5e1   :  { %7701 = vmatmul.mubr.msk.bf16.vlgmr.msra.gmra.mrb[64].mxu0 %vm94_vm1, %v2590_v21  ;;  %7709 = vmatmul.mubr.msk.bf16.vlgmr.msra.gmra.mrb[64].mxu1 %vm94_vm1, %v2590_v21 }
 0x5e2   :  { %7713 = vmatpush3.bf16.msra.mxu0 %v7916_v17  ;;  %7721 = vmatpush3.bf16.msra.mxu1 %v7917_v20 }
 0x5e3   :  { %7714 = vmatprep.subr.bf16.mxu0 %v8150_v1  ;;  %7722 = vmatprep.subr.bf16.mxu1 %v8150_v1 }
 0x5e4   :  { %7716 = vmatprep.mubr.msk.bf16.mxu0 %vm8151_vm0, %v8150_v1  ;;  %7724 = vmatprep.mubr.msk.bf16.mxu1 %vm8151_vm0, %v8150_v1 }
 0x5e6   :  { %7715 = vmatpush3.bf16.msra.mxu0 %v7918_v22  ;;  %7723 = vmatpush3.bf16.msra.mxu1 %v7919_v23 }
 0x5e7   :  { %7728 = vmatprep.subr.bf16.mxu0 %v8150_v1  ;;  %7736 = vmatprep.subr.bf16.mxu1 %v8150_v1 }
 0x5e9   :  { %7717 = vmatmul.mubr.msk.bf16.vlgmr.msra.gmra.mrb[68].mxu0 %vm94_vm1, %v2590_v21  ;;  %7725 = vmatmul.mubr.msk.bf16.vlgmr.msra.gmra.mrb[68].mxu1 %vm94_vm1, %v2590_v21 }
 0x5ea   :  { %7729 = vmatpush3.bf16.msra.mxu0 %v7912_v62  ;;  %7737 = vmatpush3.bf16.msra.mxu1 %v7913_v63 }
 0x5eb   :  { %7730 = vmatprep.subr.bf16.mxu0 %v8150_v1  ;;  %7738 = vmatprep.subr.bf16.mxu1 %v8150_v1 }
 0x5ec   :  { %7732 = vmatprep.mubr.msk.bf16.mxu0 %vm8151_vm0, %v8150_v1  ;;  %7740 = vmatprep.mubr.msk.bf16.mxu1 %vm8151_vm0, %v8150_v1 }
 0x5ee   :  { %7731 = vmatpush3.bf16.msra.mxu0 %v7914_v0  ;;  %7739 = vmatpush3.bf16.msra.mxu1 %v7915_v2 }
 0x5ef   :  { %7744 = vmatprep.subr.bf16.mxu0 %v8150_v1  ;;  %7752 = vmatprep.subr.bf16.mxu1 %v8150_v1 }
 0x606   :  { %v2565_v24 = vpop.xlane.xlu0 %2564 }
 0x607   :  { %v2567_v26 = vmul.f32 0.03125, %v2565_v24 }
 0x609   :  { %v2569_v28 = vadd.f32 1e-06, %v2567_v26 }
 0x60a   :  { %v3747_v59 = vpop.permute.xlu0 %3746 }
 0x60b   :  { %8082 = vrsqrt.f32 %v2569_v28 }
 0x615   :  { %v8083_v29 = vpop.eup %8082 }
 0x616   :  { %v2573_v19 = vmul.f32 %v8083_v29, %v2557_v5 }
 0x618   :  { %v2581_v30 = vmul.f32 %v6873_v10, %v2573_v19 }
 0x61a   :  { %v8674_v18 = vadd.f32 %v6874_v14, %v2581_v30 }
 0x61c   :  { %v2591_v31 = vpack.c.bf16 %v8674_v18, %v8674_v18 }
 0x61e   :  { %7733 = vmatmul.mubr.msk.bf16.vlgmr.msra.gmra.mrb[72].mxu0 %vm94_vm1, %v2591_v31  ;;  %7741 = vmatmul.mubr.msk.bf16.vlgmr.msra.gmra.mrb[72].mxu1 %vm94_vm1, %v2591_v31 }
 0x61f   :  { %7745 = vmatpush3.bf16.msra.mxu0 %v7916_v17  ;;  %7753 = vmatpush3.bf16.msra.mxu1 %v7917_v20 }
 0x620   :  { %7746 = vmatprep.subr.bf16.mxu0 %v8150_v1  ;;  %7754 = vmatprep.subr.bf16.mxu1 %v8150_v1 }
 0x621   :  { %7748 = vmatprep.mubr.msk.bf16.mxu0 %vm8151_vm0, %v8150_v1  ;;  %7756 = vmatprep.mubr.msk.bf16.mxu1 %vm8151_vm0, %v8150_v1 }
 0x623   :  { %7747 = vmatpush3.bf16.msra.mxu0 %v7918_v22  ;;  %7755 = vmatpush3.bf16.msra.mxu1 %v7919_v23 }
 0x624   :  { %7760 = vmatprep.subr.mxu0 %v8150_v1  ;;  %7765 = vmatprep.subr.mxu1 %v8150_v1 }
 0x626   :  { %7749 = vmatmul.mubr.msk.bf16.vlgmr.msra.gmra.mrb[76].mxu0 %vm94_vm1, %v2591_v31  ;;  %7757 = vmatmul.mubr.msk.bf16.vlgmr.msra.gmra.mrb[76].mxu1 %vm94_vm1, %v2591_v31 }
 0x627   :  { %7762 = vmatprep.mubr.msk.f32.mxu0 %vm8151_vm0, %v8150_v1  ;;  %7767 = vmatprep.mubr.msk.f32.mxu1 %vm8151_vm0, %v8150_v1 }
 0x62c   :  { %7761 = vmatpush3.xpose.msk.msra.mxu0 %vm850_vm2, %v8394_v25  ;;  %7766 = vmatpush3.xpose.msk.msra.mxu1 %vm850_vm2, %v8396_v27 }
 0x62d   :  { %7770 = vmatprep.subr.mxu0 %v8150_v1  ;;  %7775 = vmatprep.subr.mxu1 %v8150_v1 }
 0x6b4   :  { %v2657_v32 = vpop.f32.mrb[64].mxu0  ;;  %v2709_v34 = vpop.f32.mrb[64].mxu1 }
 0x6b5   :  { %v7702_v36 = vpop.f32.mrb[65].mxu0  ;;  %v7710_v37 = vpop.f32.mrb[65].mxu1  ;;  %7763 = vmatmul.mubr.msk.f32.vlgmr.msra.gmra.mrb[80].mxu0 %vm850_vm2, %v2657_v32  ;;  %7768 = vmatmul.mubr.msk.f32.vlgmr.msra.gmra.mrb[80].mxu1 %vm850_vm2, %v2709_v34 }
 0x6b6   :  { %7771 = vmatpush3.xpose.msk.msra.mxu0 %vm850_vm2, %v8398_v33  ;;  %7776 = vmatpush3.xpose.msk.msra.mxu1 %vm850_vm2, %v8400_v35  ;;  %v2660_v25 = vpop.f32.mrb[66].mxu0  ;;  %v2712_v27 = vpop.f32.mrb[66].mxu1 }
 0x6b7   :  { %v7703_v38 = vpop.f32.mrb[67].mxu0  ;;  %v7711_v39 = vpop.f32.mrb[67].mxu1  ;;  %7772 = vmatprep.mubr.msk.f32.mxu0 %vm8151_vm0, %v8150_v1  ;;  %7777 = vmatprep.mubr.msk.f32.mxu1 %vm8151_vm0, %v8150_v1 }
 0x6b8   :  { %7780 = vmatprep.subr.mxu0 %v8150_v1  ;;  %7785 = vmatprep.subr.mxu1 %v8150_v1  ;;  %v3823_v39 = vpop.permute.xlu1 %3822 }
 0x6bc   :  { %v2761_v40 = vpop.f32.mrb[68].mxu0  ;;  %v2813_v42 = vpop.f32.mrb[68].mxu1 }
 0x6bd   :  { %v7718_v33 = vpop.f32.mrb[69].mxu0  ;;  %v7726_v44 = vpop.f32.mrb[69].mxu1  ;;  %7773 = vmatmul.mubr.msk.f32.vlgmr.msra.gmra.mrb[82].mxu0 %vm850_vm2, %v2761_v40  ;;  %7778 = vmatmul.mubr.msk.f32.vlgmr.msra.gmra.mrb[82].mxu1 %vm850_vm2, %v2813_v42 }
 0x6be   :  { %7781 = vmatpush3.xpose.msk.msra.mxu0 %vm850_vm2, %v8402_v41  ;;  %7786 = vmatpush3.xpose.msk.msra.mxu1 %vm850_vm2, %v8404_v43  ;;  %v2764_v35 = vpop.f32.mrb[70].mxu0  ;;  %v2816_v45 = vpop.f32.mrb[70].mxu1 }
 0x6bf   :  { %v7719_v46 = vpop.f32.mrb[71].mxu0  ;;  %v7727_v47 = vpop.f32.mrb[71].mxu1  ;;  %7782 = vmatprep.mubr.msk.f32.mxu0 %vm8151_vm0, %v8150_v1  ;;  %7787 = vmatprep.mubr.msk.f32.mxu1 %vm8151_vm0, %v8150_v1 }
 0x6c0   :  { %7790 = vmatprep.subr.mxu0 %v8150_v1  ;;  %7795 = vmatprep.subr.mxu1 %v8150_v1  ;;  %v3899_v40 = vpop.permute.xlu1 %3898 }
 0x6f1   :  { %v2856_v48 = vpop.f32.mrb[72].mxu0  ;;  %v2896_v50 = vpop.f32.mrb[72].mxu1 }
 0x6f2   :  { %v7734_v52 = vpop.f32.mrb[73].mxu0  ;;  %v7742_v53 = vpop.f32.mrb[73].mxu1  ;;  %7783 = vmatmul.mubr.msk.f32.vlgmr.msra.gmra.mrb[84].mxu0 %vm850_vm2, %v2856_v48  ;;  %7788 = vmatmul.mubr.msk.f32.vlgmr.msra.gmra.mrb[84].mxu1 %vm850_vm2, %v2896_v50 }
 0x6f3   :  { %7791 = vmatpush3.xpose.msk.msra.mxu0 %vm850_vm2, %v8406_v49  ;;  %7796 = vmatpush3.xpose.msk.msra.mxu1 %vm850_vm2, %v8408_v51  ;;  %v2859_v54 = vpop.f32.mrb[74].mxu0  ;;  %v2899_v55 = vpop.f32.mrb[74].mxu1 }
 0x6f4   :  { %v7735_v56 = vpop.f32.mrb[75].mxu0  ;;  %v7743_v57 = vpop.f32.mrb[75].mxu1  ;;  %7792 = vmatprep.mubr.msk.f32.mxu0 %vm8151_vm0, %v8150_v1  ;;  %7797 = vmatprep.mubr.msk.f32.mxu1 %vm8151_vm0, %v8150_v1 }
 0x6f5   :  { %7800 = vmatprep.subr.mxu0 %v8150_v1  ;;  %7805 = vmatprep.subr.mxu1 %v8150_v1 }
 0x6f9   :  { %v2936_v60 = vpop.f32.mrb[76].mxu0  ;;  %v2976_v61 = vpop.f32.mrb[76].mxu1 }
 0x6fa   :  { %v7750_v62 = vpop.f32.mrb[77].mxu0  ;;  %v7758_v63 = vpop.f32.mrb[77].mxu1  ;;  %7793 = vmatmul.mubr.msk.f32.vlgmr.msra.gmra.mrb[86].mxu0 %vm850_vm2, %v2936_v60  ;;  %7798 = vmatmul.mubr.msk.f32.vlgmr.msra.gmra.mrb[86].mxu1 %vm850_vm2, %v2976_v61 }
 0x6fb   :  { %7801 = vmatpush3.msra.mxu0 %v3671_v58  ;;  %7806 = vmatpush3.msra.mxu1 %v3747_v59  ;;  %v2939_v0 = vpop.f32.mrb[78].mxu0  ;;  %v2979_v2 = vpop.f32.mrb[78].mxu1 }
 0x6fc   :  { %v7751_v3 = vpop.f32.mrb[79].mxu0  ;;  %v7759_v4 = vpop.f32.mrb[79].mxu1  ;;  %7802 = vmatprep.mubr.msk.f32.mxu0 %vm8151_vm0, %v8150_v1  ;;  %7807 = vmatprep.mubr.msk.f32.mxu1 %vm8151_vm0, %v8150_v1 }
 0x6fd   :  { %7810 = vmatprep.subr.mxu0 %v8150_v1  ;;  %7815 = vmatprep.subr.mxu1 %v8150_v1 }
 0x788   :  { %v3054_v5 = vpop.f32.mrb[80].mxu0  ;;  %v3130_v6 = vpop.f32.mrb[80].mxu1 }
 0x789   :  { %v3590_v7 = vmul.f32 0.35355338, %v3054_v5  ;;  %v3591_v8 = vmul.f32 0.35355338, %v3130_v6  ;;  %v7764_v9 = vpop.f32.mrb[81].mxu0  ;;  %v7769_v11 = vpop.f32.mrb[81].mxu1 }
 0x78b   :  { %v3601_v12 = vsel %vm850_vm2, %v3591_v8, -inf  ;;  %v3598_v10 = vsel %vm850_vm2, %v3590_v7, -inf }
 0x78c   :  { %3602 = vmax.xlane.f32.xlu0 %v3601_v12  ;;  %3599 = vmax.xlane.f32.xlu1 %v3598_v10 }
 0x790   :  { %v3206_v13 = vpop.f32.mrb[82].mxu0  ;;  %v3282_v14 = vpop.f32.mrb[82].mxu1 }
 0x791   :  { %v3592_v15 = vmul.f32 0.35355338, %v3206_v13  ;;  %v3593_v17 = vmul.f32 0.35355338, %v3282_v14  ;;  %v7774_v20 = vpop.f32.mrb[83].mxu0  ;;  %v7779_v21 = vpop.f32.mrb[83].mxu1 }
 0x793   :  { %v3607_v22 = vsel %vm850_vm2, %v3593_v17, -inf  ;;  %v3604_v23 = vsel %vm850_vm2, %v3592_v15, -inf }
 0x794   :  { %3608 = vmax.xlane.f32.xlu0 %v3607_v22  ;;  %3605 = vmax.xlane.f32.xlu1 %v3604_v23 }
 0x7a5   :  { %4050 = vrot.lane.b32.xlu1 %v8404_v43, %s8152_s19 }
 0x7aa   :  { %3974 = vrot.lane.b32.xlu0 %v8402_v41, %s8152_s19 }
 0x7c5   :  { %v3358_v24 = vpop.f32.mrb[84].mxu0  ;;  %v3434_v26 = vpop.f32.mrb[84].mxu1 }
 0x7c6   :  { %v8752_v28 = vmul.f32 0.35355338, %v3358_v24  ;;  %v8754_v29 = vmul.f32 0.35355338, %v3434_v26  ;;  %v7784_v19 = vpop.f32.mrb[85].mxu0  ;;  %v7789_v30 = vpop.f32.mrb[85].mxu1 }
 0x7c7   :  { %v4294_v26 = vld [vmem:[%s9497_s8] sm:$0xf] }
 0x7c8   :  { %v3613_v31 = vsel %vm850_vm2, %v8754_v29, -inf  ;;  %v3610_v32 = vsel %vm850_vm2, %v8752_v28, -inf }
 0x7c9   :  { %3614 = vmax.xlane.f32.xlu0 %v3613_v31  ;;  %3611 = vmax.xlane.f32.xlu1 %v3610_v32 }
 0x7cd   :  { %v3510_v43 = vpop.f32.mrb[86].mxu0  ;;  %v3586_v34 = vpop.f32.mrb[86].mxu1 }
 0x7ce   :  { %v8760_v36 = vmul.f32 0.35355338, %v3510_v43  ;;  %v8762_v41 = vmul.f32 0.35355338, %v3586_v34  ;;  %v7794_v37 = vpop.f32.mrb[87].mxu0  ;;  %v7799_v25 = vpop.f32.mrb[87].mxu1 }
 0x7d0   :  { %v3619_v27 = vsel %vm850_vm2, %v8762_v41, -inf  ;;  %v3616_v38 = vsel %vm850_vm2, %v8760_v36, -inf }
 0x7d1   :  { %3620 = vmax.xlane.f32.xlu0 %v3619_v27  ;;  %3617 = vmax.xlane.f32.xlu1 %v3616_v38  ;;  %v4296_v38 = vld [vmem:[%s9497_s8 + $0x8] sm:$0xf] }
 0x7e2   :  { %4202 = vrot.lane.b32.xlu1 %v8408_v51, %s8152_s19 }
 0x7e7   :  { %4126 = vrot.lane.b32.xlu0 %v8406_v49, %s8152_s19 }
 0x819   :  { %v3603_v42 = vpop.xlane.xlu0 %3602  ;;  %v3600_v33 = vpop.xlane.xlu1 %3599 }
 0x81a   :  { %v3623_v44 = vsub.f32 %v3591_v8, %v3603_v42  ;;  %v3622_v35 = vsub.f32 %v3590_v7, %v3600_v33 }
 0x81c   :  { %v3632_v45 = vmul.f32 1.442695, %v3623_v44  ;;  %v3630_v46 = vmul.f32 1.442695, %v3622_v35 }
 0x81e   :  { %8084 = vpow2.f32 %v3632_v45  ;;  %v4402_v45 = vsel %vm2183_vm3, %v4296_v38, 0 }
 0x81f   :  { %8086 = vpow2.f32 %v3630_v46 }
 0x821   :  { %v3609_v47 = vpop.xlane.xlu0 %3608  ;;  %v3606_v48 = vpop.xlane.xlu1 %3605 }
 0x822   :  { %v3625_v50 = vsub.f32 %v3593_v17, %v3609_v47  ;;  %v3624_v52 = vsub.f32 %v3592_v15, %v3606_v48 }
 0x824   :  { %v3636_v53 = vmul.f32 1.442695, %v3625_v50  ;;  %v3634_v54 = vmul.f32 1.442695, %v3624_v52 }
 0x825   :  { %v4051_v59 = vpop.permute.xlu1 %4050  ;;  %v3975_v60 = vpop.permute.xlu0 %3974 }
 0x826   :  { %8088 = vpow2.f32 %v3636_v53 }
 0x827   :  { %8090 = vpow2.f32 %v3634_v54 }
 0x828   :  { %v8085_v51 = vpop.eup %8084 }
 0x829   :  { %v8087_v49 = vpop.eup %8086  ;;  %7808 = vmatmul.mubr.msk.f32.vlgmr.msra.gmra.mrb[88].mxu1 %vm850_vm2, %v8085_v51  ;;  %v3649_v55 = vsel %vm850_vm2, %v8085_v51, 0.0 }
 0x82a   :  { %7803 = vmatmul.mubr.msk.f32.vlgmr.msra.gmra.mrb[88].mxu0 %vm850_vm2, %v8087_v49  ;;  %7816 = vmatpush3.msra.mxu1 %v3899_v40  ;;  %v3646_v56 = vsel %vm850_vm2, %v8087_v49, 0.0 }
 0x82b   :  { %7811 = vmatpush3.msra.mxu0 %v3823_v39  ;;  %3647 = vadd.xlane.f32.xlu0 %v3646_v56 }
 0x82c   :  { %3650 = vadd.xlane.f32.xlu1 %v3649_v55  ;;  %7812 = vmatprep.mubr.msk.f32.mxu0 %vm8151_vm0, %v8150_v1 }
 0x82d   :  { %7817 = vmatprep.mubr.msk.f32.mxu1 %vm8151_vm0, %v8150_v1  ;;  %7820 = vmatprep.subr.mxu0 %v8150_v1 }
 0x82e   :  { %7825 = vmatprep.subr.mxu1 %v8150_v1 }
 0x830   :  { %v8089_v57 = vpop.eup %8088 }
 0x831   :  { %v8091_v58 = vpop.eup %8090  ;;  %7818 = vmatmul.mubr.msk.f32.vlgmr.msra.gmra.mrb[90].mxu1 %vm850_vm2, %v8089_v57  ;;  %v3655_v62 = vsel %vm850_vm2, %v8089_v57, 0.0 }
 0x832   :  { %7813 = vmatmul.mubr.msk.f32.vlgmr.msra.gmra.mrb[90].mxu0 %vm850_vm2, %v8091_v58  ;;  %7826 = vmatpush3.msra.mxu1 %v4051_v59  ;;  %v3652_v61 = vsel %vm850_vm2, %v8091_v58, 0.0 }
 0x833   :  { %7821 = vmatpush3.msra.mxu0 %v3975_v60  ;;  %3653 = vadd.xlane.f32.xlu0 %v3652_v61 }
 0x834   :  { %7822 = vmatprep.mubr.msk.f32.mxu0 %vm8151_vm0, %v8150_v1  ;;  %7827 = vmatprep.mubr.msk.f32.mxu1 %vm8151_vm0, %v8150_v1 }
 0x835   :  { %7830 = vmatprep.subr.mxu0 %v8150_v1  ;;  %7835 = vmatprep.subr.mxu1 %v8150_v1 }
 0x837   :  { %3656 = vadd.xlane.f32.xlu0 %v3655_v62 }
 0x856   :  { %v3615_v63 = vpop.xlane.xlu0 %3614  ;;  %v3612_v0 = vpop.xlane.xlu1 %3611 }
 0x857   :  { %v3627_v2 = vsub.f32 %v8754_v29, %v3615_v63  ;;  %v3626_v3 = vsub.f32 %v8752_v28, %v3612_v0  ;;  %v4295_v28 = vld [vmem:[%s9497_s8 + $0x4] sm:$0xf]  ;;  %v4310_v29 = vsel %vm2183_vm3, %v4294_v26, 0 }
 0x858   :  { %v4356_v19 = vsel %vm2183_vm3, %v4295_v28, 0 }
 0x859   :  { %v3640_v4 = vmul.f32 1.442695, %v3627_v2  ;;  %v3638_v5 = vmul.f32 1.442695, %v3626_v3 }
 0x85b   :  { %8092 = vpow2.f32 %v3640_v4 }
 0x85c   :  { %8094 = vpow2.f32 %v3638_v5 }
 0x85e   :  { %v3621_v6 = vpop.xlane.xlu0 %3620  ;;  %v3618_v7 = vpop.xlane.xlu1 %3617 }
 0x85f   :  { %v3629_v8 = vsub.f32 %v8762_v41, %v3621_v6  ;;  %v3628_v9 = vsub.f32 %v8760_v36, %v3618_v7  ;;  %v4297_v41 = vld [vmem:[%s9497_s8 + $0xc] sm:$0xf] }
 0x860   :  { %v4448_v44 = vsel %vm2183_vm3, %v4297_v41, 0 }
 0x861   :  { %v3644_v11 = vmul.f32 1.442695, %v3629_v8  ;;  %v3642_v12 = vmul.f32 1.442695, %v3628_v9 }
 0x862   :  { %v4203_v14 = vpop.permute.xlu1 %4202  ;;  %v4127_v17 = vpop.permute.xlu0 %4126 }
 0x863   :  { %8096 = vpow2.f32 %v3644_v11 }
 0x864   :  { %8098 = vpow2.f32 %v3642_v12 }
 0x865   :  { %v8093_v10 = vpop.eup %8092 }
 0x866   :  { %v8095_v13 = vpop.eup %8094  ;;  %7828 = vmatmul.mubr.msk.f32.vlgmr.msra.gmra.mrb[92].mxu1 %vm850_vm2, %v8093_v10  ;;  %v3661_v15 = vsel %vm850_vm2, %v8093_v10, 0.0 }
 0x867   :  { %7823 = vmatmul.mubr.msk.f32.vlgmr.msra.gmra.mrb[92].mxu0 %vm850_vm2, %v8095_v13  ;;  %7836 = vmatpush3.msra.mxu1 %v4203_v14  ;;  %v3658_v20 = vsel %vm850_vm2, %v8095_v13, 0.0 }
 0x868   :  { %7831 = vmatpush3.msra.mxu0 %v4127_v17  ;;  %3662 = vadd.xlane.f32.xlu0 %v3661_v15 }
 0x869   :  { %3659 = vadd.xlane.f32.xlu1 %v3658_v20  ;;  %7832 = vmatprep.mubr.msk.f32.mxu0 %vm8151_vm0, %v8150_v1 }
 0x86a   :  { %7837 = vmatprep.mubr.msk.f32.mxu1 %vm8151_vm0, %v8150_v1  ;;  %7840 = vmatprep.subr.bf16.mxu0 %v8150_v1 }
 0x86b   :  { %7846 = vmatprep.subr.bf16.mxu1 %v8150_v1 }
 0x86d   :  { %v8097_v21 = vpop.eup %8096 }
 0x86e   :  { %v8099_v22 = vpop.eup %8098  ;;  %7838 = vmatmul.mubr.msk.f32.vlgmr.msra.gmra.mrb[94].mxu1 %vm850_vm2, %v8097_v21  ;;  %v3667_v23 = vsel %vm850_vm2, %v8097_v21, 0.0 }
 0x86f   :  { %7833 = vmatmul.mubr.msk.f32.vlgmr.msra.gmra.mrb[94].mxu0 %vm850_vm2, %v8099_v22  ;;  %3668 = vadd.xlane.f32.xlu0 %v3667_v23  ;;  %v3664_v24 = vsel %vm850_vm2, %v8099_v22, 0.0 }
 0x870   :  { %3665 = vadd.xlane.f32.xlu1 %v3664_v24  ;;  %7842 = vmatprep.mubr.msk.bf16.mxu0 %vm8151_vm0, %v8150_v1 }
 0x871   :  { %7848 = vmatprep.mubr.msk.bf16.mxu1 %vm8151_vm0, %v8150_v1  ;;  %7841 = vmatpush3.bf16.msra.mxu0 %v4310_v29 }
 0x872   :  { %7847 = vmatpush3.bf16.msra.mxu1 %v4356_v19  ;;  %7852 = vmatprep.subr.bf16.mxu0 %v8150_v1 }
 0x873   :  { %7858 = vmatprep.subr.bf16.mxu1 %v8150_v1 }
 0x8b8   :  { %v3648_v30 = vpop.xlane.xlu0 %3647 }
 0x8b9   :  { %v3651_v31 = vpop.xlane.xlu1 %3650 }
 0x8ba   :  { %8100 = vrcp.f32 %v3651_v31 }
 0x8bb   :  { %8102 = vrcp.f32 %v3648_v30 }
 0x8c0   :  { %v3654_v32 = vpop.xlane.xlu0 %3653 }
 0x8c4   :  { %v3657_v43 = vpop.xlane.xlu0 %3656  ;;  %v8101_v34 = vpop.eup %8100 }
 0x8c5   :  { %8104 = vrcp.f32 %v3657_v43  ;;  %v8103_v37 = vpop.eup %8102 }
 0x8c6   :  { %8106 = vrcp.f32 %v3654_v32 }
 0x8cf   :  { %v8105_v46 = vpop.eup %8104 }
 0x8d0   :  { %v8107_v48 = vpop.eup %8106 }
 0x8f5   :  { %v3663_v56 = vpop.xlane.xlu0 %3662 }
 0x8f6   :  { %v3660_v57 = vpop.xlane.xlu1 %3659  ;;  %8108 = vrcp.f32 %v3663_v56 }
 0x8f7   :  { %8110 = vrcp.f32 %v3660_v57 }
 0x8fc   :  { %v3818_v36 = vpop.f32.mrb[88].mxu1  ;;  %v3669_v58 = vpop.xlane.xlu0 %3668 }
 0x8fd   :  { %v4287_v25 = vmul.f32 %v8101_v34, %v3818_v36  ;;  %v3742_v27 = vpop.f32.mrb[88].mxu0  ;;  %v7809_v42 = vpop.f32.mrb[89].mxu1  ;;  %8112 = vrcp.f32 %v3669_v58 }
 0x8fe   :  { %v4286_v39 = vmul.f32 %v8103_v37, %v3742_v27  ;;  %v7804_v40 = vpop.f32.mrb[89].mxu0  ;;  %v3666_v59 = vpop.xlane.xlu1 %3665 }
 0x8ff   :  { %v4299_v33 = vpack.c.bf16 %v4287_v25, %v4287_v25  ;;  %8114 = vrcp.f32 %v3666_v59 }
 0x900   :  { %v4298_v35 = vpack.c.bf16 %v4286_v39, %v4286_v39  ;;  %v8109_v60 = vpop.eup %8108 }
 0x901   :  { %7849 = vmatmul.mubr.msk.bf16.vlgmr.msra.gmra.mrb[96].mxu1 %vm850_vm2, %v4299_v33  ;;  %v8111_v62 = vpop.eup %8110 }
 0x902   :  { %7843 = vmatmul.mubr.msk.bf16.vlgmr.msra.gmra.mrb[96].mxu0 %vm850_vm2, %v4298_v35  ;;  %7859 = vmatpush3.bf16.msra.mxu1 %v4448_v44 }
 0x903   :  { %7853 = vmatpush3.bf16.msra.mxu0 %v4402_v45  ;;  %7854 = vmatprep.mubr.msk.bf16.mxu0 %vm8151_vm0, %v8150_v1 }
 0x904   :  { %v3970_v47 = vpop.f32.mrb[90].mxu1  ;;  %7860 = vmatprep.mubr.msk.bf16.mxu1 %vm8151_vm0, %v8150_v1  ;;  %7864 = vmatprep.subr.bf16.mxu0 %v8150_v1 }
 0x905   :  { %v3894_v50 = vpop.f32.mrb[90].mxu0  ;;  %v4289_v52 = vmul.f32 %v8105_v46, %v3970_v47  ;;  %v7819_v53 = vpop.f32.mrb[91].mxu1  ;;  %7870 = vmatprep.subr.bf16.mxu1 %v8150_v1 }
 0x906   :  { %v4288_v54 = vmul.f32 %v8107_v48, %v3894_v50  ;;  %v7814_v51 = vpop.f32.mrb[91].mxu0 }
 0x907   :  { %v4301_v49 = vpack.c.bf16 %v4289_v52, %v4289_v52  ;;  %v8113_v7 = vpop.eup %8112 }
 0x908   :  { %v4300_v55 = vpack.c.bf16 %v4288_v54, %v4288_v54 }
 0x909   :  { %7861 = vmatmul.mubr.msk.bf16.vlgmr.msra.gmra.mrb[100].mxu1 %vm850_vm2, %v4301_v49  ;;  %v8115_v9 = vpop.eup %8114 }
 0x90a   :  { %7855 = vmatmul.mubr.msk.bf16.vlgmr.msra.gmra.mrb[100].mxu0 %vm850_vm2, %v4300_v55  ;;  %7871 = vmatpush3.bf16.msra.mxu1 %v4356_v19 }
 0x90b   :  { %7865 = vmatpush3.bf16.msra.mxu0 %v4310_v29  ;;  %7866 = vmatprep.mubr.msk.bf16.mxu0 %vm8151_vm0, %v8150_v1 }
 0x90c   :  { %7872 = vmatprep.mubr.msk.bf16.mxu1 %vm8151_vm0, %v8150_v1  ;;  %7876 = vmatprep.subr.bf16.mxu0 %v8150_v1 }
 0x90d   :  { %7882 = vmatprep.subr.bf16.mxu1 %v8150_v1 }
 0x939   :  { %v4122_v61 = vpop.f32.mrb[92].mxu1 }
 0x93a   :  { %v4046_v63 = vpop.f32.mrb[92].mxu0  ;;  %v4291_v0 = vmul.f32 %v8109_v60, %v4122_v61  ;;  %v7829_v2 = vpop.f32.mrb[93].mxu1 }
 0x93b   :  { %v4290_v3 = vmul.f32 %v8111_v62, %v4046_v63  ;;  %v7824_v4 = vpop.f32.mrb[93].mxu0 }
 0x93c   :  { %v4303_v5 = vpack.c.bf16 %v4291_v0, %v4291_v0 }
 0x93d   :  { %v4302_v6 = vpack.c.bf16 %v4290_v3, %v4290_v3 }
 0x93e   :  { %7873 = vmatmul.mubr.msk.bf16.vlgmr.msra.gmra.mrb[104].mxu1 %vm850_vm2, %v4303_v5 }
 0x93f   :  { %7867 = vmatmul.mubr.msk.bf16.vlgmr.msra.gmra.mrb[104].mxu0 %vm850_vm2, %v4302_v6  ;;  %7883 = vmatpush3.bf16.msra.mxu1 %v4448_v44  ;;  %v4723_v6 = vld [vmem:[%s9500_s11 + $0x40] sm:$0xff] }
 0x940   :  { %7877 = vmatpush3.bf16.msra.mxu0 %v4402_v45  ;;  %7878 = vmatprep.mubr.msk.bf16.mxu0 %vm8151_vm0, %v8150_v1 }
 0x941   :  { %v4274_v8 = vpop.f32.mrb[94].mxu1  ;;  %7884 = vmatprep.mubr.msk.bf16.mxu1 %vm8151_vm0, %v8150_v1 }
 0x942   :  { %v4198_v11 = vpop.f32.mrb[94].mxu0  ;;  %v4293_v12 = vmul.f32 %v8113_v7, %v4274_v8  ;;  %v7839_v10 = vpop.f32.mrb[95].mxu1  ;;  %v4716_v7 = vld [vmem:[%s9500_s11 + $0x8] sm:$0xff] }
 0x943   :  { %v4292_v13 = vmul.f32 %v8115_v9, %v4198_v11  ;;  %v7834_v14 = vpop.f32.mrb[95].mxu0  ;;  %v4724_v9 = vld [vmem:[%s9500_s11 + $0x48] sm:$0xff] }
 0x944   :  { %v4305_v15 = vpack.c.bf16 %v4293_v12, %v4293_v12  ;;  %v6927_v12 = vcombine.low %v4716_v7, %v4724_v9  ;;  %v6928_v10 = vcombine.high %v4716_v7, %v4724_v9  ;;  %v4739_v14 = vld [vmem:[%s9500_s11 + $0xc0] sm:$0xff]  ;;  %v4722_v7 = vld [vmem:[%s9500_s11 + $0x38] sm:$0xff] }
 0x945   :  { %v4304_v17 = vpack.c.bf16 %v4292_v13, %v4292_v13  ;;  %v4731_v13 = vld [vmem:[%s9500_s11 + $0x80] sm:$0xff] }
 0x946   :  { %7885 = vmatmul.mubr.msk.bf16.vlgmr.msra.gmra.mrb[108].mxu1 %vm850_vm2, %v4305_v15  ;;  %5037 = vmatprep.subr.bf16.mxu1 %v6928_v10  ;;  %v4732_v15 = vld [vmem:[%s9500_s11 + $0x88] sm:$0xff] }
 0x947   :  { %7879 = vmatmul.mubr.msk.bf16.vlgmr.msra.gmra.mrb[108].mxu0 %vm850_vm2, %v4304_v17  ;;  %5038 = vmatpush1.bf16.msra.mxu1 %v6927_v12  ;;  %v6942_v17 = vcombine.high %v4731_v13, %v4739_v14 }
 0x9d4   :  { %v4392_v20 = vpop.f32.mrb[96].mxu1 }
 0x9d5   :  { %v4346_v21 = vpop.f32.mrb[96].mxu0  ;;  %v7850_v22 = vpop.f32.mrb[97].mxu1 }
 0x9d6   :  { %v4662_v23 = vadd.f32 %v4392_v20, %v4346_v21  ;;  %v7844_v24 = vpop.f32.mrb[97].mxu0  ;;  %v4395_v26 = vpop.f32.mrb[98].mxu1  ;;  %v4740_v20 = vld [vmem:[%s9500_s11 + $0xc8] sm:$0xff]  ;;  %v6941_v21 = vcombine.low %v4731_v13, %v4739_v14  ;;  %v4737_v13 = vld [vmem:[%s9500_s11 + $0xb0] sm:$0xff] }
 0x9d7   :  { %v4349_v28 = vpop.f32.mrb[98].mxu0  ;;  %v7851_v1 = vpop.f32.mrb[99].mxu1  ;;  %v6943_v22 = vcombine.low %v4732_v15, %v4740_v20  ;;  %v4717_v24 = vld [vmem:[%s9500_s11 + $0x10] sm:$0xff] }
 0x9d8   :  { %v7845_v29 = vpop.f32.mrb[99].mxu0  ;;  %v4725_v26 = vld [vmem:[%s9500_s11 + $0x50] sm:$0xff]  ;;  %v4718_v28 = vld [vmem:[%s9500_s11 + $0x18] sm:$0xff]  ;;  %v8154_v1 = vmov 0  }
 0x9d9   :  { %5026 = vmatprep.mubr.bf16.mxu0 %v8154_v1  ;;  %v6930_v29 = vcombine.high %v4717_v24, %v4725_v26  ;;  %5069 = vmatprep.mubr.bf16.mxu1 %v8154_v1  ;;  %v4745_v14 = vld [vmem:[%s9500_s11 + $0xf0] sm:$0xff] }
 0x9dc   :  { %v4484_v19 = vpop.f32.mrb[100].mxu1 }
 0x9dd   :  { %v4438_v30 = vpop.f32.mrb[100].mxu0  ;;  %v7862_v31 = vpop.f32.mrb[101].mxu1 }
 0x9de   :  { %v4664_v32 = vadd.f32 %v4662_v23, %v4438_v30  ;;  %v7856_v43 = vpop.f32.mrb[101].mxu0  ;;  %v4487_v34 = vpop.f32.mrb[102].mxu1  ;;  %v6944_v23 = vcombine.high %v4732_v15, %v4740_v20  ;;  %v6929_v30 = vcombine.low %v4717_v24, %v4725_v26  ;;  %v4738_v15 = vld [vmem:[%s9500_s11 + $0xb8] sm:$0xff]  ;;  %v6953_v24 = vcombine.low %v4737_v13, %v4745_v14 }
 0x9df   :  { %v4441_v36 = vpop.f32.mrb[102].mxu0  ;;  %v7863_v41 = vpop.f32.mrb[103].mxu1 }
 0x9e0   :  { %v4666_v37 = vadd.f32 %v4664_v32, %v4484_v19  ;;  %v7857_v25 = vpop.f32.mrb[103].mxu0  ;;  %5039 = vmatprep.subr.bf16.mxu1 %v6944_v23  ;;  %v4726_v19 = vld [vmem:[%s9500_s11 + $0x58] sm:$0xff] }
 0x9e1   :  { %5040 = vmatpush1.bf16.msra.mxu1 %v6943_v22  ;;  %v6931_v31 = vcombine.low %v4718_v28, %v4726_v19  ;;  %v6932_v32 = vcombine.high %v4718_v28, %v4726_v19  ;;  %v6954_v22 = vcombine.high %v4737_v13, %v4745_v14  ;;  %v7920_v28 = vld [vmem:[%s9502_s13 + $0x40] sm:$0xff]  }
 0x9e2   :  { %v4668_v27 = vadd.f32 %v4666_v37, %v8638_v16  ;;  %v7922_v19 = vld [vmem:[%s9502_s13] sm:$0xff]  }
 0x9e3   :  { %5123 = vmatprep.subr.bf16.mxu1 %v6932_v32  ;;  %v7926_v32 = vld [vmem:[%s9502_s13 + $0x8] sm:$0xff]  }
 0x9e4   :  { %v4672_v38 = vsel %vm94_vm1, %v4668_v27, 0.0 }
 0x9e5   :  { %4673 = vadd.xlane.f32.xlu1 %v4672_v38 }
 0xa11   :  { %v4570_v39 = vpop.f32.mrb[104].mxu1 }
 0xa12   :  { %v4527_v40 = vpop.f32.mrb[104].mxu0  ;;  %v7874_v42 = vpop.f32.mrb[105].mxu1 }
 0xa13   :  { %v4663_v33 = vadd.f32 %v4570_v39, %v4527_v40  ;;  %v7868_v44 = vpop.f32.mrb[105].mxu0  ;;  %v4573_v35 = vpop.f32.mrb[106].mxu1  ;;  %v6923_v39 = vld [vmem:[%s9498_s9] ss:$0 sm:$0xff] }
 0xa14   :  { %v4530_v45 = vpop.f32.mrb[106].mxu0  ;;  %v7875_v46 = vpop.f32.mrb[107].mxu1  ;;  %v6924_v44 = vld [vmem:[%s9499_s10] ss:$0 sm:$0xff] }
 0xa15   :  { %v7869_v47 = vpop.f32.mrb[107].mxu0  ;;  %v4733_v45 = vld [vmem:[%s9500_s11 + $0x90] sm:$0xff] }
 0xa16   :  { %v4741_v46 = vld [vmem:[%s9500_s11 + $0xd0] sm:$0xff]  ;;  %v4734_v47 = vld [vmem:[%s9500_s11 + $0x98] sm:$0xff] }
 0xa19   :  { %v4656_v48 = vpop.f32.mrb[108].mxu1 }
 0xa1a   :  { %v4613_v50 = vpop.f32.mrb[108].mxu0  ;;  %v7886_v52 = vpop.f32.mrb[109].mxu1 }
 0xa1b   :  { %v4665_v53 = vadd.f32 %v4663_v33, %v4613_v50  ;;  %v7880_v54 = vpop.f32.mrb[109].mxu0  ;;  %v4659_v51 = vpop.f32.mrb[110].mxu1 }
 0xa1c   :  { %v4616_v49 = vpop.f32.mrb[110].mxu0  ;;  %v7887_v16 = vpop.f32.mrb[111].mxu1  ;;  %v6946_v54 = vcombine.high %v4733_v45, %v4741_v46 }
 0xa1d   :  { %v4667_v55 = vadd.f32 %v4665_v53, %v4656_v48  ;;  %v7881_v56 = vpop.f32.mrb[111].mxu0  ;;  %v4742_v48 = vld [vmem:[%s9500_s11 + $0xd8] sm:$0xff]  ;;  %v4719_v49 = vld [vmem:[%s9500_s11 + $0x20] sm:$0xff] }
 0xa1e   :  { %v6948_v51 = vcombine.high %v4734_v47, %v4742_v48  ;;  %v4727_v16 = vld [vmem:[%s9500_s11 + $0x60] sm:$0xff]  ;;  %v4728_v56 = vld [vmem:[%s9500_s11 + $0x68] sm:$0xff] }
 0xa1f   :  { %v4669_v57 = vadd.f32 %v4667_v55, %v8674_v18  ;;  %v4715_v18 = vld [vmem:[%s9500_s11] sm:$0xff]  ;;  %v4720_v55 = vld [vmem:[%s9500_s11 + $0x28] sm:$0xff] }
 0xa20   :  { %v6926_v8 = vcombine.high %v4715_v18, %v4723_v6  ;;  %v6925_v11 = vcombine.low %v4715_v18, %v4723_v6  ;;  %v4721_v18 = vld [vmem:[%s9500_s11 + $0x30] sm:$0xff] }
 0xa21   :  { %v4675_v58 = vsel %vm94_vm1, %v4669_v57, 0.0  ;;  %v4729_v6 = vld [vmem:[%s9500_s11 + $0x70] sm:$0xff] }
 0xa22   :  { %4676 = vadd.xlane.f32.xlu0 %v4675_v58  ;;  %4994 = vmatprep.subr.bf16.mxu0 %v6926_v8  ;;  %v6947_v58 = vcombine.low %v4734_v47, %v4742_v48  ;;  %v4730_v8 = vld [vmem:[%s9500_s11 + $0x78] sm:$0xff]  ;;  %v6938_v12 = vcombine.high %v4721_v18, %v4729_v6  ;;  %v6937_v20 = vcombine.low %v4721_v18, %v4729_v6  ;;  %v7943_v47 = vld [vmem:[%s9502_s13 + $0xa8] sm:$0xff]   ;;  %v7944_v48 = vld [vmem:[%s9502_s13 + $0x70] sm:$0xff]  }
 0xa23   :  { %4995 = vmatpush1.bf16.msra.mxu0 %v6925_v11  ;;  %v6940_v10 = vcombine.high %v4722_v7, %v4730_v8 }
 0xa24   :  { %4996 = vmatprep.subr.bf16.mxu0 %v6942_v17  ;;  %v4746_v17 = vld [vmem:[%s9500_s11 + $0xf8] sm:$0xff] }
 0xa25   :  { %v6956_v23 = vcombine.high %v4738_v15, %v4746_v17  ;;  %v6955_v26 = vcombine.low %v4738_v15, %v4746_v17 }
 0xa27   :  { %4997 = vmatpush1.bf16.msra.mxu0 %v6941_v21  ;;  %v6939_v21 = vcombine.low %v4722_v7, %v4730_v8 }
 0xa28   :  { %5080 = vmatprep.subr.bf16.mxu0 %v6930_v29  ;;  %v7921_v29 = vld [vmem:[%s9502_s13 + $0xc0] sm:$0xff]  }
 0xa72   :  { %v4674_v59 = vpop.xlane.xlu1 %4673 }
 0xa73   :  { %v4678_v60 = vmul.f32 0.03125, %v4674_v59  ;;  %v6934_v59 = vcombine.high %v4719_v49, %v4727_v16 }
 0xa75   :  { %v4680_v61 = vsub.f32 %v4668_v27, %v4678_v60  ;;  %v6936_v60 = vcombine.high %v4720_v55, %v4728_v56 }
 0xa77   :  { %v4682_v62 = vmul.f32 %v4680_v61, %v4680_v61 }
 0xa79   :  { %v4684_v63 = vsel %vm94_vm1, %v4682_v62, 0.0  ;;  %v4743_v62 = vld [vmem:[%s9500_s11 + $0xe0] sm:$0xff] }
 0xa7a   :  { %4685 = vadd.xlane.f32.xlu1 %v4684_v63  ;;  %v4736_v63 = vld [vmem:[%s9500_s11 + $0xa8] sm:$0xff] }
 0xaaf   :  { %v4677_v0 = vpop.xlane.xlu0 %4676 }
 0xab0   :  { %v4679_v2 = vmul.f32 0.03125, %v4677_v0  ;;  %v4744_v0 = vld [vmem:[%s9500_s11 + $0xe8] sm:$0xff] }
 0xab1   :  { %v6951_v11 = vcombine.low %v4736_v63, %v4744_v0 }
 0xab2   :  { %v4681_v3 = vsub.f32 %v4669_v57, %v4679_v2  ;;  %v6945_v57 = vcombine.low %v4733_v45, %v4741_v46  ;;  %v6933_v2 = vcombine.low %v4719_v49, %v4727_v16  ;;  %v7941_v45 = vld [vmem:[%s9502_s13 + $0xe8] sm:$0xff]   ;;  %v7948_v49 = vld [vmem:[%s9502_s13 + $0x78] sm:$0xff]  }
 0xab3   :  { %v7942_v46 = vld [vmem:[%s9502_s13 + $0x28] sm:$0xff]   ;;  %v7949_v16 = vld [vmem:[%s9502_s13 + $0xf8] sm:$0xff]  }
 0xab4   :  { %v4683_v4 = vmul.f32 %v4681_v3, %v4681_v3 }
 0xab6   :  { %v4687_v5 = vsel %vm94_vm1, %v4683_v4, 0.0 }
 0xab7   :  { %4688 = vadd.xlane.f32.xlu0 %v4687_v5  ;;  %v6952_v5 = vcombine.high %v4736_v63, %v4744_v0 }
 0xb07   :  { %v4686_v43 = vpop.xlane.xlu1 %4685 }
 0xb08   :  { %v4690_v34 = vmul.f32 0.03125, %v4686_v43  ;;  %v7927_v43 = vld [vmem:[%s9502_s13 + $0x88] sm:$0xff]  }
 0xb0a   :  { %v4692_v36 = vadd.f32 1e-06, %v4690_v34  ;;  %v7928_v34 = vld [vmem:[%s9502_s13 + $0x50] sm:$0xff]  }
 0xb0c   :  { %8116 = vrsqrt.f32 %v4692_v36  ;;  %v7929_v36 = vld [vmem:[%s9502_s13 + $0xd0] sm:$0xff]  }
 0xb16   :  { %v8117_v27 = vpop.eup %8116 }
 0xb17   :  { %v4696_v38 = vmul.f32 %v8117_v27, %v4680_v61  ;;  %v4735_v61 = vld [vmem:[%s9500_s11 + $0xa0] sm:$0xff]  ;;  %v7933_v27 = vld [vmem:[%s9502_s13 + $0xd8] sm:$0xff]  }
 0xb18   :  { %v6950_v4 = vcombine.high %v4735_v61, %v4743_v62  ;;  %v6949_v9 = vcombine.low %v4735_v61, %v4743_v62  ;;  %v9104_v62 = vld [vmem:[%s9501_s12 + $0x8] sm:$0xff] }
 0xb19   :  { %v4704_v42 = vmul.f32 %v6923_v39, %v4696_v38  ;;  %v7934_v38 = vld [vmem:[%s9502_s13 + $0x18] sm:$0xff]  }
 0xb1b   :  { %v8918_v50 = vadd.f32 %v6924_v44, %v4704_v42  ;;  %v7937_v42 = vld [vmem:[%s9502_s13 + $0xe0] sm:$0xff]  }
 0xb44   :  { %v4689_v41 = vpop.xlane.xlu0 %4688 }
 0xb45   :  { %v4691_v37 = vmul.f32 0.03125, %v4689_v41  ;;  %v7930_v41 = vld [vmem:[%s9502_s13 + $0x10] sm:$0xff]  }
 0xb47   :  { %v4693_v25 = vadd.f32 1e-06, %v4691_v37  ;;  %v7931_v37 = vld [vmem:[%s9502_s13 + $0x90] sm:$0xff]  }
 0xb49   :  { %8118 = vrsqrt.f32 %v4693_v25  ;;  %v7932_v25 = vld [vmem:[%s9502_s13 + $0x58] sm:$0xff]  }
 0xb53   :  { %v8119_v40 = vpop.eup %8118 }
 0xb54   :  { %v4697_v33 = vmul.f32 %v8119_v40, %v4681_v3  ;;  %v6935_v3 = vcombine.low %v4720_v55, %v4728_v56  ;;  %v7936_v40 = vld [vmem:[%s9502_s13 + $0x60] sm:$0xff]   ;;  %v7950_v55 = vld [vmem:[%s9502_s13 + $0x38] sm:$0xff]  }
 0xb55   :  { %v7951_v56 = vld [vmem:[%s9502_s13 + $0xb8] sm:$0xff]  }
 0xb56   :  { %v4705_v35 = vmul.f32 %v6923_v39, %v4697_v33  ;;  %v7935_v39 = vld [vmem:[%s9502_s13 + $0x98] sm:$0xff]   ;;  %v7938_v33 = vld [vmem:[%s9502_s13 + $0x20] sm:$0xff]  }
 0xb58   :  { %v8920_v52 = vadd.f32 %v6924_v44, %v4705_v35  ;;  %v7939_v44 = vld [vmem:[%s9502_s13 + $0xa0] sm:$0xff]   ;;  %v7940_v35 = vld [vmem:[%s9502_s13 + $0x68] sm:$0xff]  }
 0xb5a   :  { %v8924_v53 = vpack.c.bf16 %v8920_v52, %v8918_v50 }
 0xb5c   :  { %6957 = vmatmul.mubr.msk.bf16.vlgmr.msra.gmra.mrb[112].mxu0 %vm94_vm1, %v8924_v53  ;;  %6958 = vmatmul.mubr.msk.bf16.vlgmr.msra.gmra.mrb[112].mxu1 %vm94_vm1, %v8924_v53 }
 0xb5d   :  { %5081 = vmatpush1.bf16.msra.mxu0 %v6929_v30  ;;  %5124 = vmatpush1.bf16.msra.mxu1 %v6931_v31  ;;  %v7923_v30 = vld [vmem:[%s9502_s13 + $0x80] sm:$0xff]   ;;  %v7924_v31 = vld [vmem:[%s9502_s13 + $0x48] sm:$0xff]  }
 0xb5e   :  { %5082 = vmatprep.subr.bf16.mxu0 %v6946_v54  ;;  %5125 = vmatprep.subr.bf16.mxu1 %v6948_v51  ;;  %v7946_v54 = vld [vmem:[%s9502_s13 + $0x30] sm:$0xff]  }
 0xb5f   :  { %5112 = vmatprep.mubr.bf16.mxu0 %v8154_v1  ;;  %5155 = vmatprep.mubr.bf16.mxu1 %v8154_v1  ;;  %v7947_v51 = vld [vmem:[%s9502_s13 + $0xb0] sm:$0xff]  }
 0xb61   :  { %5083 = vmatpush1.bf16.msra.mxu0 %v6945_v57  ;;  %5126 = vmatpush1.bf16.msra.mxu1 %v6947_v58  ;;  %v7952_v57 = vld [vmem:[%s9502_s13 + $0x140] sm:$0xff]  }
 0xb62   :  { %5166 = vmatprep.subr.bf16.mxu0 %v6934_v59  ;;  %5209 = vmatprep.subr.bf16.mxu1 %v6936_v60  ;;  %v7953_v58 = vld [vmem:[%s9502_s13 + $0x1c0] sm:$0xff]   ;;  %v4751_v59 = vlaneseq }
 0xb64   :  { %6959 = vmatmul.mubr.msk.bf16.vlgmr.msra.gmra.mrb[116].mxu0 %vm94_vm1, %v8924_v53  ;;  %6960 = vmatmul.mubr.msk.bf16.vlgmr.msra.gmra.mrb[116].mxu1 %vm94_vm1, %v8924_v53  ;;  %v9098_v60 = vshrl.u32 %v4751_v59, 7 }
 0xb65   :  { %5167 = vmatpush1.bf16.msra.mxu0 %v6933_v2  ;;  %5210 = vmatpush1.bf16.msra.mxu1 %v6935_v3  ;;  %v4747_v3 = vld [vmem:[%s9501_s12] sm:$0xff] }
 0xb66   :  { %5168 = vmatprep.subr.bf16.mxu0 %v6950_v4  ;;  %5211 = vmatprep.subr.bf16.mxu1 %v6952_v5  ;;  %v4777_v61 = vsub.s32 6, %v9098_v60  ;;  %v4753_v0 = vsub.s32 0, %v9098_v60  ;;  %v4761_v2 = vsub.s32 2, %v9098_v60  ;;  %v4757_v4 = vsub.s32 1, %v9098_v60 }
 0xb67   :  { %5198 = vmatprep.mubr.bf16.mxu0 %v8154_v1  ;;  %5241 = vmatprep.mubr.bf16.mxu1 %v8154_v1  ;;  %v4765_v5 = vsub.s32 3, %v9098_v60  ;;  %v4781_v13 = vsub.s32 7, %v9098_v60 }
 0xb68   :  { %v9107_v63 = vrot.slane %v9104_v62, %v4777_v61  ;;  %v4754_v18 = vrot.slane %v4747_v3, %v4753_v0  ;;  %v4762_v6 = vrot.slane %v4747_v3, %v4761_v2  ;;  %v4758_v7 = vrot.slane %v4747_v3, %v4757_v4 }
 0xb69   :  { %5169 = vmatpush1.bf16.msra.mxu0 %v6949_v9  ;;  %5212 = vmatpush1.bf16.msra.mxu1 %v6951_v11  ;;  %v4766_v8 = vrot.slane %v4747_v3, %v4765_v5  ;;  %v4769_v9 = vsub.s32 4, %v9098_v60 }
 0xb6a   :  { %5252 = vmatprep.subr.bf16.mxu0 %v6938_v12  ;;  %5295 = vmatprep.subr.bf16.mxu1 %v6940_v10  ;;  %v4773_v10 = vsub.s32 5, %v9098_v60 }
 0xb6c   :  { %6961 = vmatmul.mubr.msk.bf16.vlgmr.msra.gmra.mrb[120].mxu0 %vm94_vm1, %v8924_v53  ;;  %6962 = vmatmul.mubr.msk.bf16.vlgmr.msra.gmra.mrb[120].mxu1 %vm94_vm1, %v8924_v53 }
 0xb6d   :  { %5253 = vmatpush1.bf16.msra.mxu0 %v6937_v20  ;;  %5296 = vmatpush1.bf16.msra.mxu1 %v6939_v21 }
 0xb6e   :  { %5254 = vmatprep.subr.bf16.mxu0 %v6954_v22  ;;  %5297 = vmatprep.subr.bf16.mxu1 %v6956_v23 }
 0xb6f   :  { %5284 = vmatprep.mubr.bf16.mxu0 %v8154_v1  ;;  %5327 = vmatprep.mubr.bf16.mxu1 %v8154_v1  ;;  %v7925_v1 = vld [vmem:[%s9502_s13 + $0xc8] sm:$0xff]  }
 0xb71   :  { %5255 = vmatpush1.bf16.msra.mxu0 %v6953_v24  ;;  %5298 = vmatpush1.bf16.msra.mxu1 %v6955_v26 }
 0xb72   :  { %7264 = vmatprep.subr.bf16.mxu0 %v7920_v28  ;;  %7286 = vmatprep.subr.bf16.mxu1 %v7921_v29 }
 0xb74   :  { %6963 = vmatmul.mubr.msk.bf16.vlgmr.msra.gmra.mrb[124].mxu0 %vm94_vm1, %v8924_v53  ;;  %6964 = vmatmul.mubr.msk.bf16.vlgmr.msra.gmra.mrb[124].mxu1 %vm94_vm1, %v8924_v53  ;;  %v7945_v53 = vld [vmem:[%s9502_s13 + $0xf0] sm:$0xff]  }
 0xb75   :  { %7265 = vmatpush3.bf16.msra.mxu0 %v7922_v19  ;;  %7287 = vmatpush3.bf16.msra.mxu1 %v7923_v30  ;;  %v4770_v30 = vrot.slane %v4747_v3, %v4769_v9 }
 0xb76   :  { %7266 = vmatprep.subr.bf16.mxu0 %v7924_v31  ;;  %7288 = vmatprep.subr.bf16.mxu1 %v7925_v1  ;;  %v4778_v31 = vrot.slane %v4747_v3, %v4777_v61 }
 0xb79   :  { %7267 = vmatpush3.bf16.msra.mxu0 %v7926_v32  ;;  %7289 = vmatpush3.bf16.msra.mxu1 %v7927_v43  ;;  %v4774_v43 = vrot.slane %v4747_v3, %v4773_v10 }
 0xb7a   :  { %7268 = vmatprep.subr.bf16.mxu0 %v7928_v34  ;;  %7290 = vmatprep.subr.bf16.mxu1 %v7929_v36  ;;  %v4782_v34 = vrot.slane %v4747_v3, %v4781_v13  ;;  %v4794_v3 = vrot.slane %v9104_v62, %v4761_v2  ;;  %v7959_v2 = vld [vmem:[%s9502_s13 + $0x188] sm:$0xff]  }
 0xb7d   :  { %7269 = vmatpush3.bf16.msra.mxu0 %v7930_v41  ;;  %7291 = vmatpush3.bf16.msra.mxu1 %v7931_v37 }
 0xb7e   :  { %7270 = vmatprep.subr.bf16.mxu0 %v7932_v25  ;;  %7292 = vmatprep.subr.bf16.mxu1 %v7933_v27 }
 0xb81   :  { %7271 = vmatpush3.bf16.msra.mxu0 %v7934_v38  ;;  %7293 = vmatpush3.bf16.msra.mxu1 %v7935_v39 }
 0xb82   :  { %7272 = vmatprep.subr.bf16.mxu0 %v7936_v40  ;;  %7294 = vmatprep.subr.bf16.mxu1 %v7937_v42 }
 0xb85   :  { %7273 = vmatpush3.bf16.msra.mxu0 %v7938_v33  ;;  %7295 = vmatpush3.bf16.msra.mxu1 %v7939_v44 }
 0xb86   :  { %7274 = vmatprep.subr.bf16.mxu0 %v7940_v35  ;;  %7296 = vmatprep.subr.bf16.mxu1 %v7941_v45 }
 0xb89   :  { %7275 = vmatpush3.bf16.msra.mxu0 %v7942_v46  ;;  %7297 = vmatpush3.bf16.msra.mxu1 %v7943_v47  ;;  %v7954_v47 = vld [vmem:[%s9502_s13 + $0x100] sm:$0xff]  }
 0xb8a   :  { %7276 = vmatprep.subr.bf16.mxu0 %v7944_v48  ;;  %7298 = vmatprep.subr.bf16.mxu1 %v7945_v53  ;;  %v7955_v48 = vld [vmem:[%s9502_s13 + $0x180] sm:$0xff]  }
 0xb8d   :  { %7277 = vmatpush3.bf16.msra.mxu0 %v7946_v54  ;;  %7299 = vmatpush3.bf16.msra.mxu1 %v7947_v51 }
 0xb8e   :  { %7278 = vmatprep.subr.bf16.mxu0 %v7948_v49  ;;  %7300 = vmatprep.subr.bf16.mxu1 %v7949_v16  ;;  %v7956_v16 = vld [vmem:[%s9502_s13 + $0x148] sm:$0xff]  }
 0xb91   :  { %7279 = vmatpush3.bf16.msra.mxu0 %v7950_v55  ;;  %7301 = vmatpush3.bf16.msra.mxu1 %v7951_v56  ;;  %v7957_v55 = vld [vmem:[%s9502_s13 + $0x1c8] sm:$0xff]   ;;  %v4786_v56 = vrot.slane %v9104_v62, %v4753_v0 }
 0xb92   :  { %7308 = vmatprep.subr.bf16.mxu0 %v7952_v57  ;;  %7330 = vmatprep.subr.bf16.mxu1 %v7953_v58 }
 0xc2f   :  { %v5028_v11 = vpop.f32.mrb[112].mxu0  ;;  %v5071_v12 = vpop.f32.mrb[112].mxu1 }
 0xc30   :  { %v5029_v14 = vadd.f32 %v5028_v11, %v4754_v18  ;;  %v5072_v15 = vadd.f32 %v5071_v12, %v4762_v6  ;;  %v5030_v17 = vpop.f32.mrb[113].mxu0  ;;  %v5073_v20 = vpop.f32.mrb[113].mxu1  ;;  %v4790_v11 = vrot.slane %v9104_v62, %v4757_v4 }
 0xc31   :  { %v5031_v21 = vadd.f32 %v5030_v17, %v4758_v7  ;;  %v5074_v22 = vadd.f32 %v5073_v20, %v4766_v8  ;;  %v5032_v23 = vpop.f32.mrb[114].mxu0  ;;  %v5075_v24 = vpop.f32.mrb[114].mxu1 }
 0xc32   :  { %v5033_v26 = vadd.f32 %v5032_v23, %v4754_v18  ;;  %v5076_v28 = vadd.f32 %v5075_v24, %v4762_v6  ;;  %v5034_v29 = vpop.f32.mrb[115].mxu0  ;;  %v5077_v19 = vpop.f32.mrb[115].mxu1  ;;  %v5338_v36 = vmax.f32 %v5029_v14, 0.0  ;;  %v5340_v41 = vmax.f32 %v5072_v15, 0.0  ;;  %v7958_v14 = vld [vmem:[%s9502_s13 + $0x108] sm:$0xff]   ;;  %v7961_v23 = vld [vmem:[%s9502_s13 + $0x1d0] sm:$0xff]  }
 0xc33   :  { %v5035_v1 = vadd.f32 %v5034_v29, %v4758_v7  ;;  %v5078_v32 = vadd.f32 %v5077_v19, %v4766_v8  ;;  %v5339_v27 = vmax.f32 %v5031_v21, 0.0  ;;  %v5341_v38 = vmax.f32 %v5074_v22, 0.0  ;;  %v7960_v22 = vld [vmem:[%s9502_s13 + $0x150] sm:$0xff]  }
 0xc34   :  { %v5354_v37 = vmax.f32 %v5033_v26, 0.0  ;;  %v5356_v25 = vmax.f32 %v5076_v28, 0.0  ;;  %v4798_v15 = vrot.slane %v9104_v62, %v4765_v5 }
 0xc35   :  { %v5355_v39 = vmax.f32 %v5035_v1, 0.0  ;;  %v5357_v40 = vmax.f32 %v5078_v32, 0.0 }
 0xc36   :  { %v5370_v42 = vpack.c.bf16 %v5354_v37, %v5338_v36  ;;  %v5372_v33 = vpack.c.bf16 %v5356_v25, %v5340_v41 }
 0xc37   :  { %v5371_v44 = vpack.c.bf16 %v5355_v39, %v5339_v27  ;;  %v5373_v35 = vpack.c.bf16 %v5357_v40, %v5341_v38  ;;  %v5114_v45 = vpop.f32.mrb[116].mxu0  ;;  %v5157_v46 = vpop.f32.mrb[116].mxu1  ;;  %v7964_v27 = vld [vmem:[%s9502_s13 + $0x158] sm:$0xff]  }
 0xc38   :  { %v5115_v53 = vadd.f32 %v5114_v45, %v4770_v30  ;;  %v5158_v54 = vadd.f32 %v5157_v46, %v4778_v31  ;;  %v5116_v51 = vpop.f32.mrb[117].mxu0  ;;  %v5159_v49 = vpop.f32.mrb[117].mxu1  ;;  %v7965_v38 = vld [vmem:[%s9502_s13 + $0x1d8] sm:$0xff]  }
 0xc39   :  { %v5117_v57 = vadd.f32 %v5116_v51, %v4774_v43  ;;  %v5160_v58 = vadd.f32 %v5159_v49, %v4782_v34  ;;  %v5118_v59 = vpop.f32.mrb[118].mxu0  ;;  %v5161_v61 = vpop.f32.mrb[118].mxu1  ;;  %6449 = vmatprep.mubr.bf16.mxu0 %v5371_v44  ;;  %6490 = vmatprep.mubr.bf16.mxu1 %v5373_v35  ;;  %v7966_v51 = vld [vmem:[%s9502_s13 + $0x118] sm:$0xff]  }
 0xc3a   :  { %v5119_v18 = vadd.f32 %v5118_v59, %v4770_v30  ;;  %v5162_v6 = vadd.f32 %v5161_v61, %v4778_v31  ;;  %v5120_v7 = vpop.f32.mrb[119].mxu0  ;;  %v5163_v8 = vpop.f32.mrb[119].mxu1  ;;  %6450 = vmatmul.mubr.bf16.vlgmr.msra.gmra.mrb[128].mxu0 %v5370_v42  ;;  %6491 = vmatmul.mubr.bf16.vlgmr.msra.gmra.mrb[128].mxu1 %v5372_v33  ;;  %v5342_v17 = vmax.f32 %v5115_v53, 0.0  ;;  %v5344_v20 = vmax.f32 %v5158_v54, 0.0  ;;  %v7967_v49 = vld [vmem:[%s9502_s13 + $0x198] sm:$0xff]  }
 0xc3b   :  { %v5121_v12 = vadd.f32 %v5120_v7, %v4774_v43  ;;  %v5164_v0 = vadd.f32 %v5163_v8, %v4782_v34  ;;  %7309 = vmatpush3.bf16.msra.mxu0 %v7954_v47  ;;  %7331 = vmatpush3.bf16.msra.mxu1 %v7955_v48  ;;  %v5343_v24 = vmax.f32 %v5117_v57, 0.0  ;;  %v5345_v26 = vmax.f32 %v5160_v58, 0.0  ;;  %v7962_v43 = vld [vmem:[%s9502_s13 + $0x110] sm:$0xff]   ;;  %v7968_v57 = vld [vmem:[%s9502_s13 + $0x160] sm:$0xff]  }
 0xc3c   :  { %v5358_v21 = vmax.f32 %v5119_v18, 0.0  ;;  %v5360_v4 = vmax.f32 %v5162_v6, 0.0  ;;  %7310 = vmatprep.subr.bf16.mxu0 %v7956_v16  ;;  %7332 = vmatprep.subr.bf16.mxu1 %v7957_v55  ;;  %v7963_v34 = vld [vmem:[%s9502_s13 + $0x190] sm:$0xff]   ;;  %v4802_v47 = vrot.slane %v9104_v62, %v4769_v9  ;;  %v4806_v48 = vrot.slane %v9104_v62, %v4773_v10  ;;  %v7969_v58 = vld [vmem:[%s9502_s13 + $0x1e0] sm:$0xff]  }
 0xc3d   :  { %v5359_v28 = vmax.f32 %v5121_v12, 0.0  ;;  %v5361_v29 = vmax.f32 %v5164_v0, 0.0  ;;  %v4814_v9 = vrot.slane %v9104_v62, %v4781_v13  ;;  %v7971_v12 = vld [vmem:[%s9502_s13 + $0x1a0] sm:$0xff]  }
 0xc3e   :  { %v9161_v19 = vpack.c.bf16 %v5358_v21, %v5342_v17  ;;  %v9163_v5 = vpack.c.bf16 %v5360_v4, %v5344_v20  ;;  %v7972_v17 = vld [vmem:[%s9502_s13 + $0x168] sm:$0xff]  }
 0xc3f   :  { %v5375_v30 = vpack.c.bf16 %v5359_v28, %v5343_v24  ;;  %v5377_v31 = vpack.c.bf16 %v5361_v29, %v5345_v26  ;;  %7311 = vmatpush3.bf16.msra.mxu0 %v7958_v14  ;;  %7333 = vmatpush3.bf16.msra.mxu1 %v7959_v2  ;;  %v5200_v1 = vpop.f32.mrb[120].mxu0  ;;  %v5243_v32 = vpop.f32.mrb[120].mxu1  ;;  %v7973_v20 = vld [vmem:[%s9502_s13 + $0x1e8] sm:$0xff]  }
 0xc40   :  { %v5201_v36 = vadd.f32 %v5200_v1, %v4786_v56  ;;  %v5244_v41 = vadd.f32 %v5243_v32, %v4794_v3  ;;  %v5202_v37 = vpop.f32.mrb[121].mxu0  ;;  %v5245_v25 = vpop.f32.mrb[121].mxu1  ;;  %7312 = vmatprep.subr.bf16.mxu0 %v7960_v22  ;;  %7334 = vmatprep.subr.bf16.mxu1 %v7961_v23  ;;  %v7974_v1 = vld [vmem:[%s9502_s13 + $0x128] sm:$0xff]  }
 0xc41   :  { %v5203_v39 = vadd.f32 %v5202_v37, %v4790_v11  ;;  %v5246_v40 = vadd.f32 %v5245_v25, %v4798_v15  ;;  %v5204_v42 = vpop.f32.mrb[122].mxu0  ;;  %v5247_v33 = vpop.f32.mrb[122].mxu1  ;;  %6531 = vmatprep.mubr.bf16.mxu0 %v5375_v30  ;;  %6572 = vmatprep.mubr.bf16.mxu1 %v5377_v31  ;;  %v7975_v32 = vld [vmem:[%s9502_s13 + $0x1a8] sm:$0xff]   ;;  %v7977_v37 = vld [vmem:[%s9502_s13 + $0x1f0] sm:$0xff]  }
 0xc42   :  { %v5205_v44 = vadd.f32 %v5204_v42, %v4786_v56  ;;  %v5248_v35 = vadd.f32 %v5247_v33, %v4794_v3  ;;  %v5206_v45 = vpop.f32.mrb[123].mxu0  ;;  %v5249_v46 = vpop.f32.mrb[123].mxu1  ;;  %v5346_v16 = vmax.f32 %v5201_v36, 0.0  ;;  %v5348_v55 = vmax.f32 %v5244_v41, 0.0 }
 0xc43   :  { %v5207_v53 = vadd.f32 %v5206_v45, %v4790_v11  ;;  %v5250_v54 = vadd.f32 %v5249_v46, %v4798_v15  ;;  %7313 = vmatpush3.bf16.msra.mxu0 %v7962_v43  ;;  %7335 = vmatpush3.bf16.msra.mxu1 %v7963_v34  ;;  %v5347_v59 = vmax.f32 %v5203_v39, 0.0  ;;  %v5349_v61 = vmax.f32 %v5246_v40, 0.0  ;;  %v7970_v11 = vld [vmem:[%s9502_s13 + $0x120] sm:$0xff]   ;;  %v7979_v45 = vld [vmem:[%s9502_s13 + $0x1b0] sm:$0xff]   ;;  %v7980_v46 = vld [vmem:[%s9502_s13 + $0x178] sm:$0xff]  }
 0xc44   :  { %v5362_v56 = vmax.f32 %v5205_v44, 0.0  ;;  %v5364_v10 = vmax.f32 %v5248_v35, 0.0  ;;  %7314 = vmatprep.subr.bf16.mxu0 %v7964_v27  ;;  %7336 = vmatprep.subr.bf16.mxu1 %v7965_v38  ;;  %v7978_v35 = vld [vmem:[%s9502_s13 + $0x130] sm:$0xff]  }
 0xc45   :  { %v5363_v3 = vmax.f32 %v5207_v53, 0.0  ;;  %v5365_v60 = vmax.f32 %v5250_v54, 0.0  ;;  %v7983_v53 = vld [vmem:[%s9502_s13 + $0x1b8] sm:$0xff]   ;;  %v7984_v54 = vld [vmem:[%s9502_s13 + $0x240] sm:$0xff]  }
 0xc46   :  { %v9198_v18 = vpack.c.bf16 %v5362_v56, %v5346_v16  ;;  %v9200_v62 = vpack.c.bf16 %v5364_v10, %v5348_v55  ;;  %v7988_v16 = vld [vmem:[%s9502_s13 + $0x248] sm:$0xff]  }
 0xc47   :  { %v9202_v13 = vpack.c.bf16 %v5363_v3, %v5347_v59  ;;  %v9204_v6 = vpack.c.bf16 %v5365_v60, %v5349_v61  ;;  %7315 = vmatpush3.bf16.msra.mxu0 %v7966_v51  ;;  %7337 = vmatpush3.bf16.msra.mxu1 %v7967_v49  ;;  %v5286_v7 = vpop.f32.mrb[124].mxu0  ;;  %v5329_v8 = vpop.f32.mrb[124].mxu1  ;;  %v7985_v51 = vld [vmem:[%s9502_s13 + $0x2c0] sm:$0xff]   ;;  %v7989_v55 = vld [vmem:[%s9502_s13 + $0x2c8] sm:$0xff]   ;;  %v7996_v59 = vld [vmem:[%s9502_s13 + $0x258] sm:$0xff]  }
 0xc48   :  { %v5287_v0 = vadd.f32 %v5286_v7, %v4802_v47  ;;  %v5330_v14 = vadd.f32 %v5329_v8, %v9107_v63  ;;  %v5288_v2 = vpop.f32.mrb[125].mxu0  ;;  %v5331_v15 = vpop.f32.mrb[125].mxu1  ;;  %7316 = vmatprep.subr.bf16.mxu0 %v7968_v57  ;;  %7338 = vmatprep.subr.bf16.mxu1 %v7969_v58  ;;  %v7986_v49 = vld [vmem:[%s9502_s13 + $0x200] sm:$0xff]   ;;  %v7990_v56 = vld [vmem:[%s9502_s13 + $0x208] sm:$0xff]   ;;  %v7994_v57 = vld [vmem:[%s9502_s13 + $0x210] sm:$0xff]  }
 0xc49   :  { %v5289_v21 = vadd.f32 %v5288_v2, %v4806_v48  ;;  %v5332_v4 = vadd.f32 %v5331_v15, %v4814_v9  ;;  %v5290_v22 = vpop.f32.mrb[126].mxu0  ;;  %v5333_v23 = vpop.f32.mrb[126].mxu1  ;;  %v7991_v10 = vld [vmem:[%s9502_s13 + $0x288] sm:$0xff]   ;;  %v7995_v58 = vld [vmem:[%s9502_s13 + $0x290] sm:$0xff]   ;;  %v7997_v61 = vld [vmem:[%s9502_s13 + $0x2d8] sm:$0xff]  }
 0xc4a   :  { %v5291_v24 = vadd.f32 %v5290_v22, %v4802_v47  ;;  %v5334_v26 = vadd.f32 %v5333_v23, %v9107_v63  ;;  %v5292_v28 = vpop.f32.mrb[127].mxu0  ;;  %v5335_v29 = vpop.f32.mrb[127].mxu1  ;;  %v5350_v43 = vmax.f32 %v5287_v0, 0.0  ;;  %v5352_v34 = vmax.f32 %v5330_v14, 0.0  ;;  %v7976_v63 = vld [vmem:[%s9502_s13 + $0x170] sm:$0xff]   ;;  %v7981_v47 = vld [vmem:[%s9502_s13 + $0x1f8] sm:$0xff]  }
 0xc4b   :  { %v5293_v30 = vadd.f32 %v5292_v28, %v4806_v48  ;;  %v5336_v31 = vadd.f32 %v5335_v29, %v4814_v9  ;;  %7317 = vmatpush3.bf16.msra.mxu0 %v7970_v11  ;;  %7339 = vmatpush3.bf16.msra.mxu1 %v7971_v12  ;;  %v5351_v25 = vmax.f32 %v5289_v21, 0.0  ;;  %v5353_v27 = vmax.f32 %v5332_v4, 0.0  ;;  %v7982_v48 = vld [vmem:[%s9502_s13 + $0x138] sm:$0xff]   ;;  %v7987_v9 = vld [vmem:[%s9502_s13 + $0x280] sm:$0xff]   ;;  %v8004_v11 = vld [vmem:[%s9502_s13 + $0x268] sm:$0xff]  }
 0xc4c   :  { %v5366_v36 = vmax.f32 %v5291_v24, 0.0  ;;  %v5368_v41 = vmax.f32 %v5334_v26, 0.0  ;;  %7318 = vmatprep.subr.bf16.mxu0 %v7972_v17  ;;  %7340 = vmatprep.subr.bf16.mxu1 %v7973_v20  ;;  %v7998_v3 = vld [vmem:[%s9502_s13 + $0x218] sm:$0xff]   ;;  %v8002_v7 = vld [vmem:[%s9502_s13 + $0x220] sm:$0xff]   ;;  %v8005_v12 = vld [vmem:[%s9502_s13 + $0x2e8] sm:$0xff]  }
 0xc4d   :  { %v5367_v38 = vmax.f32 %v5293_v30, 0.0  ;;  %v5369_v39 = vmax.f32 %v5336_v31, 0.0  ;;  %v7999_v60 = vld [vmem:[%s9502_s13 + $0x298] sm:$0xff]   ;;  %v8003_v8 = vld [vmem:[%s9502_s13 + $0x2a0] sm:$0xff]   ;;  %v8006_v0 = vld [vmem:[%s9502_s13 + $0x228] sm:$0xff]  }
 0xc4e   :  { %v9232_v40 = vpack.c.bf16 %v5366_v36, %v5350_v43  ;;  %v9234_v42 = vpack.c.bf16 %v5368_v41, %v5352_v34  ;;  %v8007_v14 = vld [vmem:[%s9502_s13 + $0x2a8] sm:$0xff]   ;;  %v8008_v2 = vld [vmem:[%s9502_s13 + $0x270] sm:$0xff]   ;;  %v8012_v21 = vld [vmem:[%s9502_s13 + $0x278] sm:$0xff]  }
 0xc4f   :  { %v9236_v33 = vpack.c.bf16 %v5367_v38, %v5351_v25  ;;  %v9238_v44 = vpack.c.bf16 %v5369_v39, %v5353_v27  ;;  %7319 = vmatpush3.bf16.msra.mxu0 %v7974_v1  ;;  %7341 = vmatpush3.bf16.msra.mxu1 %v7975_v32  ;;  %v8009_v15 = vld [vmem:[%s9502_s13 + $0x2f0] sm:$0xff]   ;;  %v8013_v4 = vld [vmem:[%s9502_s13 + $0x2f8] sm:$0xff]   ;;  %v8016_v24 = vld [vmem:[%s9502_s13 + $0x340] sm:$0xff]  }
 0xc50   :  { %7320 = vmatprep.subr.bf16.mxu0 %v7976_v63  ;;  %7342 = vmatprep.subr.bf16.mxu1 %v7977_v37  ;;  %v8010_v17 = vld [vmem:[%s9502_s13 + $0x230] sm:$0xff]   ;;  %v8014_v22 = vld [vmem:[%s9502_s13 + $0x238] sm:$0xff]   ;;  %v8017_v26 = vld [vmem:[%s9502_s13 + $0x3c0] sm:$0xff]  }
 0xc51   :  { %v8011_v20 = vld [vmem:[%s9502_s13 + $0x2b0] sm:$0xff]   ;;  %v8015_v23 = vld [vmem:[%s9502_s13 + $0x2b8] sm:$0xff]   ;;  %v8018_v28 = vld [vmem:[%s9502_s13 + $0x300] sm:$0xff]  }
 0xc52   :  { %v8019_v29 = vld [vmem:[%s9502_s13 + $0x380] sm:$0xff]   ;;  %v8020_v30 = vld [vmem:[%s9502_s13 + $0x348] sm:$0xff]   ;;  %v8026_v43 = vld [vmem:[%s9502_s13 + $0x310] sm:$0xff]  }
 0xc53   :  { %7321 = vmatpush3.bf16.msra.mxu0 %v7978_v35  ;;  %7343 = vmatpush3.bf16.msra.mxu1 %v7979_v45  ;;  %v8021_v31 = vld [vmem:[%s9502_s13 + $0x3c8] sm:$0xff]   ;;  %v8027_v34 = vld [vmem:[%s9502_s13 + $0x390] sm:$0xff]   ;;  %v8028_v36 = vld [vmem:[%s9502_s13 + $0x358] sm:$0xff]  }
 0xc54   :  { %7322 = vmatprep.subr.bf16.mxu0 %v7980_v46  ;;  %7344 = vmatprep.subr.bf16.mxu1 %v7981_v47  ;;  %v8022_v1 = vld [vmem:[%s9502_s13 + $0x308] sm:$0xff]   ;;  %v8029_v41 = vld [vmem:[%s9502_s13 + $0x3d8] sm:$0xff]   ;;  %v8032_v25 = vld [vmem:[%s9502_s13 + $0x360] sm:$0xff]  }
 0xc55   :  { %v8023_v32 = vld [vmem:[%s9502_s13 + $0x388] sm:$0xff]   ;;  %v8030_v63 = vld [vmem:[%s9502_s13 + $0x318] sm:$0xff]   ;;  %v8033_v27 = vld [vmem:[%s9502_s13 + $0x3e0] sm:$0xff]  }
 0xc56   :  { %v8031_v37 = vld [vmem:[%s9502_s13 + $0x398] sm:$0xff]   ;;  %v8034_v38 = vld [vmem:[%s9502_s13 + $0x320] sm:$0xff]   ;;  %v8038_v35 = vld [vmem:[%s9502_s13 + $0x328] sm:$0xff]  }
 0xc57   :  { %7323 = vmatpush3.bf16.msra.mxu0 %v7982_v48  ;;  %7345 = vmatpush3.bf16.msra.mxu1 %v7983_v53  ;;  %v8035_v39 = vld [vmem:[%s9502_s13 + $0x3a0] sm:$0xff]   ;;  %v8039_v45 = vld [vmem:[%s9502_s13 + $0x3a8] sm:$0xff]   ;;  %v8040_v46 = vld [vmem:[%s9502_s13 + $0x370] sm:$0xff]  }
 0xc58   :  { %7352 = vmatprep.subr.bf16.mxu0 %v7984_v54  ;;  %7374 = vmatprep.subr.bf16.mxu1 %v7985_v51  ;;  %v8041_v47 = vld [vmem:[%s9502_s13 + $0x3f0] sm:$0xff]   ;;  %v8044_v54 = vld [vmem:[%s9502_s13 + $0x378] sm:$0xff]  }
 0xc59   :  { %v8042_v48 = vld [vmem:[%s9502_s13 + $0x330] sm:$0xff]   ;;  %v8045_v51 = vld [vmem:[%s9502_s13 + $0x3f8] sm:$0xff]  }
 0xc5a   :  { %6532 = vmatmul.mubr.bf16.vlgmr.msra.gmra.mrb[132].mxu0 %v9161_v19  ;;  %6573 = vmatmul.mubr.bf16.vlgmr.msra.gmra.mrb[132].mxu1 %v9163_v5  ;;  %v7992_v19 = vld [vmem:[%s9502_s13 + $0x250] sm:$0xff]  }
 0xc5b   :  { %7353 = vmatpush3.bf16.msra.mxu0 %v7986_v49  ;;  %6613 = vmatprep.mubr.bf16.mxu0 %v9202_v13  ;;  %v7993_v5 = vld [vmem:[%s9502_s13 + $0x2d0] sm:$0xff]   ;;  %v8000_v13 = vld [vmem:[%s9502_s13 + $0x260] sm:$0xff]   ;;  %v8046_v49 = vld [vmem:[%s9502_s13 + $0x338] sm:$0xff]  }
 0xc5c   :  { %7375 = vmatpush3.bf16.msra.mxu1 %v7987_v9  ;;  %6654 = vmatprep.mubr.bf16.mxu1 %v9204_v6  ;;  %v8001_v6 = vld [vmem:[%s9502_s13 + $0x2e0] sm:$0xff]   ;;  %v8043_v53 = vld [vmem:[%s9502_s13 + $0x3b0] sm:$0xff]   ;;  %v8047_v9 = vld [vmem:[%s9502_s13 + $0x3b8] sm:$0xff]  }
 0xc5d   :  { %7354 = vmatprep.subr.bf16.mxu0 %v7988_v16  ;;  %7376 = vmatprep.subr.bf16.mxu1 %v7989_v55 }
 0xc5f   :  { %7355 = vmatpush3.bf16.msra.mxu0 %v7990_v56  ;;  %v6965_v56 = vld [vmem:[%s9503_s14] ss:$0 sm:$0xff] }
 0xc60   :  { %7377 = vmatpush3.bf16.msra.mxu1 %v7991_v10  ;;  %7356 = vmatprep.subr.bf16.mxu0 %v7992_v19 }
 0xc61   :  { %7378 = vmatprep.subr.bf16.mxu1 %v7993_v5 }
 0xc63   :  { %7357 = vmatpush3.bf16.msra.mxu0 %v7994_v57 }
 0xc64   :  { %7379 = vmatpush3.bf16.msra.mxu1 %v7995_v58  ;;  %7358 = vmatprep.subr.bf16.mxu0 %v7996_v59 }
 0xc65   :  { %7380 = vmatprep.subr.bf16.mxu1 %v7997_v61 }
 0xc67   :  { %7359 = vmatpush3.bf16.msra.mxu0 %v7998_v3 }
 0xc68   :  { %7381 = vmatpush3.bf16.msra.mxu1 %v7999_v60  ;;  %7360 = vmatprep.subr.bf16.mxu0 %v8000_v13 }
 0xc69   :  { %7382 = vmatprep.subr.bf16.mxu1 %v8001_v6 }
 0xc6b   :  { %7361 = vmatpush3.bf16.msra.mxu0 %v8002_v7 }
 0xc6c   :  { %7383 = vmatpush3.bf16.msra.mxu1 %v8003_v8  ;;  %7362 = vmatprep.subr.bf16.mxu0 %v8004_v11 }
 0xc6d   :  { %7384 = vmatprep.subr.bf16.mxu1 %v8005_v12 }
 0xc6f   :  { %7363 = vmatpush3.bf16.msra.mxu0 %v8006_v0 }
 0xc70   :  { %7385 = vmatpush3.bf16.msra.mxu1 %v8007_v14  ;;  %7364 = vmatprep.subr.bf16.mxu0 %v8008_v2 }
 0xc71   :  { %7386 = vmatprep.subr.bf16.mxu1 %v8009_v15 }
 0xc73   :  { %7365 = vmatpush3.bf16.msra.mxu0 %v8010_v17 }
 0xc74   :  { %7387 = vmatpush3.bf16.msra.mxu1 %v8011_v20  ;;  %7366 = vmatprep.subr.bf16.mxu0 %v8012_v21 }
 0xc75   :  { %7388 = vmatprep.subr.bf16.mxu1 %v8013_v4 }
 0xc77   :  { %7367 = vmatpush3.bf16.msra.mxu0 %v8014_v22 }
 0xc78   :  { %7389 = vmatpush3.bf16.msra.mxu1 %v8015_v23  ;;  %7396 = vmatprep.subr.bf16.mxu0 %v8016_v24 }
 0xc79   :  { %7418 = vmatprep.subr.bf16.mxu1 %v8017_v26 }
 0xc7a   :  { %6614 = vmatmul.mubr.bf16.vlgmr.msra.gmra.mrb[136].mxu0 %v9198_v18  ;;  %v8024_v18 = vld [vmem:[%s9502_s13 + $0x350] sm:$0xff]  }
 0xc7b   :  { %6655 = vmatmul.mubr.bf16.vlgmr.msra.gmra.mrb[136].mxu1 %v9200_v62  ;;  %7397 = vmatpush3.bf16.msra.mxu0 %v8018_v28  ;;  %v8025_v62 = vld [vmem:[%s9502_s13 + $0x3d0] sm:$0xff]  }
 0xc7c   :  { %6695 = vmatprep.mubr.bf16.mxu0 %v9236_v33  ;;  %7419 = vmatpush3.bf16.msra.mxu1 %v8019_v29  ;;  %v8036_v33 = vld [vmem:[%s9502_s13 + $0x368] sm:$0xff]  }
 0xc7d   :  { %6736 = vmatprep.mubr.bf16.mxu1 %v9238_v44  ;;  %7398 = vmatprep.subr.bf16.mxu0 %v8020_v30  ;;  %v8037_v44 = vld [vmem:[%s9502_s13 + $0x3e8] sm:$0xff]  }
 0xc7e   :  { %7420 = vmatprep.subr.bf16.mxu1 %v8021_v31 }
 0xc7f   :  { %7399 = vmatpush3.bf16.msra.mxu0 %v8022_v1 }
 0xc80   :  { %7421 = vmatpush3.bf16.msra.mxu1 %v8023_v32  ;;  %7400 = vmatprep.subr.bf16.mxu0 %v8024_v18 }
 0xc81   :  { %7422 = vmatprep.subr.bf16.mxu1 %v8025_v62 }
 0xc83   :  { %7401 = vmatpush3.bf16.msra.mxu0 %v8026_v43 }
 0xc84   :  { %7423 = vmatpush3.bf16.msra.mxu1 %v8027_v34  ;;  %7402 = vmatprep.subr.bf16.mxu0 %v8028_v36 }
 0xc85   :  { %7424 = vmatprep.subr.bf16.mxu1 %v8029_v41 }
 0xc87   :  { %7403 = vmatpush3.bf16.msra.mxu0 %v8030_v63 }
 0xc88   :  { %7425 = vmatpush3.bf16.msra.mxu1 %v8031_v37  ;;  %7404 = vmatprep.subr.bf16.mxu0 %v8032_v25 }
 0xc89   :  { %7426 = vmatprep.subr.bf16.mxu1 %v8033_v27 }
 0xc8b   :  { %7405 = vmatpush3.bf16.msra.mxu0 %v8034_v38 }
 0xc8c   :  { %7427 = vmatpush3.bf16.msra.mxu1 %v8035_v39  ;;  %7406 = vmatprep.subr.bf16.mxu0 %v8036_v33 }
 0xc8d   :  { %7428 = vmatprep.subr.bf16.mxu1 %v8037_v44 }
 0xc8f   :  { %7407 = vmatpush3.bf16.msra.mxu0 %v8038_v35 }
 0xc90   :  { %7429 = vmatpush3.bf16.msra.mxu1 %v8039_v45  ;;  %7408 = vmatprep.subr.bf16.mxu0 %v8040_v46 }
 0xc91   :  { %7430 = vmatprep.subr.bf16.mxu1 %v8041_v47 }
 0xc93   :  { %7409 = vmatpush3.bf16.msra.mxu0 %v8042_v48 }
 0xc94   :  { %7431 = vmatpush3.bf16.msra.mxu1 %v8043_v53  ;;  %7410 = vmatprep.subr.bf16.mxu0 %v8044_v54 }
 0xc95   :  { %7432 = vmatprep.subr.bf16.mxu1 %v8045_v51 }
 0xc97   :  { %7411 = vmatpush3.bf16.msra.mxu0 %v8046_v49 }
 0xc98   :  { %7433 = vmatpush3.bf16.msra.mxu1 %v8047_v9 }
 0xc9a   :  { %6696 = vmatmul.mubr.bf16.vlgmr.msra.gmra.mrb[140].mxu0 %v9232_v40 }
 0xc9b   :  { %6737 = vmatmul.mubr.bf16.vlgmr.msra.gmra.mrb[140].mxu1 %v9234_v42 }
 0xd0d   :  { %v7280_v16 = vpop.f32.mrb[128].mxu0  ;;  %v7302_v55 = vpop.f32.mrb[128].mxu1 }
 0xd0e   :  { %v7281_v10 = vpop.f32.mrb[129].mxu0  ;;  %v7303_v19 = vpop.f32.mrb[129].mxu1 }
 0xd0f   :  { %v7282_v5 = vadd.f32 %v7281_v10, %v7280_v16  ;;  %v7304_v57 = vadd.f32 %v7303_v19, %v7302_v55  ;;  %v7283_v58 = vpop.f32.mrb[130].mxu0  ;;  %v7305_v59 = vpop.f32.mrb[130].mxu1 }
 0xd10   :  { %v7284_v61 = vpop.f32.mrb[131].mxu0  ;;  %v7306_v3 = vpop.f32.mrb[131].mxu1 }
 0xd11   :  { %v6452_v60 = vadd.f32 %v7282_v5, %v6965_v56  ;;  %v7285_v13 = vadd.f32 %v7284_v61, %v7283_v58  ;;  %v7307_v6 = vadd.f32 %v7306_v3, %v7305_v59 }
 0xd13   :  { %v6493_v40 = vadd.f32 %v7304_v57, %v6452_v60  ;;  %v6455_v7 = vadd.f32 %v7285_v13, %v6965_v56 }
 0xd15   :  { %v6496_v42 = vadd.f32 %v7307_v6, %v6455_v7 }
 0xd2d   :  { %v7324_v8 = vpop.f32.mrb[132].mxu0  ;;  %v7346_v11 = vpop.f32.mrb[132].mxu1 }
 0xd2e   :  { %v7325_v12 = vpop.f32.mrb[133].mxu0  ;;  %v7347_v0 = vpop.f32.mrb[133].mxu1 }
 0xd2f   :  { %v7326_v14 = vadd.f32 %v7325_v12, %v7324_v8  ;;  %v7348_v2 = vadd.f32 %v7347_v0, %v7346_v11  ;;  %v7327_v15 = vpop.f32.mrb[134].mxu0  ;;  %v7349_v17 = vpop.f32.mrb[134].mxu1 }
 0xd30   :  { %v7328_v20 = vpop.f32.mrb[135].mxu0  ;;  %v7350_v21 = vpop.f32.mrb[135].mxu1 }
 0xd31   :  { %v6534_v4 = vadd.f32 %v7326_v14, %v6493_v40  ;;  %v7329_v22 = vadd.f32 %v7328_v20, %v7327_v15  ;;  %v7351_v23 = vadd.f32 %v7350_v21, %v7349_v17  ;;  %v7095_v20 = vld [vmem:[%s9505_s16] ss:$0 sm:$0xff] }
 0xd33   :  { %v6575_v24 = vadd.f32 %v7348_v2, %v6534_v4  ;;  %v6537_v26 = vadd.f32 %v7329_v22, %v6496_v42  ;;  %v7094_v2 = vld [vmem:[%s9504_s15] ss:$0 sm:$0xff] }
 0xd35   :  { %v6578_v28 = vadd.f32 %v7351_v23, %v6537_v26 }
 0xd4d   :  { %v7368_v29 = vpop.f32.mrb[136].mxu0 }
 0xd4e   :  { %v7390_v30 = vpop.f32.mrb[136].mxu1  ;;  %v7369_v31 = vpop.f32.mrb[137].mxu0 }
 0xd4f   :  { %v7370_v1 = vadd.f32 %v7369_v31, %v7368_v29  ;;  %v7391_v32 = vpop.f32.mrb[137].mxu1  ;;  %v7371_v18 = vpop.f32.mrb[138].mxu0 }
 0xd50   :  { %v7392_v62 = vadd.f32 %v7391_v32, %v7390_v30  ;;  %v7393_v43 = vpop.f32.mrb[138].mxu1  ;;  %v7372_v34 = vpop.f32.mrb[139].mxu0 }
 0xd51   :  { %v6616_v36 = vadd.f32 %v7370_v1, %v6575_v24  ;;  %v7373_v41 = vadd.f32 %v7372_v34, %v7371_v18  ;;  %v7394_v63 = vpop.f32.mrb[139].mxu1 }
 0xd52   :  { %v7395_v37 = vadd.f32 %v7394_v63, %v7393_v43 }
 0xd53   :  { %v6657_v25 = vadd.f32 %v7392_v62, %v6616_v36  ;;  %v6619_v27 = vadd.f32 %v7373_v41, %v6578_v28 }
 0xd55   :  { %v6660_v38 = vadd.f32 %v7395_v37, %v6619_v27 }
 0xd6d   :  { %v7412_v39 = vpop.f32.mrb[140].mxu0 }
 0xd6e   :  { %v7434_v33 = vpop.f32.mrb[140].mxu1  ;;  %v7413_v44 = vpop.f32.mrb[141].mxu0 }
 0xd6f   :  { %v7414_v35 = vadd.f32 %v7413_v44, %v7412_v39  ;;  %v7435_v45 = vpop.f32.mrb[141].mxu1  ;;  %v7415_v46 = vpop.f32.mrb[142].mxu0 }
 0xd70   :  { %v7436_v47 = vadd.f32 %v7435_v45, %v7434_v33  ;;  %v7437_v48 = vpop.f32.mrb[142].mxu1  ;;  %v7416_v53 = vpop.f32.mrb[143].mxu0 }
 0xd71   :  { %v6698_v54 = vadd.f32 %v7414_v35, %v6657_v25  ;;  %v7417_v51 = vadd.f32 %v7416_v53, %v7415_v46  ;;  %v7438_v49 = vpop.f32.mrb[143].mxu1 }
 0xd72   :  { %v7439_v9 = vadd.f32 %v7438_v49, %v7437_v48 }
 0xd73   :  { %v6739_v16 = vadd.f32 %v7436_v47, %v6698_v54  ;;  %v6701_v55 = vadd.f32 %v7417_v51, %v6660_v38 }
 0xd75   :  { %v6742_v56 = vadd.f32 %v7439_v9, %v6701_v55  ;;  %v6745_v10 = vadd.f32 %v6739_v16, %v8918_v50 }
 0xd77   :  { %v6749_v19 = vsel %vm94_vm1, %v6745_v10, 0.0  ;;  %v6746_v5 = vadd.f32 %v6742_v56, %v8920_v52 }
 0xd78   :  { %6750 = vadd.xlane.f32.xlu1 %v6749_v19 }
 0xd79   :  { %v6752_v57 = vsel %vm94_vm1, %v6746_v5, 0.0 }
 0xd7a   :  { %6753 = vadd.xlane.f32.xlu0 %v6752_v57 }
 0xe05   :  { %v6751_v58 = vpop.xlane.xlu1 %6750 }
 0xe06   :  { %v6755_v59 = vmul.f32 0.03125, %v6751_v58 }
 0xe07   :  { %v6754_v61 = vpop.xlane.xlu0 %6753 }
 0xe08   :  { %v6757_v3 = vsub.f32 %v6745_v10, %v6755_v59  ;;  %v6756_v60 = vmul.f32 0.03125, %v6754_v61 }
 0xe0a   :  { %v6758_v13 = vsub.f32 %v6746_v5, %v6756_v60  ;;  %v6759_v6 = vmul.f32 %v6757_v3, %v6757_v3 }
 0xe0c   :  { %v6761_v40 = vsel %vm94_vm1, %v6759_v6, 0.0  ;;  %v6760_v7 = vmul.f32 %v6758_v13, %v6758_v13 }
 0xe0d   :  { %6762 = vadd.xlane.f32.xlu1 %v6761_v40 }
 0xe0e   :  { %v6764_v50 = vsel %vm94_vm1, %v6760_v7, 0.0 }
 0xe0f   :  { %6765 = vadd.xlane.f32.xlu0 %v6764_v50 }
 0xe9a   :  { %v6763_v42 = vpop.xlane.xlu1 %6762 }
 0xe9b   :  { %v6767_v52 = vmul.f32 0.03125, %v6763_v42 }
 0xe9c   :  { %v6766_v8 = vpop.xlane.xlu0 %6765 }
 0xe9d   :  { %v6769_v11 = vadd.f32 1e-06, %v6767_v52  ;;  %v6768_v12 = vmul.f32 0.03125, %v6766_v8 }
 0xe9f   :  { %8120 = vrsqrt.f32 %v6769_v11  ;;  %v6770_v0 = vadd.f32 1e-06, %v6768_v12 }
 0xea1   :  { %8122 = vrsqrt.f32 %v6770_v0 }
 0xea9   :  { %v8121_v14 = vpop.eup %8120 }
 0xeaa   :  { %v6773_v15 = vmul.f32 %v8121_v14, %v6757_v3 }
 0xeab   :  { %v8123_v17 = vpop.eup %8122 }
 0xeac   :  { %v6774_v21 = vmul.f32 %v8123_v17, %v6758_v13  ;;  %v6781_v4 = vmul.f32 %v7094_v2, %v6773_v15 }
 0xeae   :  { %v6782_v22 = vmul.f32 %v7094_v2, %v6774_v21  ;;  %v6789_v23 = vadd.f32 %v7095_v20, %v6781_v4 }
 0xeb0   :  { %v6790_v24 = vadd.f32 %v7095_v20, %v6782_v22  ;;  %6791 = vst.msk [vmem:[#allocation2] sm:$0xff] %vm94_vm1, %v6789_v23 }
 0xeb2   :  { %6792 = vst.msk [vmem:[#allocation2 + $0x8] sm:$0xff] %vm94_vm1, %v6790_v24 }
 0xeb3   :  { %8137 = shalt.err (!%p8134_p4)
}
 0xeb4   :  { %s8138_s28 = scalar_lea.hbm %s9506_s17, 256 }
 0xeb5   :  { %p8139_p5 = scmp.ne.s32.totalorder %s9506_s17, %s8138_s28  ;;  %p8142_p6 = scmp.lt.u32.totalorder %s8138_s28, %s9506_s17 }
 0xeb7   :  { %p8144_p7 = pnand %p8142_p6, %p8139_p5 }
 0xeb9   :  { %8147 = shalt.err (!%p8144_p7)
}
 0xeba   :  { %s8156_s5 = smov 128   ;;  %s8157_s9 = smov 8  }
 0xebb   :  { %6804 = dma.vmem_to_hbm [thread:$0]  %s6799_s26, 256, %s9506_s17, [#allocation3], %s8156_s5, %s8156_s5, %s8157_s9  }
 0xebc   :  { %8148 = dma.done.wait [#allocation3], 256  }
 0xebd   :  { %8149 = vsyncadd [#allocation3], 4294967040 }
 0xebe   :  { %6808 = vsyncpa [#allocation3], 1 }

</bundles_post_ra>
